<compile_context>
chip_gen: v7x
topology: tpu7x:2x2x1
jax: 0.10.0
libtpu: 0.0.40
codegen_flags: <defaults>
</compile_context>

<pallas_src>
import jax
import jax.numpy as jnp
import numpy as np
from jax.experimental import pallas as pl
from jax.experimental.pallas import tpu as pltpu

BN_EPS = 1e-5
LANES = 128

# Small compat shim in case of older naming; compiler_params=None is always accepted.
_CompilerParams = getattr(pltpu, "CompilerParams", None) or getattr(
    pltpu, "TPUCompilerParams", None)


def _mosaic_params(*dim_semantics):
    if _CompilerParams is None:
        return None
    return _CompilerParams(dimension_semantics=tuple(dim_semantics))


def _round_up(x, m):
    return ((x + m - 1) // m) * m


def _pick_tile_h(hu, wu, max_rows=512):
    """Largest TH dividing Hu with TH*Wu <= max_rows output pixels per tile.

    512 rows x 128 lanes keeps every block a few hundred KiB (comfortably inside the
    v7x 64 MiB VMEM budget with double buffering) while sitting at the measured
    ~85%-of-HBM-roofline tile size.
    """
    best = 1
    for th in range(1, hu + 1):
        if hu % th == 0 and th * wu <= max_rows:
            best = th
    return best


def conv_stats_kernel(x_ref, w_ref, y_ref, sum_ref, ssq_ref):
    """Pass 1: 3x3 conv (taps built in-kernel) + per-channel sum / sum-of-squares.

    x_ref:  (1, TH+2, Wu+2, Cinp)  bf16   haloed input tile (upsampled, padded)
    w_ref:  (9, Cinp, Coutp)       bf16   per-tap weights (tap k = 3*dy + dx)
    y_ref:  (TH*Wu, Coutp)         f32    conv output rows for this tile
    sum_ref/ssq_ref: (1, Coutp)    f32    batch-stat accumulators (resident across grid)
    """
    _, hpad, wpad, cinp = x_ref.shape
    th, wu = hpad - 2, wpad - 2
    coutp = y_ref.shape[1]

    @pl.when(pl.program_id(0) == 0)
    def _init():
        sum_ref[...] = jnp.zeros_like(sum_ref)
        ssq_ref[...] = jnp.zeros_like(ssq_ref)

    x = x_ref[0]  # (TH+2, Wu+2, Cinp) bf16
    acc = jnp.zeros((th * wu, coutp), dtype=jnp.float32)
    for k in range(9):  # static unroll: 9 MXU matmuls, f32 accumulation
        dy, dx = k // 3, k % 3
        tap = x[dy:dy + th, dx:dx + wu, :].reshape(th * wu, cinp)  # bf16 (rows, Cinp)
        acc = acc + jnp.dot(tap, w_ref[k], preferred_element_type=jnp.float32)

    y_ref[...] = acc
    sum_ref[...] += jnp.sum(acc, axis=0, keepdims=True)
    ssq_ref[...] += jnp.sum(acc * acc, axis=0, keepdims=True)


def bn_relu_kernel(y_ref, scale_ref, shift_ref, o_ref):
    """Pass 2: folded BatchNorm affine + ReLU (lane-dense (rows, 128) tiles)."""
    o_ref[...] = jnp.maximum(y_ref[...] * scale_ref[...] + shift_ref[...], 0.0)


def up_conv_forward(x, w, b, gamma, beta):
    """x: (N, Cin, H, W) f32 NCHW; w: (Cout, Cin, 3, 3); b/gamma/beta: (Cout,).

    Returns (N, Cout, 2H, 2W) f32. Note: the conv bias `b` is intentionally unused --
    BatchNorm (training mode) subtracts the per-channel batch mean right after the conv,
    so the bias cancels exactly.
    """
    del b  # cancelled by BN mean subtraction
    N, Cin, H, W = x.shape
    Cout = w.shape[0]
    Hu, Wu = 2 * H, 2 * W
    Cinp = _round_up(Cin, LANES)
    Coutp = _round_up(Cout, LANES)

    # nn.Upsample(scale_factor=2) default = nearest: out[i, j] = in[i // 2, j // 2]
    xu = jnp.repeat(jnp.repeat(x, 2, axis=2), 2, axis=3)          # (N, Cin, Hu, Wu)
    x_nhwc = jnp.transpose(xu, (0, 2, 3, 1))                      # (N, Hu, Wu, Cin)
    xpad = jnp.pad(x_nhwc, ((0, 0), (1, 1), (1, 1), (0, Cinp - Cin)))
    xpad = xpad.astype(jnp.bfloat16)                              # (N, Hu+2, Wu+2, Cinp)
    Hp, Wp = Hu + 2, Wu + 2

    # Haloed row tiles along H (2 halo rows per TH rows -> only ~2/TH duplicated reads).
    TH = _pick_tile_h(Hu, Wu)
    n_ht = Hu // TH
    row_ids = jnp.arange(n_ht)[:, None] * TH + jnp.arange(TH + 2)[None, :]
    x_tiles = jnp.take(xpad, row_ids, axis=1).reshape(N * n_ht, TH + 2, Wp, Cinp)

    # Per-tap weights: (Cout, Cin, kh, kw) -> (kh, kw, Cin, Cout) -> (9, Cinp, Coutp), bf16.
    w_taps = jnp.transpose(w, (2, 3, 1, 0)).reshape(9, Cin, Cout)
    w_taps = jnp.pad(w_taps, ((0, 0), (0, Cinp - Cin), (0, Coutp - Cout)))
    w_taps = w_taps.astype(jnp.bfloat16)

    R = N * Hu * Wu          # total output pixels (BN reduction size)
    NB = N * n_ht            # grid steps
    TR = TH * Wu             # output rows per tile (multiple of 8; lanes = Coutp = 128)

    # ---- Pass 1: conv + batch statistics -------------------------------------------------
    y, s, ssq = pl.pallas_call(
        conv_stats_kernel,
        out_shape=(
            jax.ShapeDtypeStruct((R, Coutp), jnp.float32),
            jax.ShapeDtypeStruct((1, Coutp), jnp.float32),
            jax.ShapeDtypeStruct((1, Coutp), jnp.float32),
        ),
        grid=(NB,),
        in_specs=[
            pl.BlockSpec((1, TH + 2, Wp, Cinp), lambda b: (b, 0, 0, 0)),
            pl.BlockSpec((9, Cinp, Coutp), lambda b: (0, 0, 0)),
        ],
        out_specs=(
            pl.BlockSpec((TR, Coutp), lambda b: (b, 0)),
            pl.BlockSpec((1, Coutp), lambda b: (0, 0)),
            pl.BlockSpec((1, Coutp), lambda b: (0, 0)),
        ),
        # Stats accumulate across the row-tile axis -> must be sequential.
        # TODO(synk): on v7x, split this axis across the 2 TensorCores with per-core
        # partial (sum, sumsq) and a tiny combine step.
        compiler_params=_mosaic_params("arbitrary"),
    )(x_tiles, w_taps)

    # ---- Tiny per-channel BN math (plain JAX, f32): fold gamma into 1/std ----------------
    rinv = 1.0 / float(R)
    mean = s * rinv                                               # (1, Coutp)
    var = jnp.maximum(ssq * rinv - mean * mean, 0.0)              # biased variance
    gamma_p = jnp.pad(gamma.astype(jnp.float32), (0, Coutp - Cout)).reshape(1, Coutp)
    beta_p = jnp.pad(beta.astype(jnp.float32), (0, Coutp - Cout)).reshape(1, Coutp)
    scale = gamma_p * jax.lax.rsqrt(var + BN_EPS)
    shift = beta_p - mean * scale

    # ---- Pass 2: normalize + ReLU over row tiles (independent -> parallel) ----------------
    out = pl.pallas_call(
        bn_relu_kernel,
        out_shape=jax.ShapeDtypeStruct((R, Coutp), jnp.float32),
        grid=(R // TR,),
        in_specs=[
            pl.BlockSpec((TR, Coutp), lambda i: (i, 0)),
            pl.BlockSpec((1, Coutp), lambda i: (0, 0)),
            pl.BlockSpec((1, Coutp), lambda i: (0, 0)),
        ],
        out_specs=pl.BlockSpec((TR, Coutp), lambda i: (i, 0)),
        compiler_params=_mosaic_params("parallel"),
    )(y, scale, shift)

    # (R, Coutp) -> (N, Hu, Wu, Cout) -> NCHW
    out = out.reshape(N, Hu, Wu, Coutp)[:, :, :, :Cout]
    return jnp.transpose(out, (0, 3, 1, 2))


def up_conv_reference(x, w, b, gamma, beta, operand_dtype=jnp.float32):
    """Pure-JAX reference. operand_dtype=bf16 gives the precision-matched reference
    (same quantized conv operands, f32 accumulation); f32 gives PyTorch semantics."""
    xu = jnp.repeat(jnp.repeat(x, 2, axis=2), 2, axis=3)
    y = jax.lax.conv_general_dilated(
        xu.astype(operand_dtype), w.astype(operand_dtype),
        window_strides=(1, 1), padding=((1, 1), (1, 1)),
        dimension_numbers=("NCHW", "OIHW", "NCHW"),
        preferred_element_type=jnp.float32)
    y = y + b.reshape(1, -1, 1, 1)
    mean = jnp.mean(y, axis=(0, 2, 3), keepdims=True)
    var = jnp.mean((y - mean) ** 2, axis=(0, 2, 3), keepdims=True)
    z = (y - mean) * jax.lax.rsqrt(var + BN_EPS)
    z = z * gamma.reshape(1, -1, 1, 1) + beta.reshape(1, -1, 1, 1)
    return jnp.maximum(z, 0.0)


if __name__ == "__main__":
    N, in_ch, out_ch, H, W = 2, 4, 8, 16, 16

    key = jax.random.PRNGKey(0)
    kx, kw, kb, kg, kbeta = jax.random.split(key, 5)

    x = jax.random.normal(kx, (N, in_ch, H, W), dtype=jnp.float32)
    w = jax.random.normal(kw, (out_ch, in_ch, 3, 3), dtype=jnp.float32) * 0.1
    b = jax.random.normal(kb, (out_ch,), dtype=jnp.float32) * 0.1
    gamma = 1.0 + 0.1 * jax.random.normal(kg, (out_ch,), dtype=jnp.float32)
    beta = 0.1 * jax.random.normal(kbeta, (out_ch,), dtype=jnp.float32)

    fwd = jax.jit(up_conv_forward)
    out = jax.block_until_ready(fwd(x, w, b, gamma, beta))
    assert out.shape == (N, out_ch, 2 * H, 2 * W)

    # Tight check against the precision-matched reference (bf16 MXU operands, f32 accum).
    ref_matched = jax.block_until_ready(
        up_conv_reference(x, w, b, gamma, beta, operand_dtype=jnp.bfloat16))
    np.testing.assert_allclose(np.asarray(out), np.asarray(ref_matched),
                               rtol=1e-3, atol=1e-3)

    # Loose sanity check against the full-f32 (PyTorch-semantics) reference; the only
    # difference is bf16 quantization of the conv operands.
    ref_f32 = jax.block_until_ready(up_conv_reference(x, w, b, gamma, beta))
    np.testing.assert_allclose(np.asarray(out), np.asarray(ref_f32),
                               rtol=1e-1, atol=1e-1)

    print("KERNEL_OK")
</pallas_src>

<mosaic_0001>
module attributes {stable_mosaic.version = 11 : i64} {
  func.func @conv_stats_kernel(%arg0: i32, %arg1: memref<1x18x34x128xbf16, #tpu.memory_space<vmem>>, %arg2: memref<9x128x128xbf16, #tpu.memory_space<vmem>>, %arg3: memref<512x128xf32, #tpu.memory_space<vmem>>, %arg4: memref<1x128xf32, #tpu.memory_space<vmem>>, %arg5: memref<1x128xf32, #tpu.memory_space<vmem>>) attributes {dimension_semantics = [#tpu.dimension_semantics<arbitrary>], iteration_bounds = array<i64: 4>, scalar_prefetch = 0 : i64, scratch_operands = 0 : i64, tpu.core_type = #tpu.core_type<tc>, window_params = [{transform_indices = @transform_0, window_bounds = array<i64: 1, 18, 34, 128>}, {pipeline_mode = #tpu.pipeline_mode<synchronous>, transform_indices = @transform_1, window_bounds = array<i64: 9, 128, 128>}, {transform_indices = @transform_2, window_bounds = array<i64: 512, 128>}, {pipeline_mode = #tpu.pipeline_mode<synchronous>, transform_indices = @transform_3, window_bounds = array<i64: 1, 128>}, {pipeline_mode = #tpu.pipeline_mode<synchronous>, transform_indices = @transform_4, window_bounds = array<i64: 1, 128>}]} {
    %c0_i32 = arith.constant 0 : i32
    %0 = arith.cmpi eq, %arg0, %c0_i32 : i32
    %1 = arith.extui %0 : i1 to i32
    %c0_i32_0 = arith.constant 0 : i32
    %2 = arith.cmpi ne, %1, %c0_i32_0 : i32
    scf.if %2 {
      %cst_44 = arith.constant 0.000000e+00 : f32
      %72 = vector.broadcast %cst_44 : f32 to vector<1x128xf32>
      %c0_45 = arith.constant 0 : index
      %c0_46 = arith.constant 0 : index
      %73 = vector.load %arg4[%c0_45, %c0_46] : memref<1x128xf32, #tpu.memory_space<vmem>>, vector<1x128xf32>
      tpu.vector_store %arg4[%c0_45, %c0_46], %72 {strides = array<i32>} : memref<1x128xf32, #tpu.memory_space<vmem>>, vector<1x128xf32>,
      %cst_47 = arith.constant 0.000000e+00 : f32
      %74 = vector.broadcast %cst_47 : f32 to vector<1x128xf32>
      %c0_48 = arith.constant 0 : index
      %c0_49 = arith.constant 0 : index
      %75 = vector.load %arg5[%c0_48, %c0_49] : memref<1x128xf32, #tpu.memory_space<vmem>>, vector<1x128xf32>
      tpu.vector_store %arg5[%c0_48, %c0_49], %74 {strides = array<i32>} : memref<1x128xf32, #tpu.memory_space<vmem>>, vector<1x128xf32>,
    } else {
    }
    %c0 = arith.constant 0 : index
    %c0_1 = arith.constant 0 : index
    %c0_2 = arith.constant 0 : index
    %c0_3 = arith.constant 0 : index
    %3 = vector.load %arg1[%c0, %c0_1, %c0_2, %c0_3] : memref<1x18x34x128xbf16, #tpu.memory_space<vmem>>, vector<1x18x34x128xbf16>
    %4 = vector.shape_cast %3 : vector<1x18x34x128xbf16> to vector<18x34x128xbf16>
    %cst = arith.constant 0.000000e+00 : f32
    %5 = vector.broadcast %cst : f32 to vector<512x128xf32>
    %6 = vector.extract_strided_slice %4 {offsets = [0, 0, 0], sizes = [16, 32, 128], strides = [1, 1, 1]} : vector<18x34x128xbf16> to vector<16x32x128xbf16>
    %7 = vector.shape_cast %6 : vector<16x32x128xbf16> to vector<512x128xbf16>
    %c0_4 = arith.constant 0 : index
    %c0_5 = arith.constant 0 : index
    %c0_6 = arith.constant 0 : index
    %8 = vector.load %arg2[%c0_4, %c0_5, %c0_6] : memref<9x128x128xbf16, #tpu.memory_space<vmem>>, vector<1x128x128xbf16>
    %9 = vector.shape_cast %8 : vector<1x128x128xbf16> to vector<128x128xbf16>
    %cst_7 = arith.constant dense<0.000000e+00> : vector<512x128xf32>
    %10 = tpu.matmul %7, %9, %cst_7 {dimension_numbers = #tpu.dot_dimension_numbers<[1], [0], [0], [1], [0, 0, 1, 1], [], []>} : vector<512x128xbf16>, vector<128x128xbf16>, vector<512x128xf32> -> vector<512x128xf32>
    %11 = arith.addf %5, %10 : vector<512x128xf32>
    %12 = vector.extract_strided_slice %4 {offsets = [0, 1, 0], sizes = [16, 32, 128], strides = [1, 1, 1]} : vector<18x34x128xbf16> to vector<16x32x128xbf16>
    %13 = vector.shape_cast %12 : vector<16x32x128xbf16> to vector<512x128xbf16>
    %c1 = arith.constant 1 : index
    %c0_8 = arith.constant 0 : index
    %c0_9 = arith.constant 0 : index
    %14 = vector.load %arg2[%c1, %c0_8, %c0_9] : memref<9x128x128xbf16, #tpu.memory_space<vmem>>, vector<1x128x128xbf16>
    %15 = vector.shape_cast %14 : vector<1x128x128xbf16> to vector<128x128xbf16>
    %cst_10 = arith.constant dense<0.000000e+00> : vector<512x128xf32>
    %16 = tpu.matmul %13, %15, %cst_10 {dimension_numbers = #tpu.dot_dimension_numbers<[1], [0], [0], [1], [0, 0, 1, 1], [], []>} : vector<512x128xbf16>, vector<128x128xbf16>, vector<512x128xf32> -> vector<512x128xf32>
    %17 = arith.addf %11, %16 : vector<512x128xf32>
    %18 = vector.extract_strided_slice %4 {offsets = [0, 2, 0], sizes = [16, 32, 128], strides = [1, 1, 1]} : vector<18x34x128xbf16> to vector<16x32x128xbf16>
    %19 = vector.shape_cast %18 : vector<16x32x128xbf16> to vector<512x128xbf16>
    %c2 = arith.constant 2 : index
    %c0_11 = arith.constant 0 : index
    %c0_12 = arith.constant 0 : index
    %20 = vector.load %arg2[%c2, %c0_11, %c0_12] : memref<9x128x128xbf16, #tpu.memory_space<vmem>>, vector<1x128x128xbf16>
    %21 = vector.shape_cast %20 : vector<1x128x128xbf16> to vector<128x128xbf16>
    %cst_13 = arith.constant dense<0.000000e+00> : vector<512x128xf32>
    %22 = tpu.matmul %19, %21, %cst_13 {dimension_numbers = #tpu.dot_dimension_numbers<[1], [0], [0], [1], [0, 0, 1, 1], [], []>} : vector<512x128xbf16>, vector<128x128xbf16>, vector<512x128xf32> -> vector<512x128xf32>
    %23 = arith.addf %17, %22 : vector<512x128xf32>
    %24 = vector.extract_strided_slice %4 {offsets = [1, 0, 0], sizes = [16, 32, 128], strides = [1, 1, 1]} : vector<18x34x128xbf16> to vector<16x32x128xbf16>
    %25 = vector.shape_cast %24 : vector<16x32x128xbf16> to vector<512x128xbf16>
    %c3 = arith.constant 3 : index
    %c0_14 = arith.constant 0 : index
    %c0_15 = arith.constant 0 : index
    %26 = vector.load %arg2[%c3, %c0_14, %c0_15] : memref<9x128x128xbf16, #tpu.memory_space<vmem>>, vector<1x128x128xbf16>
    %27 = vector.shape_cast %26 : vector<1x128x128xbf16> to vector<128x128xbf16>
    %cst_16 = arith.constant dense<0.000000e+00> : vector<512x128xf32>
    %28 = tpu.matmul %25, %27, %cst_16 {dimension_numbers = #tpu.dot_dimension_numbers<[1], [0], [0], [1], [0, 0, 1, 1], [], []>} : vector<512x128xbf16>, vector<128x128xbf16>, vector<512x128xf32> -> vector<512x128xf32>
    %29 = arith.addf %23, %28 : vector<512x128xf32>
    %30 = vector.extract_strided_slice %4 {offsets = [1, 1, 0], sizes = [16, 32, 128], strides = [1, 1, 1]} : vector<18x34x128xbf16> to vector<16x32x128xbf16>
    %31 = vector.shape_cast %30 : vector<16x32x128xbf16> to vector<512x128xbf16>
    %c4 = arith.constant 4 : index
    %c0_17 = arith.constant 0 : index
    %c0_18 = arith.constant 0 : index
    %32 = vector.load %arg2[%c4, %c0_17, %c0_18] : memref<9x128x128xbf16, #tpu.memory_space<vmem>>, vector<1x128x128xbf16>
    %33 = vector.shape_cast %32 : vector<1x128x128xbf16> to vector<128x128xbf16>
    %cst_19 = arith.constant dense<0.000000e+00> : vector<512x128xf32>
    %34 = tpu.matmul %31, %33, %cst_19 {dimension_numbers = #tpu.dot_dimension_numbers<[1], [0], [0], [1], [0, 0, 1, 1], [], []>} : vector<512x128xbf16>, vector<128x128xbf16>, vector<512x128xf32> -> vector<512x128xf32>
    %35 = arith.addf %29, %34 : vector<512x128xf32>
    %36 = vector.extract_strided_slice %4 {offsets = [1, 2, 0], sizes = [16, 32, 128], strides = [1, 1, 1]} : vector<18x34x128xbf16> to vector<16x32x128xbf16>
    %37 = vector.shape_cast %36 : vector<16x32x128xbf16> to vector<512x128xbf16>
    %c5 = arith.constant 5 : index
    %c0_20 = arith.constant 0 : index
    %c0_21 = arith.constant 0 : index
    %38 = vector.load %arg2[%c5, %c0_20, %c0_21] : memref<9x128x128xbf16, #tpu.memory_space<vmem>>, vector<1x128x128xbf16>
    %39 = vector.shape_cast %38 : vector<1x128x128xbf16> to vector<128x128xbf16>
    %cst_22 = arith.constant dense<0.000000e+00> : vector<512x128xf32>
    %40 = tpu.matmul %37, %39, %cst_22 {dimension_numbers = #tpu.dot_dimension_numbers<[1], [0], [0], [1], [0, 0, 1, 1], [], []>} : vector<512x128xbf16>, vector<128x128xbf16>, vector<512x128xf32> -> vector<512x128xf32>
    %41 = arith.addf %35, %40 : vector<512x128xf32>
    %42 = vector.extract_strided_slice %4 {offsets = [2, 0, 0], sizes = [16, 32, 128], strides = [1, 1, 1]} : vector<18x34x128xbf16> to vector<16x32x128xbf16>
    %43 = vector.shape_cast %42 : vector<16x32x128xbf16> to vector<512x128xbf16>
    %c6 = arith.constant 6 : index
    %c0_23 = arith.constant 0 : index
    %c0_24 = arith.constant 0 : index
    %44 = vector.load %arg2[%c6, %c0_23, %c0_24] : memref<9x128x128xbf16, #tpu.memory_space<vmem>>, vector<1x128x128xbf16>
    %45 = vector.shape_cast %44 : vector<1x128x128xbf16> to vector<128x128xbf16>
    %cst_25 = arith.constant dense<0.000000e+00> : vector<512x128xf32>
    %46 = tpu.matmul %43, %45, %cst_25 {dimension_numbers = #tpu.dot_dimension_numbers<[1], [0], [0], [1], [0, 0, 1, 1], [], []>} : vector<512x128xbf16>, vector<128x128xbf16>, vector<512x128xf32> -> vector<512x128xf32>
    %47 = arith.addf %41, %46 : vector<512x128xf32>
    %48 = vector.extract_strided_slice %4 {offsets = [2, 1, 0], sizes = [16, 32, 128], strides = [1, 1, 1]} : vector<18x34x128xbf16> to vector<16x32x128xbf16>
    %49 = vector.shape_cast %48 : vector<16x32x128xbf16> to vector<512x128xbf16>
    %c7 = arith.constant 7 : index
    %c0_26 = arith.constant 0 : index
    %c0_27 = arith.constant 0 : index
    %50 = vector.load %arg2[%c7, %c0_26, %c0_27] : memref<9x128x128xbf16, #tpu.memory_space<vmem>>, vector<1x128x128xbf16>
    %51 = vector.shape_cast %50 : vector<1x128x128xbf16> to vector<128x128xbf16>
    %cst_28 = arith.constant dense<0.000000e+00> : vector<512x128xf32>
    %52 = tpu.matmul %49, %51, %cst_28 {dimension_numbers = #tpu.dot_dimension_numbers<[1], [0], [0], [1], [0, 0, 1, 1], [], []>} : vector<512x128xbf16>, vector<128x128xbf16>, vector<512x128xf32> -> vector<512x128xf32>
    %53 = arith.addf %47, %52 : vector<512x128xf32>
    %54 = vector.extract_strided_slice %4 {offsets = [2, 2, 0], sizes = [16, 32, 128], strides = [1, 1, 1]} : vector<18x34x128xbf16> to vector<16x32x128xbf16>
    %55 = vector.shape_cast %54 : vector<16x32x128xbf16> to vector<512x128xbf16>
    %c8 = arith.constant 8 : index
    %c0_29 = arith.constant 0 : index
    %c0_30 = arith.constant 0 : index
    %56 = vector.load %arg2[%c8, %c0_29, %c0_30] : memref<9x128x128xbf16, #tpu.memory_space<vmem>>, vector<1x128x128xbf16>
    %57 = vector.shape_cast %56 : vector<1x128x128xbf16> to vector<128x128xbf16>
    %cst_31 = arith.constant dense<0.000000e+00> : vector<512x128xf32>
    %58 = tpu.matmul %55, %57, %cst_31 {dimension_numbers = #tpu.dot_dimension_numbers<[1], [0], [0], [1], [0, 0, 1, 1], [], []>} : vector<512x128xbf16>, vector<128x128xbf16>, vector<512x128xf32> -> vector<512x128xf32>
    %59 = arith.addf %53, %58 : vector<512x128xf32>
    %c0_32 = arith.constant 0 : index
    %c0_33 = arith.constant 0 : index
    %60 = vector.load %arg3[%c0_32, %c0_33] : memref<512x128xf32, #tpu.memory_space<vmem>>, vector<512x128xf32>
    tpu.vector_store %arg3[%c0_32, %c0_33], %59 {strides = array<i32>} : memref<512x128xf32, #tpu.memory_space<vmem>>, vector<512x128xf32>,
    %c0_34 = arith.constant 0 : index
    %c0_35 = arith.constant 0 : index
    %61 = vector.load %arg4[%c0_34, %c0_35] : memref<1x128xf32, #tpu.memory_space<vmem>>, vector<1x128xf32>
    %cst_36 = arith.constant dense<0.000000e+00> : vector<128xf32>
    %62 = vector.multi_reduction <add>, %59, %cst_36 [0] : vector<512x128xf32> to vector<128xf32>
    %63 = vector.shape_cast %62 : vector<128xf32> to vector<1x128xf32>
    %64 = arith.addf %61, %63 : vector<1x128xf32>
    %c0_37 = arith.constant 0 : index
    %c0_38 = arith.constant 0 : index
    %65 = vector.load %arg4[%c0_37, %c0_38] : memref<1x128xf32, #tpu.memory_space<vmem>>, vector<1x128xf32>
    tpu.vector_store %arg4[%c0_37, %c0_38], %64 {strides = array<i32>} : memref<1x128xf32, #tpu.memory_space<vmem>>, vector<1x128xf32>,
    %c0_39 = arith.constant 0 : index
    %c0_40 = arith.constant 0 : index
    %66 = vector.load %arg5[%c0_39, %c0_40] : memref<1x128xf32, #tpu.memory_space<vmem>>, vector<1x128xf32>
    %67 = arith.mulf %59, %59 : vector<512x128xf32>
    %cst_41 = arith.constant dense<0.000000e+00> : vector<128xf32>
    %68 = vector.multi_reduction <add>, %67, %cst_41 [0] : vector<512x128xf32> to vector<128xf32>
    %69 = vector.shape_cast %68 : vector<128xf32> to vector<1x128xf32>
    %70 = arith.addf %66, %69 : vector<1x128xf32>
    %c0_42 = arith.constant 0 : index
    %c0_43 = arith.constant 0 : index
    %71 = vector.load %arg5[%c0_42, %c0_43] : memref<1x128xf32, #tpu.memory_space<vmem>>, vector<1x128xf32>
    tpu.vector_store %arg5[%c0_42, %c0_43], %70 {strides = array<i32>} : memref<1x128xf32, #tpu.memory_space<vmem>>, vector<1x128xf32>,
    return
  }
  func.func @transform_0(%arg0: i32) -> (i32, i32, i32, i32) {
    %c0_i32 = arith.constant 0 : i32
    %c0_i32_0 = arith.constant 0 : i32
    %c0_i32_1 = arith.constant 0 : i32
    %c0_i32_2 = arith.constant 0 : i32
    return %arg0, %c0_i32, %c0_i32_0, %c0_i32_1 : i32, i32, i32, i32
  }
  func.func @transform_1(%arg0: i32) -> (i32, i32, i32) {
    %c0_i32 = arith.constant 0 : i32
    %c0_i32_0 = arith.constant 0 : i32
    %c0_i32_1 = arith.constant 0 : i32
    %c0_i32_2 = arith.constant 0 : i32
    return %c0_i32, %c0_i32_0, %c0_i32_1 : i32, i32, i32
  }
  func.func @transform_2(%arg0: i32) -> (i32, i32) {
    %c0_i32 = arith.constant 0 : i32
    %c0_i32_0 = arith.constant 0 : i32
    return %arg0, %c0_i32 : i32, i32
  }
  func.func @transform_3(%arg0: i32) -> (i32, i32) {
    %c0_i32 = arith.constant 0 : i32
    %c0_i32_0 = arith.constant 0 : i32
    %c0_i32_1 = arith.constant 0 : i32
    return %c0_i32, %c0_i32_0 : i32, i32
  }
  func.func @transform_4(%arg0: i32) -> (i32, i32) {
    %c0_i32 = arith.constant 0 : i32
    %c0_i32_0 = arith.constant 0 : i32
    %c0_i32_1 = arith.constant 0 : i32
    return %c0_i32, %c0_i32_0 : i32, i32
  }
}

module attributes {stable_mosaic.version = 11 : i64} {
  func.func @bn_relu_kernel(%arg0: i32, %arg1: memref<512x128xf32, #tpu.memory_space<vmem>>, %arg2: memref<1x128xf32, #tpu.memory_space<vmem>>, %arg3: memref<1x128xf32, #tpu.memory_space<vmem>>, %arg4: memref<512x128xf32, #tpu.memory_space<vmem>>) attributes {dimension_semantics = [#tpu.dimension_semantics<parallel>], iteration_bounds = array<i64: 4>, scalar_prefetch = 0 : i64, scratch_operands = 0 : i64, tpu.core_type = #tpu.core_type<tc>, window_params = [{transform_indices = @transform_0, window_bounds = array<i64: 512, 128>}, {pipeline_mode = #tpu.pipeline_mode<synchronous>, transform_indices = @transform_1, window_bounds = array<i64: 1, 128>}, {pipeline_mode = #tpu.pipeline_mode<synchronous>, transform_indices = @transform_2, window_bounds = array<i64: 1, 128>}, {transform_indices = @transform_3, window_bounds = array<i64: 512, 128>}]} {
    %c0 = arith.constant 0 : index
    %c0_0 = arith.constant 0 : index
    %0 = vector.load %arg1[%c0, %c0_0] : memref<512x128xf32, #tpu.memory_space<vmem>>, vector<512x128xf32>
    %c0_1 = arith.constant 0 : index
    %c0_2 = arith.constant 0 : index
    %1 = vector.load %arg2[%c0_1, %c0_2] : memref<1x128xf32, #tpu.memory_space<vmem>>, vector<1x128xf32>
    %2 = vector.broadcast %1 : vector<1x128xf32> to vector<512x128xf32>
    %3 = arith.mulf %0, %2 : vector<512x128xf32>
    %c0_3 = arith.constant 0 : index
    %c0_4 = arith.constant 0 : index
    %4 = vector.load %arg3[%c0_3, %c0_4] : memref<1x128xf32, #tpu.memory_space<vmem>>, vector<1x128xf32>
    %5 = vector.broadcast %4 : vector<1x128xf32> to vector<512x128xf32>
    %6 = arith.addf %3, %5 : vector<512x128xf32>
    %cst = arith.constant 0.000000e+00 : f32
    %7 = vector.broadcast %cst : f32 to vector<512x128xf32>
    %8 = arith.maximumf %6, %7 : vector<512x128xf32>
    %c0_5 = arith.constant 0 : index
    %c0_6 = arith.constant 0 : index
    %9 = vector.load %arg4[%c0_5, %c0_6] : memref<512x128xf32, #tpu.memory_space<vmem>>, vector<512x128xf32>
    tpu.vector_store %arg4[%c0_5, %c0_6], %8 {strides = array<i32>} : memref<512x128xf32, #tpu.memory_space<vmem>>, vector<512x128xf32>,
    return
  }
  func.func @transform_0(%arg0: i32) -> (i32, i32) {
    %c0_i32 = arith.constant 0 : i32
    %c0_i32_0 = arith.constant 0 : i32
    return %arg0, %c0_i32 : i32, i32
  }
  func.func @transform_1(%arg0: i32) -> (i32, i32) {
    %c0_i32 = arith.constant 0 : i32
    %c0_i32_0 = arith.constant 0 : i32
    %c0_i32_1 = arith.constant 0 : i32
    return %c0_i32, %c0_i32_0 : i32, i32
  }
  func.func @transform_2(%arg0: i32) -> (i32, i32) {
    %c0_i32 = arith.constant 0 : i32
    %c0_i32_0 = arith.constant 0 : i32
    %c0_i32_1 = arith.constant 0 : i32
    return %c0_i32, %c0_i32_0 : i32, i32
  }
  func.func @transform_3(%arg0: i32) -> (i32, i32) {
    %c0_i32 = arith.constant 0 : i32
    %c0_i32_0 = arith.constant 0 : i32
    return %arg0, %c0_i32 : i32, i32
  }
}

</mosaic_0001>

<bundles_post_ra>
// kernel: up_conv_forward.3
= control target key start
LH: loop header
LB: loop body
LE: loop exit
PB: predicated region body
PF: predicated region fallthrough
CT: control target
= control target key end

     0   :  { %s613_s12 = smov 0   ;;  %s900_s0 = inlined_call_operand.vmem [shape: f32[2048,128], index: 0, kind: input, shape index: {}]   ;;  %s901_s1 = inlined_call_operand.vmem [shape: f32[1,128], index: 1, kind: input, shape index: {}]   ;;  %s902_s2 = inlined_call_operand.vmem [shape: f32[1,128], index: 2, kind: input, shape index: {}]   ;;  %s903_s3 = inlined_call_operand.vmem [shape: f32[2048,128], index: 3, kind: output, shape index: {}]  }
   0x1 LB: > { %s564_s13 = sadd.s32 4294967295, %s591_s12   ;;  %p568_p0 = scmp.ge.s32.totalorder %s591_s12, 1  ;;  %s591_s12 = sphi %s613_s12, %s13_s12  }
   0x2   : > { %p138_p1 = scmp.lt.s32.totalorder %s591_s12, 5 }
   0x4   : > { %p139_p2 = pnand %p568_p0, %p138_p1 }
   0x5   : > { %s569_s14 = sshll.u32 (!%p139_p2), %s564_s13, 6  ;;  %v624_v0 = vld [vmem:[%s901_s1] ss:$0 sm:$0xff] (!%p139_p2) }
   0x6   : > { %142 = sbr.rel (%p139_p2) target bundleno = 70 (0x46), region = 32  ;;  %p163_p3 = scmp.lt.s32.totalorder (!%p139_p2), %s569_s14, 255  ;;  %v634_v1 = vld [vmem:[%s902_s2] ss:$0 sm:$0xff] (!%p139_p2) }
   0xd   : > { %s905_s14 = smov (!%p163_p3, %s569_s14), 255 }
   0xe   : > { %s570_s15 = sshll.u32 %s905_s14, 3 }
   0xf   : > { %s629_s20 = scalar_lea.vmem %s900_s0, %s570_s15  ;;  %s657_s25 = scalar_lea.vmem %s903_s3, %s570_s15 }
  0x10   : > { %v174_v2 = vld [vmem:[%s629_s20] sm:$0xff]  ;;  %v175_v3 = vld [vmem:[%s629_s20 + $0x8] sm:$0xff]  ;;  %v176_v4 = vld [vmem:[%s629_s20 + $0x10] sm:$0xff] }
  0x11   : > { %v245_v5 = vmul.f32 %v624_v0, %v174_v2  ;;  %v246_v6 = vmul.f32 %v624_v0, %v175_v3  ;;  %v247_v7 = vmul.f32 %v624_v0, %v176_v4  ;;  %v177_v8 = vld [vmem:[%s629_s20 + $0x18] sm:$0xff]  ;;  %v178_v9 = vld [vmem:[%s629_s20 + $0x20] sm:$0xff]  ;;  %v179_v10 = vld [vmem:[%s629_s20 + $0x28] sm:$0xff] }
  0x12   : > { %v248_v11 = vmul.f32 %v624_v0, %v177_v8  ;;  %v249_v12 = vmul.f32 %v624_v0, %v178_v9  ;;  %v250_v13 = vmul.f32 %v624_v0, %v179_v10  ;;  %v180_v14 = vld [vmem:[%s629_s20 + $0x30] sm:$0xff]  ;;  %v181_v15 = vld [vmem:[%s629_s20 + $0x38] sm:$0xff]  ;;  %v182_v24 = vld [vmem:[%s629_s20 + $0x40] sm:$0xff] }
  0x13   : > { %v316_v16 = vadd.f32 %v634_v1, %v245_v5  ;;  %v317_v17 = vadd.f32 %v634_v1, %v246_v6  ;;  %v318_v18 = vadd.f32 %v634_v1, %v247_v7  ;;  %v251_v19 = vmul.f32 %v624_v0, %v180_v14  ;;  %v183_v25 = vld [vmem:[%s629_s20 + $0x48] sm:$0xff]  ;;  %v184_v26 = vld [vmem:[%s629_s20 + $0x50] sm:$0xff]  ;;  %v185_v31 = vld [vmem:[%s629_s20 + $0x58] sm:$0xff] }
  0x14   : > { %v319_v20 = vadd.f32 %v634_v1, %v248_v11  ;;  %v320_v21 = vadd.f32 %v634_v1, %v249_v12  ;;  %v321_v22 = vadd.f32 %v634_v1, %v250_v13  ;;  %v252_v23 = vmul.f32 %v624_v0, %v181_v15  ;;  %v186_v32 = vld [vmem:[%s629_s20 + $0x60] sm:$0xff]  ;;  %v187_v33 = vld [vmem:[%s629_s20 + $0x68] sm:$0xff]  ;;  %v188_v38 = vld [vmem:[%s629_s20 + $0x70] sm:$0xff] }
  0x15   : > { %v380_v27 = vmax.f32 %v316_v16, 0.0  ;;  %v381_v28 = vmax.f32 %v317_v17, 0.0  ;;  %v382_v29 = vmax.f32 %v318_v18, 0.0  ;;  %v322_v30 = vadd.f32 %v634_v1, %v251_v19  ;;  %v189_v43 = vld [vmem:[%s629_s20 + $0x78] sm:$0xff]  ;;  %v190_v56 = vld [vmem:[%s629_s20 + $0x80] sm:$0xff]  ;;  %v191_v57 = vld [vmem:[%s629_s20 + $0x88] sm:$0xff] }
  0x16   : > { %v383_v34 = vmax.f32 %v319_v20, 0.0  ;;  %v384_v35 = vmax.f32 %v320_v21, 0.0  ;;  %v385_v36 = vmax.f32 %v321_v22, 0.0  ;;  %v323_v37 = vadd.f32 %v634_v1, %v252_v23  ;;  %v192_v58 = vld [vmem:[%s629_s20 + $0x90] sm:$0xff]  ;;  %v193_v63 = vld [vmem:[%s629_s20 + $0x98] sm:$0xff]  ;;  %v194_v2 = vld [vmem:[%s629_s20 + $0xa0] sm:$0xff] }
  0x17   : > { %444 = vst [vmem:[%s657_s25] sm:$0xff] %v380_v27  ;;  %445 = vst [vmem:[%s657_s25 + $0x8] sm:$0xff] %v381_v28  ;;  %v386_v39 = vmax.f32 %v322_v30, 0.0  ;;  %v253_v40 = vmul.f32 %v624_v0, %v182_v24  ;;  %v254_v41 = vmul.f32 %v624_v0, %v183_v25  ;;  %v255_v42 = vmul.f32 %v624_v0, %v184_v26  ;;  %v195_v3 = vld [vmem:[%s629_s20 + $0xa8] sm:$0xff]  ;;  %v196_v8 = vld [vmem:[%s629_s20 + $0xb0] sm:$0xff] }
  0x18   : > { %446 = vst [vmem:[%s657_s25 + $0x10] sm:$0xff] %v382_v29  ;;  %447 = vst [vmem:[%s657_s25 + $0x18] sm:$0xff] %v383_v34  ;;  %v387_v44 = vmax.f32 %v323_v37, 0.0  ;;  %v256_v45 = vmul.f32 %v624_v0, %v185_v31  ;;  %v257_v46 = vmul.f32 %v624_v0, %v186_v32  ;;  %v258_v47 = vmul.f32 %v624_v0, %v187_v33  ;;  %v197_v13 = vld [vmem:[%s629_s20 + $0xb8] sm:$0xff]  ;;  %v198_v26 = vld [vmem:[%s629_s20 + $0xc0] sm:$0xff] }
  0x19   : > { %448 = vst [vmem:[%s657_s25 + $0x20] sm:$0xff] %v384_v35  ;;  %449 = vst [vmem:[%s657_s25 + $0x28] sm:$0xff] %v385_v36  ;;  %v324_v48 = vadd.f32 %v634_v1, %v253_v40  ;;  %v325_v49 = vadd.f32 %v634_v1, %v254_v41  ;;  %v326_v50 = vadd.f32 %v634_v1, %v255_v42  ;;  %v199_v27 = vld [vmem:[%s629_s20 + $0xc8] sm:$0xff]  ;;  %v200_v28 = vld [vmem:[%s629_s20 + $0xd0] sm:$0xff] }
  0x1a   : > { %450 = vst [vmem:[%s657_s25 + $0x30] sm:$0xff] %v386_v39  ;;  %v259_v51 = vmul.f32 %v624_v0, %v188_v38  ;;  %451 = vst [vmem:[%s657_s25 + $0x38] sm:$0xff] %v387_v44  ;;  %v327_v52 = vadd.f32 %v634_v1, %v256_v45  ;;  %v328_v53 = vadd.f32 %v634_v1, %v257_v46  ;;  %v201_v33 = vld [vmem:[%s629_s20 + $0xd8] sm:$0xff]  ;;  %v202_v34 = vld [vmem:[%s629_s20 + $0xe0] sm:$0xff] }
  0x1b   : > { %v329_v54 = vadd.f32 %v634_v1, %v258_v47  ;;  %v260_v55 = vmul.f32 %v624_v0, %v189_v43  ;;  %v388_v59 = vmax.f32 %v324_v48, 0.0  ;;  %v389_v60 = vmax.f32 %v325_v49, 0.0  ;;  %v203_v35 = vld [vmem:[%s629_s20 + $0xe8] sm:$0xff]  ;;  %v204_v40 = vld [vmem:[%s629_s20 + $0xf0] sm:$0xff]  ;;  %v205_v45 = vld [vmem:[%s629_s20 + $0xf8] sm:$0xff] }
  0x1c   : > { %v390_v61 = vmax.f32 %v326_v50, 0.0  ;;  %v330_v62 = vadd.f32 %v634_v1, %v259_v51  ;;  %v391_v4 = vmax.f32 %v327_v52, 0.0  ;;  %v392_v5 = vmax.f32 %v328_v53, 0.0 }
  0x1d   : > { %v393_v6 = vmax.f32 %v329_v54, 0.0  ;;  %v331_v7 = vadd.f32 %v634_v1, %v260_v55  ;;  %452 = vst [vmem:[%s657_s25 + $0x40] sm:$0xff] %v388_v59  ;;  %453 = vst [vmem:[%s657_s25 + $0x48] sm:$0xff] %v389_v60  ;;  %v261_v10 = vmul.f32 %v624_v0, %v190_v56  ;;  %v262_v11 = vmul.f32 %v624_v0, %v191_v57  ;;  %v207_v59 = vld [vmem:[%s629_s20 + $0x108] sm:$0xff]  ;;  %v208_v60 = vld [vmem:[%s629_s20 + $0x110] sm:$0xff] }
  0x1e   : > { %454 = vst [vmem:[%s657_s25 + $0x50] sm:$0xff] %v390_v61  ;;  %v394_v9 = vmax.f32 %v330_v62, 0.0  ;;  %v263_v12 = vmul.f32 %v624_v0, %v192_v58  ;;  %455 = vst [vmem:[%s657_s25 + $0x58] sm:$0xff] %v391_v4  ;;  %v264_v15 = vmul.f32 %v624_v0, %v193_v63  ;;  %v265_v16 = vmul.f32 %v624_v0, %v194_v2  ;;  %v206_v58 = vld [vmem:[%s629_s20 + $0x100] sm:$0xff] }
  0x1f   : > { %456 = vst [vmem:[%s657_s25 + $0x60] sm:$0xff] %v392_v5  ;;  %457 = vst [vmem:[%s657_s25 + $0x68] sm:$0xff] %v393_v6  ;;  %v395_v14 = vmax.f32 %v331_v7, 0.0  ;;  %v266_v17 = vmul.f32 %v624_v0, %v195_v3  ;;  %v332_v18 = vadd.f32 %v634_v1, %v261_v10  ;;  %v333_v19 = vadd.f32 %v634_v1, %v262_v11  ;;  %v209_v3 = vld [vmem:[%s629_s20 + $0x118] sm:$0xff]  ;;  %v210_v4 = vld [vmem:[%s629_s20 + $0x120] sm:$0xff] }
  0x20   : > { %458 = vst [vmem:[%s657_s25 + $0x70] sm:$0xff] %v394_v9  ;;  %v334_v20 = vadd.f32 %v634_v1, %v263_v12  ;;  %v267_v21 = vmul.f32 %v624_v0, %v196_v8  ;;  %v335_v22 = vadd.f32 %v634_v1, %v264_v15  ;;  %v336_v23 = vadd.f32 %v634_v1, %v265_v16  ;;  %v211_v5 = vld [vmem:[%s629_s20 + $0x128] sm:$0xff]  ;;  %v212_v10 = vld [vmem:[%s629_s20 + $0x130] sm:$0xff]  ;;  %v213_v15 = vld [vmem:[%s629_s20 + $0x138] sm:$0xff] }
  0x21   : > { %459 = vst [vmem:[%s657_s25 + $0x78] sm:$0xff] %v395_v14  ;;  %v337_v24 = vadd.f32 %v634_v1, %v266_v17  ;;  %v268_v25 = vmul.f32 %v624_v0, %v197_v13  ;;  %v396_v29 = vmax.f32 %v332_v18, 0.0  ;;  %v397_v30 = vmax.f32 %v333_v19, 0.0 }
  0x22   : > { %v398_v31 = vmax.f32 %v334_v20, 0.0  ;;  %v338_v32 = vadd.f32 %v634_v1, %v267_v21  ;;  %v399_v36 = vmax.f32 %v335_v22, 0.0  ;;  %v400_v37 = vmax.f32 %v336_v23, 0.0 }
  0x23   : > { %v401_v38 = vmax.f32 %v337_v24, 0.0  ;;  %v339_v39 = vadd.f32 %v634_v1, %v268_v25  ;;  %460 = vst [vmem:[%s657_s25 + $0x80] sm:$0xff] %v396_v29  ;;  %461 = vst [vmem:[%s657_s25 + $0x88] sm:$0xff] %v397_v30  ;;  %v269_v42 = vmul.f32 %v624_v0, %v198_v26  ;;  %v270_v43 = vmul.f32 %v624_v0, %v199_v27  ;;  %v215_v29 = vld [vmem:[%s629_s20 + $0x148] sm:$0xff]  ;;  %v216_v30 = vld [vmem:[%s629_s20 + $0x150] sm:$0xff] }
  0x24   : > { %462 = vst [vmem:[%s657_s25 + $0x90] sm:$0xff] %v398_v31  ;;  %v402_v41 = vmax.f32 %v338_v32, 0.0  ;;  %v271_v44 = vmul.f32 %v624_v0, %v200_v28  ;;  %463 = vst [vmem:[%s657_s25 + $0x98] sm:$0xff] %v399_v36  ;;  %v272_v47 = vmul.f32 %v624_v0, %v201_v33  ;;  %v273_v48 = vmul.f32 %v624_v0, %v202_v34  ;;  %v214_v28 = vld [vmem:[%s629_s20 + $0x140] sm:$0xff] }
  0x25   : > { %464 = vst [vmem:[%s657_s25 + $0xa0] sm:$0xff] %v400_v37  ;;  %465 = vst [vmem:[%s657_s25 + $0xa8] sm:$0xff] %v401_v38  ;;  %v403_v46 = vmax.f32 %v339_v39, 0.0  ;;  %v274_v49 = vmul.f32 %v624_v0, %v203_v35  ;;  %v340_v50 = vadd.f32 %v634_v1, %v269_v42  ;;  %v341_v51 = vadd.f32 %v634_v1, %v270_v43  ;;  %v217_v35 = vld [vmem:[%s629_s20 + $0x158] sm:$0xff]  ;;  %v218_v36 = vld [vmem:[%s629_s20 + $0x160] sm:$0xff] }
  0x26   : > { %466 = vst [vmem:[%s657_s25 + $0xb0] sm:$0xff] %v402_v41  ;;  %v342_v52 = vadd.f32 %v634_v1, %v271_v44  ;;  %v275_v53 = vmul.f32 %v624_v0, %v204_v40  ;;  %v343_v54 = vadd.f32 %v634_v1, %v272_v47  ;;  %v344_v55 = vadd.f32 %v634_v1, %v273_v48  ;;  %v219_v37 = vld [vmem:[%s629_s20 + $0x168] sm:$0xff]  ;;  %v220_v42 = vld [vmem:[%s629_s20 + $0x170] sm:$0xff]  ;;  %v221_v47 = vld [vmem:[%s629_s20 + $0x178] sm:$0xff] }
  0x27   : > { %467 = vst [vmem:[%s657_s25 + $0xb8] sm:$0xff] %v403_v46  ;;  %v345_v56 = vadd.f32 %v634_v1, %v274_v49  ;;  %v276_v57 = vmul.f32 %v624_v0, %v205_v45  ;;  %v404_v61 = vmax.f32 %v340_v50, 0.0  ;;  %v405_v62 = vmax.f32 %v341_v51, 0.0 }
  0x28   : > { %v406_v63 = vmax.f32 %v342_v52, 0.0  ;;  %v346_v2 = vadd.f32 %v634_v1, %v275_v53  ;;  %v407_v6 = vmax.f32 %v343_v54, 0.0  ;;  %v408_v7 = vmax.f32 %v344_v55, 0.0 }
  0x29   : > { %v409_v8 = vmax.f32 %v345_v56, 0.0  ;;  %v347_v9 = vadd.f32 %v634_v1, %v276_v57  ;;  %468 = vst [vmem:[%s657_s25 + $0xc0] sm:$0xff] %v404_v61  ;;  %469 = vst [vmem:[%s657_s25 + $0xc8] sm:$0xff] %v405_v62  ;;  %v277_v12 = vmul.f32 %v624_v0, %v206_v58  ;;  %v278_v13 = vmul.f32 %v624_v0, %v207_v59  ;;  %v223_v61 = vld [vmem:[%s629_s20 + $0x188] sm:$0xff]  ;;  %v224_v62 = vld [vmem:[%s629_s20 + $0x190] sm:$0xff] }
  0x2a   : > { %470 = vst [vmem:[%s657_s25 + $0xd0] sm:$0xff] %v406_v63  ;;  %v410_v11 = vmax.f32 %v346_v2, 0.0  ;;  %v279_v14 = vmul.f32 %v624_v0, %v208_v60  ;;  %471 = vst [vmem:[%s657_s25 + $0xd8] sm:$0xff] %v407_v6  ;;  %v280_v17 = vmul.f32 %v624_v0, %v209_v3  ;;  %v281_v18 = vmul.f32 %v624_v0, %v210_v4  ;;  %v222_v60 = vld [vmem:[%s629_s20 + $0x180] sm:$0xff] }
  0x2b   : > { %472 = vst [vmem:[%s657_s25 + $0xe0] sm:$0xff] %v408_v7  ;;  %473 = vst [vmem:[%s657_s25 + $0xe8] sm:$0xff] %v409_v8  ;;  %v411_v16 = vmax.f32 %v347_v9, 0.0  ;;  %v282_v19 = vmul.f32 %v624_v0, %v211_v5  ;;  %v348_v20 = vadd.f32 %v634_v1, %v277_v12  ;;  %v349_v21 = vadd.f32 %v634_v1, %v278_v13  ;;  %v225_v5 = vld [vmem:[%s629_s20 + $0x198] sm:$0xff]  ;;  %v226_v6 = vld [vmem:[%s629_s20 + $0x1a0] sm:$0xff] }
  0x2c   : > { %474 = vst [vmem:[%s657_s25 + $0xf0] sm:$0xff] %v410_v11  ;;  %v350_v22 = vadd.f32 %v634_v1, %v279_v14  ;;  %v283_v23 = vmul.f32 %v624_v0, %v212_v10  ;;  %v351_v24 = vadd.f32 %v634_v1, %v280_v17  ;;  %v352_v25 = vadd.f32 %v634_v1, %v281_v18  ;;  %v227_v7 = vld [vmem:[%s629_s20 + $0x1a8] sm:$0xff]  ;;  %v228_v12 = vld [vmem:[%s629_s20 + $0x1b0] sm:$0xff]  ;;  %v229_v17 = vld [vmem:[%s629_s20 + $0x1b8] sm:$0xff] }
  0x2d   : > { %475 = vst [vmem:[%s657_s25 + $0xf8] sm:$0xff] %v411_v16  ;;  %v353_v26 = vadd.f32 %v634_v1, %v282_v19  ;;  %v284_v27 = vmul.f32 %v624_v0, %v213_v15  ;;  %v412_v31 = vmax.f32 %v348_v20, 0.0  ;;  %v413_v32 = vmax.f32 %v349_v21, 0.0 }
  0x2e   : > { %v414_v33 = vmax.f32 %v350_v22, 0.0  ;;  %v354_v34 = vadd.f32 %v634_v1, %v283_v23  ;;  %v415_v38 = vmax.f32 %v351_v24, 0.0  ;;  %v416_v39 = vmax.f32 %v352_v25, 0.0 }
  0x2f   : > { %v417_v40 = vmax.f32 %v353_v26, 0.0  ;;  %v355_v41 = vadd.f32 %v634_v1, %v284_v27  ;;  %476 = vst [vmem:[%s657_s25 + $0x100] sm:$0xff] %v412_v31  ;;  %477 = vst [vmem:[%s657_s25 + $0x108] sm:$0xff] %v413_v32  ;;  %v285_v44 = vmul.f32 %v624_v0, %v214_v28  ;;  %v286_v45 = vmul.f32 %v624_v0, %v215_v29  ;;  %v231_v31 = vld [vmem:[%s629_s20 + $0x1c8] sm:$0xff]  ;;  %v232_v32 = vld [vmem:[%s629_s20 + $0x1d0] sm:$0xff] }
  0x30   : > { %478 = vst [vmem:[%s657_s25 + $0x110] sm:$0xff] %v414_v33  ;;  %v418_v43 = vmax.f32 %v354_v34, 0.0  ;;  %v287_v46 = vmul.f32 %v624_v0, %v216_v30  ;;  %479 = vst [vmem:[%s657_s25 + $0x118] sm:$0xff] %v415_v38  ;;  %v288_v49 = vmul.f32 %v624_v0, %v217_v35  ;;  %v289_v50 = vmul.f32 %v624_v0, %v218_v36  ;;  %v230_v30 = vld [vmem:[%s629_s20 + $0x1c0] sm:$0xff] }
  0x31   : > { %480 = vst [vmem:[%s657_s25 + $0x120] sm:$0xff] %v416_v39  ;;  %481 = vst [vmem:[%s657_s25 + $0x128] sm:$0xff] %v417_v40  ;;  %v419_v48 = vmax.f32 %v355_v41, 0.0  ;;  %v290_v51 = vmul.f32 %v624_v0, %v219_v37  ;;  %v356_v52 = vadd.f32 %v634_v1, %v285_v44  ;;  %v357_v53 = vadd.f32 %v634_v1, %v286_v45  ;;  %v233_v37 = vld [vmem:[%s629_s20 + $0x1d8] sm:$0xff]  ;;  %v234_v38 = vld [vmem:[%s629_s20 + $0x1e0] sm:$0xff] }
  0x32   : > { %482 = vst [vmem:[%s657_s25 + $0x130] sm:$0xff] %v418_v43  ;;  %v358_v54 = vadd.f32 %v634_v1, %v287_v46  ;;  %v291_v55 = vmul.f32 %v624_v0, %v220_v42  ;;  %v359_v56 = vadd.f32 %v634_v1, %v288_v49  ;;  %v360_v57 = vadd.f32 %v634_v1, %v289_v50  ;;  %v235_v39 = vld [vmem:[%s629_s20 + $0x1e8] sm:$0xff]  ;;  %v236_v44 = vld [vmem:[%s629_s20 + $0x1f0] sm:$0xff]  ;;  %v237_v49 = vld [vmem:[%s629_s20 + $0x1f8] sm:$0xff] }
  0x33   : > { %483 = vst [vmem:[%s657_s25 + $0x138] sm:$0xff] %v419_v48  ;;  %v361_v58 = vadd.f32 %v634_v1, %v290_v51  ;;  %v292_v59 = vmul.f32 %v624_v0, %v221_v47  ;;  %v420_v63 = vmax.f32 %v356_v52, 0.0  ;;  %v421_v2 = vmax.f32 %v357_v53, 0.0 }
  0x34   : > { %v422_v3 = vmax.f32 %v358_v54, 0.0  ;;  %v362_v4 = vadd.f32 %v634_v1, %v291_v55  ;;  %v423_v8 = vmax.f32 %v359_v56, 0.0  ;;  %v424_v9 = vmax.f32 %v360_v57, 0.0 }
  0x35   : > { %v425_v10 = vmax.f32 %v361_v58, 0.0  ;;  %v363_v11 = vadd.f32 %v634_v1, %v292_v59  ;;  %484 = vst [vmem:[%s657_s25 + $0x140] sm:$0xff] %v420_v63  ;;  %485 = vst [vmem:[%s657_s25 + $0x148] sm:$0xff] %v421_v2  ;;  %v293_v14 = vmul.f32 %v624_v0, %v222_v60  ;;  %v294_v15 = vmul.f32 %v624_v0, %v223_v61 }
  0x36   : > { %486 = vst [vmem:[%s657_s25 + $0x150] sm:$0xff] %v422_v3  ;;  %v426_v13 = vmax.f32 %v362_v4, 0.0  ;;  %v295_v16 = vmul.f32 %v624_v0, %v224_v62  ;;  %487 = vst [vmem:[%s657_s25 + $0x158] sm:$0xff] %v423_v8  ;;  %v296_v19 = vmul.f32 %v624_v0, %v225_v5  ;;  %v297_v20 = vmul.f32 %v624_v0, %v226_v6 }
  0x37   : > { %488 = vst [vmem:[%s657_s25 + $0x160] sm:$0xff] %v424_v9  ;;  %489 = vst [vmem:[%s657_s25 + $0x168] sm:$0xff] %v425_v10  ;;  %v427_v18 = vmax.f32 %v363_v11, 0.0  ;;  %v298_v21 = vmul.f32 %v624_v0, %v227_v7  ;;  %v364_v22 = vadd.f32 %v634_v1, %v293_v14  ;;  %v365_v23 = vadd.f32 %v634_v1, %v294_v15 }
  0x38   : > { %490 = vst [vmem:[%s657_s25 + $0x170] sm:$0xff] %v426_v13  ;;  %v366_v24 = vadd.f32 %v634_v1, %v295_v16  ;;  %v299_v25 = vmul.f32 %v624_v0, %v228_v12  ;;  %v367_v26 = vadd.f32 %v634_v1, %v296_v19  ;;  %v368_v27 = vadd.f32 %v634_v1, %v297_v20 }
  0x39   : > { %491 = vst [vmem:[%s657_s25 + $0x178] sm:$0xff] %v427_v18  ;;  %v369_v28 = vadd.f32 %v634_v1, %v298_v21  ;;  %v300_v29 = vmul.f32 %v624_v0, %v229_v17  ;;  %v428_v33 = vmax.f32 %v364_v22, 0.0  ;;  %v429_v34 = vmax.f32 %v365_v23, 0.0 }
  0x3a   : > { %v430_v35 = vmax.f32 %v366_v24, 0.0  ;;  %v370_v36 = vadd.f32 %v634_v1, %v299_v25  ;;  %v431_v40 = vmax.f32 %v367_v26, 0.0  ;;  %v432_v41 = vmax.f32 %v368_v27, 0.0 }
  0x3b   : > { %v433_v42 = vmax.f32 %v369_v28, 0.0  ;;  %v371_v43 = vadd.f32 %v634_v1, %v300_v29  ;;  %492 = vst [vmem:[%s657_s25 + $0x180] sm:$0xff] %v428_v33  ;;  %493 = vst [vmem:[%s657_s25 + $0x188] sm:$0xff] %v429_v34  ;;  %v301_v46 = vmul.f32 %v624_v0, %v230_v30  ;;  %v302_v47 = vmul.f32 %v624_v0, %v231_v31 }
  0x3c   : > { %494 = vst [vmem:[%s657_s25 + $0x190] sm:$0xff] %v430_v35  ;;  %v434_v45 = vmax.f32 %v370_v36, 0.0  ;;  %v303_v48 = vmul.f32 %v624_v0, %v232_v32  ;;  %495 = vst [vmem:[%s657_s25 + $0x198] sm:$0xff] %v431_v40  ;;  %v304_v51 = vmul.f32 %v624_v0, %v233_v37  ;;  %v305_v52 = vmul.f32 %v624_v0, %v234_v38 }
  0x3d   : > { %496 = vst [vmem:[%s657_s25 + $0x1a0] sm:$0xff] %v432_v41  ;;  %497 = vst [vmem:[%s657_s25 + $0x1a8] sm:$0xff] %v433_v42  ;;  %v435_v50 = vmax.f32 %v371_v43, 0.0  ;;  %v306_v53 = vmul.f32 %v624_v0, %v235_v39  ;;  %v372_v54 = vadd.f32 %v634_v1, %v301_v46  ;;  %v373_v55 = vadd.f32 %v634_v1, %v302_v47 }
  0x3e   : > { %498 = vst [vmem:[%s657_s25 + $0x1b0] sm:$0xff] %v434_v45  ;;  %v374_v56 = vadd.f32 %v634_v1, %v303_v48  ;;  %v307_v57 = vmul.f32 %v624_v0, %v236_v44  ;;  %v375_v58 = vadd.f32 %v634_v1, %v304_v51  ;;  %v376_v59 = vadd.f32 %v634_v1, %v305_v52 }
  0x3f   : > { %499 = vst [vmem:[%s657_s25 + $0x1b8] sm:$0xff] %v435_v50  ;;  %v377_v60 = vadd.f32 %v634_v1, %v306_v53  ;;  %v308_v61 = vmul.f32 %v624_v0, %v237_v49  ;;  %v436_v62 = vmax.f32 %v372_v54, 0.0  ;;  %v437_v63 = vmax.f32 %v373_v55, 0.0 }
  0x40   : > { %v438_v2 = vmax.f32 %v374_v56, 0.0  ;;  %v378_v3 = vadd.f32 %v634_v1, %v307_v57  ;;  %v439_v4 = vmax.f32 %v375_v58, 0.0  ;;  %v440_v5 = vmax.f32 %v376_v59, 0.0 }
  0x41   : > { %v441_v6 = vmax.f32 %v377_v60, 0.0  ;;  %v379_v7 = vadd.f32 %v634_v1, %v308_v61  ;;  %500 = vst [vmem:[%s657_s25 + $0x1c0] sm:$0xff] %v436_v62  ;;  %501 = vst [vmem:[%s657_s25 + $0x1c8] sm:$0xff] %v437_v63 }
  0x42   : > { %502 = vst [vmem:[%s657_s25 + $0x1d0] sm:$0xff] %v438_v2  ;;  %v442_v8 = vmax.f32 %v378_v3, 0.0  ;;  %503 = vst [vmem:[%s657_s25 + $0x1d8] sm:$0xff] %v439_v4 }
  0x43   : > { %504 = vst [vmem:[%s657_s25 + $0x1e0] sm:$0xff] %v440_v5  ;;  %505 = vst [vmem:[%s657_s25 + $0x1e8] sm:$0xff] %v441_v6  ;;  %v443_v0 = vmax.f32 %v379_v7, 0.0 }
  0x44   : > { %506 = vst [vmem:[%s657_s25 + $0x1f0] sm:$0xff] %v442_v8 }
  0x45   : > { %507 = vst [vmem:[%s657_s25 + $0x1f8] sm:$0xff] %v443_v0 }
  0x46 PF: > { %s13_s12 = sadd.s32 1, %s591_s12  }
  0x47   : > { %p10_p4 = scmp.ge.s32.totalorder %s13_s12, 6  }
  0x49   :  { %12 = sbr.rel (!%p10_p4) target bundleno = 1 (0x1), region = 62 }

// kernel: up_conv_forward.2
= control target key start
LH: loop header
LB: loop body
LE: loop exit
PB: predicated region body
PF: predicated region fallthrough
CT: control target
= control target key end

     0   :  { %s7978_s15 = smov 0   ;;  %s9756_s0 = inlined_call_operand.vmem [shape: bf16[4,18,34,128], index: 0, kind: input, shape index: {}]   ;;  %s9757_s1 = inlined_call_operand.vmem [shape: bf16[9,128,128], index: 1, kind: input, shape index: {}]   ;;  %s9758_s2 = inlined_call_operand.vmem [shape: f32[2048,128], index: 2, kind: output, shape index: {0}]   ;;  %s9759_s3 = inlined_call_operand.vmem [shape: f32[1,128], index: 3, kind: output, shape index: {1}]   ;;  %s9760_s4 = inlined_call_operand.vmem [shape: f32[1,128], index: 4, kind: output, shape index: {2}]  }
   0x1 LB: > { %s5818_s16 = sadd.s32 4294967295, %s7950_s15   ;;  %p5822_p0 = scmp.ge.s32.totalorder %s7950_s15, 1  ;;  %s7950_s15 = sphi %s7978_s15, %s15_s15  }
   0x2   : > { %p157_p1 = scmp.lt.s32.totalorder %s7950_s15, 5 }
   0x4   : > { %p158_p2 = pnand %p5822_p0, %p157_p1 }
   0x6   : > { %161 = sbr.rel (%p158_p2) target bundleno = 881 (0x371), region = 28 }
   0xd   : > { %p183_p3 = scmp.lt.s32.totalorder %s5818_s16, 3  ;;  %s5824_s17 = sshll.u32 %s5818_s16, 6 }
   0xe   : > { %p189_p4 = scmp.lt.s32.totalorder %s5824_s17, 255  ;;  %p5826_p5 = scmp.ne.s32.totalorder %s5818_s16, 0 }
   0xf   : > { %s184_s18 = scalar_select %p183_p3, %s5818_s16, 3 }
  0x10   : > { %s10027_s17 = smov (!%p189_p4, %s5824_s17), 255  ;;  %198 = sbr.rel (%p5826_p5) target bundleno = 23 (0x17), region = 32 }
  0x11   : > { %s7763_s19 = smul.u32 360, %s184_s18  ;;  %s5825_s20 = sshll.u32 %s10027_s17, 3  ;;  %v7952_v0 = vmov (!%p5826_p5), 0.0  }
  0x12   : > { %s7994_s26 = scalar_lea.vmem %s9758_s2, %s5825_s20  ;;  %199 = vst [vmem:[%s9759_s3] sm:$0x1] (!%p5826_p5), %v7952_v0  ;;  %200 = vst [vmem:[%s9760_s4] sm:$0x1] (!%p5826_p5), %v7952_v0 }
  0x13   : > { %s7989_s23 = scalar_lea.vmem %s9756_s0, %s7763_s19 }
  0x17 PF: > { %v7773_v1 = vld [vmem:[%s9757_s1 + $0x40] sm:$0xff]   ;;  %v7775_v3 = vld [vmem:[%s9757_s1 + $0x48] sm:$0xff]   ;;  %v7777_v5 = vld [vmem:[%s9757_s1 + $0x50] sm:$0xff]   ;;  %vm307_vm0 = vsmask.f32 3328  ;;  %v9863_v38 = vmov 0 }
  0x18   : > { %v7774_v2 = vld [vmem:[%s9757_s1 + $0x100] sm:$0xff]   ;;  %6515 = vmatprep.subr.bf16.mxu1 %v7773_v1  ;;  %v7776_v4 = vld [vmem:[%s9757_s1 + $0x108] sm:$0xff]   ;;  %v7778_v6 = vld [vmem:[%s9757_s1 + $0x110] sm:$0xff]   ;;  %vm308_vm1 = vsmask.f32 7440  ;;  %vm2041_vm3 = vcmask 1042432  }
  0x19   : > { %6835 = vmatprep.subr.bf16.mxu0 %v7774_v2  ;;  %6516 = vmatpush3.bf16.msra.mxu1 %v7773_v1  ;;  %v7779_v7 = vld [vmem:[%s9757_s1 + $0x58] sm:$0xff]   ;;  %v7781_v9 = vld [vmem:[%s9757_s1 + $0x60] sm:$0xff]   ;;  %v7783_v11 = vld [vmem:[%s9757_s1 + $0x68] sm:$0xff]   ;;  %vm2042_vm4 = vcmask 1046532  }
  0x1a   : > { %6836 = vmatpush3.bf16.msra.mxu0 %v7774_v2  ;;  %6517 = vmatprep.subr.bf16.mxu1 %v7775_v3  ;;  %v7780_v8 = vld [vmem:[%s9757_s1 + $0x118] sm:$0xff]   ;;  %v7782_v10 = vld [vmem:[%s9757_s1 + $0x120] sm:$0xff]   ;;  %v7784_v12 = vld [vmem:[%s9757_s1 + $0x128] sm:$0xff]  }
  0x1b   : > { %6837 = vmatprep.subr.bf16.mxu0 %v7776_v4  ;;  %v201_v13 = vld [vmem:[%s7989_s23] sm:$0xf]  ;;  %v202_v14 = vld [vmem:[%s7989_s23 + $0x4] sm:$0xf]  ;;  %v203_v15 = vld [vmem:[%s7989_s23 + $0x8] sm:$0xf] }
  0x1c   : > { %v311_v16 = vshrl.u32 %v201_v13, 16  ;;  %v314_v17 = vshll.u32 %v201_v13, 16  ;;  %v320_v18 = vshll.u32 %v202_v14, 16  ;;  %v324_v19 = vshrl.u32 %v202_v14, 16  ;;  %v8042_v22 = vld [vmem:[%s7989_s23 + $0x14] sm:$0xf]  ;;  %vm8062_vm2 = vmor %vm307_vm0, %vm308_vm1 }
  0x1d   : > { %6518 = vmatpush3.bf16.msra.mxu1 %v7775_v3  ;;  %v330_v20 = vshll.u32 %v203_v15, 16  ;;  %v334_v21 = vshrl.u32 %v203_v15, 16  ;;  %v8045_v25 = vld [vmem:[%s7989_s23 + $0x18] sm:$0xf]  ;;  %v8048_v26 = vld [vmem:[%s7989_s23 + $0x1c] sm:$0xf]  ;;  %vm8389_vm5 = vmor %vm2041_vm3, %vm2042_vm4 }
  0x1e   : > { %6838 = vmatpush3.bf16.msra.mxu0 %v7776_v4  ;;  %6519 = vmatprep.subr.bf16.mxu1 %v7777_v5  ;;  %v313_v23 = vrot.slane %v311_v16, 4  ;;  %v316_v24 = vrot.slane %v314_v17, 5  ;;  %v7785_v27 = vld [vmem:[%s9757_s1 + $0x70] sm:$0xff]   ;;  %v322_v28 = vrot.slane %v320_v18, 5  ;;  %v326_v29 = vrot.slane %v324_v19, 4  ;;  %v7787_v48 = vld [vmem:[%s9757_s1 + $0x78] sm:$0xff]  }
  0x1f   : > { %6839 = vmatprep.subr.bf16.mxu0 %v7778_v6  ;;  %v332_v30 = vrot.slane %v330_v20, 5  ;;  %v336_v31 = vrot.slane %v334_v21, 4  ;;  %v7786_v32 = vld [vmem:[%s9757_s1 + $0x130] sm:$0xff]   ;;  %v355_v34 = vshrl.u32 %v8042_v22, 16  ;;  %v358_v35 = vshll.u32 %v8042_v22, 16  ;;  %v7788_v49 = vld [vmem:[%s9757_s1 + $0x138] sm:$0xff]  }
  0x20   : > { %v317_v33 = vor.u32 %v316_v24, %v313_v23  ;;  %v364_v36 = vshll.u32 %v8045_v25, 16  ;;  %v204_v37 = vld [vmem:[%s7989_s23 + $0xc] sm:$0xf]  ;;  %v9864_v38 = vsel %vm8062_vm2, 4294967295, %v9863_v38  ;;  %v327_v39 = vor.u32 %v326_v29, %v322_v28  ;;  %v205_v47 = vld [vmem:[%s7989_s23 + $0x10] sm:$0x1] }
  0x21   : > { %6520 = vmatpush3.bf16.msra.mxu1 %v7777_v5  ;;  %9865 = vst [vmem:[#allocation2_spill] sm:$0xff] %v9864_v38  ;;  %v337_v40 = vor.u32 %v336_v31, %v332_v30  ;;  %v368_v41 = vshrl.u32 %v8045_v25, 16  ;;  %v374_v42 = vshll.u32 %v8048_v26, 16  ;;  %v357_v44 = vrot.slane %v355_v34, 4  ;;  %v8083_v62 = vld [vmem:[%s7989_s23 + $0x20] sm:$0xf] }
  0x22   : > { %6840 = vmatpush3.bf16.msra.mxu0 %v7778_v6  ;;  %6521 = vmatprep.subr.bf16.mxu1 %v7779_v7  ;;  %v318_v43 = vrot.slane %v317_v33, 4  ;;  %v360_v45 = vrot.slane %v358_v35, 5  ;;  %v366_v46 = vrot.slane %v364_v36, 5  ;;  %v328_v50 = vrot.slane %v327_v39, 4  ;;  %v8086_v3 = vld [vmem:[%s7989_s23 + $0x24] sm:$0x1] }
  0x23   : > { %6841 = vmatprep.subr.bf16.mxu0 %v7780_v8  ;;  %v8075_v51 = vrot.slane %v337_v40, 4  ;;  %v370_v52 = vrot.slane %v368_v41, 4  ;;  %v376_v53 = vrot.slane %v374_v42, 5  ;;  %v378_v56 = vshrl.u32 %v8048_v26, 16  ;;  %v8103_v13 = vld [vmem:[%s7989_s23 + $0x28] sm:$0xf] }
  0x24   : > { %v323_v54 = vsel %vm8062_vm2, %v318_v43, %v322_v28  ;;  %v361_v55 = vor.u32 %v360_v45, %v357_v44  ;;  %v340_v57 = vshll.u32 %v204_v37, 16  ;;  %v333_v58 = vsel %vm8062_vm2, %v328_v50, %v332_v30  ;;  %v8106_v14 = vld [vmem:[%s7989_s23 + $0x2c] sm:$0xf]  ;;  %v8114_v24 = vld [vmem:[%s7989_s23 + $0x30] sm:$0xf] }
  0x25   : > { %6522 = vmatpush3.bf16.msra.mxu1 %v7779_v7  ;;  %v371_v59 = vor.u32 %v370_v52, %v366_v46  ;;  %v344_v60 = vshrl.u32 %v204_v37, 16  ;;  %v350_v61 = vshll.u32 %v205_v47, 16  ;;  %v5843_v63 = vcombine.low %v323_v54, %v333_v58  ;;  %v7789_v7 = vld [vmem:[%s9757_s1] sm:$0xff]   ;;  %v8118_v31 = vld [vmem:[%s7989_s23 + $0x34] sm:$0xf]  ;;  %v7792_v47 = vld [vmem:[%s9757_s1 + $0x8] sm:$0xff]  }
  0x26   : > { %6842 = vmatpush3.bf16.msra.mxu0 %v7780_v8  ;;  %6523 = vmatprep.subr.bf16.mxu1 %v7781_v9  ;;  %v362_v0 = vrot.slane %v361_v55, 4  ;;  %v380_v1 = vrot.slane %v378_v56, 4  ;;  %v342_v2 = vrot.slane %v340_v57, 5  ;;  %v388_v17 = vshrl.u32 %v8083_v62, 16  ;;  %v8127_v36 = vld [vmem:[%s7989_s23 + $0x38] sm:$0x1] }
  0x27   : > { %6843 = vmatprep.subr.bf16.mxu0 %v7782_v10  ;;  %v372_v4 = vrot.slane %v371_v59, 4  ;;  %v346_v5 = vrot.slane %v344_v60, 4  ;;  %v352_v6 = vrot.slane %v350_v61, 5  ;;  %6531 = vmatprep.mubr.bf16.mxu1 %v5843_v63  ;;  %v394_v18 = vshll.u32 %v8086_v3, 16  ;;  %v8145_v59 = vld [vmem:[%s7989_s23 + $0x40] sm:$0xf] }
  0x28   : > { %v367_v8 = vsel %vm8062_vm2, %v362_v0, %v366_v46  ;;  %v390_v28 = vrot.slane %v388_v17, 4  ;;  %v399_v30 = vshrl.u32 %v8103_v13, 16  ;;  %v402_v33 = vshll.u32 %v8103_v13, 16  ;;  %v8133_v46 = vld [vmem:[%s7989_s23 + $0x3c] sm:$0xf] }
  0x29   : > { %6524 = vmatpush3.bf16.msra.mxu1 %v7781_v9  ;;  %v381_v9 = vor.u32 %v380_v1, %v376_v53  ;;  %v377_v15 = vsel %vm8062_vm2, %v372_v4, %v376_v53  ;;  %v347_v16 = vor.u32 %v346_v5, %v342_v2  ;;  %v396_v29 = vrot.slane %v394_v18, 5  ;;  %v7795_v4 = vld [vmem:[%s9757_s1 + $0x10] sm:$0xff]   ;;  %v8164_v17 = vld [vmem:[%s7989_s23 + $0x48] sm:$0xf] }
  0x2a   : > { %6844 = vmatpush3.bf16.msra.mxu0 %v7782_v10  ;;  %6525 = vmatprep.subr.bf16.mxu1 %v7783_v11  ;;  %v343_v10 = vsel %vm8062_vm2, %v8075_v51, %v342_v2  ;;  %v5845_v19 = vcombine.low %v367_v8, %v377_v15  ;;  %v408_v34 = vshll.u32 %v8106_v14, 16  ;;  %v412_v35 = vshrl.u32 %v8106_v14, 16  ;;  %v7791_v2 = vld [vmem:[%s9757_s1 + $0x148] sm:$0xff]  }
  0x2b   : > { %6845 = vmatprep.subr.bf16.mxu0 %v7784_v12  ;;  %v382_v20 = vrot.slane %v381_v9, 4  ;;  %v401_v40 = vrot.slane %v399_v30, 4  ;;  %v418_v41 = vshll.u32 %v8114_v24, 16  ;;  %v404_v43 = vrot.slane %v402_v33, 5 }
  0x2c   : > { %6851 = vmatprep.mubr.bf16.mxu0 %v5845_v19  ;;  %v410_v44 = vrot.slane %v408_v34, 5  ;;  %v414_v45 = vrot.slane %v412_v35, 4  ;;  %v422_v50 = vshrl.u32 %v8114_v24, 16  ;;  %v428_v51 = vshll.u32 %v8118_v31, 16 }
  0x2d   : > { %6526 = vmatpush3.bf16.msra.mxu1 %v7783_v11  ;;  %v384_v11 = vshll.u32 %v8083_v62, 16  ;;  %v405_v52 = vor.u32 %v404_v43, %v401_v40  ;;  %v432_v54 = vshrl.u32 %v8118_v31, 16  ;;  %v438_v55 = vshll.u32 %v8127_v36, 16  ;;  %v7798_v40 = vld [vmem:[%s9757_s1 + $0x18] sm:$0xff]  }
  0x2e   : > { %6846 = vmatpush3.bf16.msra.mxu0 %v7784_v12  ;;  %6527 = vmatprep.subr.bf16.mxu1 %v7785_v27  ;;  %v8100_v12 = vld [vmem:[%s9757_s1 + $0x140] sm:$0xff]   ;;  %v415_v53 = vor.u32 %v414_v45, %v410_v44  ;;  %v424_v57 = vrot.slane %v422_v50, 4  ;;  %v430_v58 = vrot.slane %v428_v51, 5  ;;  %v443_v60 = vshrl.u32 %v8133_v46, 16  ;;  %v8192_v45 = vld [vmem:[%s7989_s23 + $0x54] sm:$0xf] }
  0x2f   : > { %6847 = vmatprep.subr.bf16.mxu0 %v7786_v32  ;;  %v386_v21 = vrot.slane %v384_v11, 5  ;;  %v406_v63 = vrot.slane %v405_v52, 4  ;;  %v434_v1 = vrot.slane %v432_v54, 4  ;;  %v446_v9 = vshll.u32 %v8133_v46, 16  ;;  %v8198_v51 = vld [vmem:[%s7989_s23 + $0x58] sm:$0xf] }
  0x30   : > { %v416_v0 = vrot.slane %v415_v53, 4  ;;  %v445_v8 = vrot.slane %v443_v60, 4 }
  0x31   : > { %6528 = vmatpush3.bf16.msra.mxu1 %v7785_v27  ;;  %v348_v27 = vrot.slane %v347_v16, 4  ;;  %v391_v39 = vor.u32 %v390_v28, %v386_v21  ;;  %v435_v15 = vor.u32 %v434_v1, %v430_v58  ;;  %v452_v16 = vshll.u32 %v8145_v59, 16  ;;  %v7793_v28 = vld [vmem:[%s9757_s1 + $0x150] sm:$0xff]   ;;  %v7801_v1 = vld [vmem:[%s9757_s1 + $0x20] sm:$0xff]  }
  0x32   : > { %6848 = vmatpush3.bf16.msra.mxu0 %v7786_v32  ;;  %6529 = vmatprep.subr.bf16.mxu1 %v7787_v48  ;;  %v387_v32 = vsel %vm8062_vm2, %v382_v20, %v386_v21  ;;  %v448_v20 = vrot.slane %v446_v9, 5  ;;  %v456_v21 = vshrl.u32 %v8145_v59, 16 }
  0x33   : > { %6849 = vmatprep.subr.bf16.mxu0 %v7788_v49  ;;  %v353_v37 = vsel %vm8062_vm2, %v348_v27, %v352_v6  ;;  %v440_v6 = vrot.slane %v438_v55, 5  ;;  %v8171_v27 = vld [vmem:[%s7989_s23 + $0x4c] sm:$0x1]  ;;  %v454_v30 = vrot.slane %v452_v16, 5 }
  0x34   : > { %v5844_v42 = vcombine.low %v343_v10, %v353_v37  ;;  %v411_v10 = vsel %vm8062_vm2, %v406_v63, %v410_v44  ;;  %v449_v34 = vor.u32 %v448_v20, %v445_v8  ;;  %v458_v35 = vrot.slane %v456_v21, 4  ;;  %v7796_v21 = vld [vmem:[%s9757_s1 + $0x160] sm:$0xff]  }
  0x35   : > { %6530 = vmatpush3.bf16.msra.mxu1 %v7787_v48  ;;  %v392_v48 = vrot.slane %v391_v39, 4  ;;  %v472_v37 = vshll.u32 %v8164_v17, 16  ;;  %v8183_v39 = vld [vmem:[%s7989_s23 + $0x50] sm:$0xf]  ;;  %v476_v44 = vshrl.u32 %v8164_v17, 16  ;;  %v482_v54 = vshll.u32 %v8171_v27, 16 }
  0x36   : > { %6850 = vmatpush3.bf16.msra.mxu0 %v7788_v49  ;;  %6595 = vmatprep.subr.bf16.mxu1 %v7789_v7  ;;  %v420_v49 = vrot.slane %v418_v41, 5  ;;  %v487_v55 = vshrl.u32 %v8183_v39, 16  ;;  %v496_v63 = vshll.u32 %v8192_v45, 16  ;;  %v506_v20 = vshll.u32 %v8198_v51, 16 }
  0x37   : > { %6915 = vmatprep.subr.bf16.mxu0 %v8100_v12  ;;  %v397_v56 = vsel %vm8062_vm2, %v392_v48, %v396_v29  ;;  %v436_v29 = vrot.slane %v435_v15, 4  ;;  %v450_v48 = vrot.slane %v449_v34, 4  ;;  %v474_v50 = vrot.slane %v472_v37, 5 }
  0x38   : > { %6532 = vmatmul.mubr.bf16.vlgmr.msra.gmra.mrb[0].mxu1 %v5844_v42  ;;  %v5846_v61 = vcombine.low %v387_v32, %v397_v56  ;;  %v425_v5 = vor.u32 %v424_v57, %v420_v49  ;;  %v421_v11 = vsel %vm8062_vm2, %v416_v0, %v420_v49  ;;  %v459_v49 = vor.u32 %v458_v35, %v454_v30  ;;  %v8203_v56 = vld [vmem:[%s7989_s23 + $0x5c] sm:$0xf]  ;;  %v8213_v0 = vld [vmem:[%s7989_s23 + $0x60] sm:$0x1] }
  0x39   : > { %6596 = vmatpush3.bf16.msra.mxu1 %v7789_v7  ;;  %6535 = vmatprep.mubr.bf16.mxu1 %v5845_v19  ;;  %v8155_v7 = vld [vmem:[%s7989_s23 + $0x44] sm:$0xf]  ;;  %v8167_v18 = vcombine.low %v411_v10, %v421_v11  ;;  %v441_v41 = vsel %vm8062_vm2, %v436_v29, %v440_v6  ;;  %v478_v53 = vrot.slane %v476_v44, 4  ;;  %v7794_v57 = vld [vmem:[%s9757_s1 + $0x158] sm:$0xff]   ;;  %v489_v6 = vrot.slane %v487_v55, 4 }
  0x3a   : > { %6597 = vmatprep.subr.bf16.mxu1 %v7792_v47  ;;  %6852 = vmatmul.mubr.bf16.vlgmr.msra.gmra.mrb[0].mxu0 %v5846_v61  ;;  %v426_v19 = vrot.slane %v425_v5, 4  ;;  %v466_v32 = vshrl.u32 %v8155_v7, 16  ;;  %v460_v60 = vrot.slane %v459_v49, 4  ;;  %v498_v10 = vrot.slane %v496_v63, 5 }
  0x3b   : > { %6916 = vmatpush3.bf16.msra.mxu0 %v8100_v12  ;;  %9866 = vst [vmem:[#allocation3_spill] sm:$0xff] %v8167_v18  ;;  %v462_v12 = vshll.u32 %v8155_v7, 16  ;;  %6855 = vmatprep.mubr.bf16.mxu0 %v8167_v18  ;;  %v479_v5 = vor.u32 %v478_v53, %v474_v50  ;;  %v500_v11 = vshrl.u32 %v8192_v45, 16  ;;  %v508_v35 = vrot.slane %v506_v20, 5 }
  0x3c   : > { %6917 = vmatprep.subr.bf16.mxu0 %v7791_v2  ;;  %v431_v33 = vsel %vm8062_vm2, %v426_v19, %v430_v58  ;;  %v468_v43 = vrot.slane %v466_v32, 4  ;;  %v455_v58 = vsel %vm8062_vm2, %v450_v48, %v454_v30  ;;  %v510_v30 = vshrl.u32 %v8198_v51, 16  ;;  %v8233_v32 = vld [vmem:[%s7989_s23 + $0x64] sm:$0xf] }
  0x3d   : > { %6598 = vmatpush3.bf16.msra.mxu1 %v7792_v47  ;;  %v464_v42 = vrot.slane %v462_v12, 5  ;;  %v8194_v47 = vcombine.low %v431_v33, %v441_v41  ;;  %v480_v19 = vrot.slane %v479_v5, 4  ;;  %v502_v29 = vrot.slane %v500_v11, 4  ;;  %v7803_v33 = vld [vmem:[%s9757_s1 + $0x28] sm:$0xff]  }
  0x3e   : > { %6599 = vmatprep.subr.bf16.mxu1 %v7795_v4  ;;  %v516_v12 = vshll.u32 %v8203_v56, 16  ;;  %v520_v37 = vshrl.u32 %v8203_v56, 16  ;;  %v8245_v41 = vld [vmem:[%s7989_s23 + $0x68] sm:$0xf]  ;;  %v512_v49 = vrot.slane %v510_v30, 4  ;;  %v531_v55 = vshrl.u32 %v8233_v32, 16 }
  0x3f   : > { %9867 = vst [vmem:[#allocation4_spill] sm:$0xff] %v8194_v47  ;;  %6918 = vmatpush3.bf16.msra.mxu0 %v7791_v2  ;;  %v469_v52 = vor.u32 %v468_v43, %v464_v42  ;;  %v465_v8 = vsel %vm8062_vm2, %v460_v60, %v464_v42  ;;  %v7797_v42 = vld [vmem:[%s9757_s1 + $0x168] sm:$0xff]   ;;  %v503_v48 = vor.u32 %v502_v29, %v498_v10  ;;  %v534_v63 = vshll.u32 %v8233_v32, 16  ;;  %v7799_v30 = vld [vmem:[%s9757_s1 + $0x170] sm:$0xff]  }
  0x40   : > { %6536 = vmatmul.mubr.bf16.gmra.mrb[4].mxu1 %v5846_v61  ;;  %6919 = vmatprep.subr.bf16.mxu0 %v7793_v28  ;;  %v490_v61 = vshll.u32 %v8183_v39, 16  ;;  %v8222_v15 = vcombine.low %v455_v58, %v465_v8  ;;  %v522_v53 = vrot.slane %v520_v37, 4  ;;  %v8270_v8 = vld [vmem:[%s7989_s23 + $0x74] sm:$0x1] }
  0x41   : > { %6539 = vmatprep.mubr.bf16.mxu1 %v8167_v18  ;;  %6600 = vmatpush3.bf16.msra.mxu1 %v7795_v4  ;;  %v470_v2 = vrot.slane %v469_v52, 4  ;;  %v484_v4 = vrot.slane %v482_v54, 5  ;;  %v518_v52 = vrot.slane %v516_v12, 5  ;;  %v504_v60 = vrot.slane %v503_v48, 4 }
  0x42   : > { %6601 = vmatprep.subr.bf16.mxu1 %v7798_v40  ;;  %6856 = vmatmul.mubr.bf16.gmra.mrb[4].mxu0 %v8194_v47  ;;  %v492_v9 = vrot.slane %v490_v61, 5  ;;  %9868 = vst [vmem:[#allocation5_spill] sm:$0xff] %v8222_v15  ;;  %v513_v61 = vor.u32 %v512_v49, %v508_v35  ;;  %v536_v11 = vrot.slane %v534_v63, 5 }
  0x43   : > { %6920 = vmatpush3.bf16.msra.mxu0 %v7793_v28  ;;  %v475_v16 = vsel %vm8062_vm2, %v470_v2, %v474_v50  ;;  %6859 = vmatprep.mubr.bf16.mxu0 %v8222_v15  ;;  %v485_v34 = vsel %vm8062_vm2, %v480_v19, %v484_v4  ;;  %v8254_v50 = vld [vmem:[%s7989_s23 + $0x6c] sm:$0xf]  ;;  %v8261_v2 = vld [vmem:[%s7989_s23 + $0x70] sm:$0xf]  ;;  %v523_v5 = vor.u32 %v522_v53, %v518_v52  ;;  %v533_v4 = vrot.slane %v531_v55, 4 }
  0x44   : > { %6921 = vmatprep.subr.bf16.mxu0 %v7794_v57  ;;  %v493_v28 = vor.u32 %v492_v9, %v489_v6  ;;  %v8250_v43 = vcombine.low %v475_v16, %v485_v34  ;;  %v544_v6 = vshrl.u32 %v8245_v41, 16  ;;  %v509_v9 = vsel %vm8062_vm2, %v504_v60, %v508_v35  ;;  %v8298_v60 = vld [vmem:[%s7989_s23 + $0x7c] sm:$0xf] }
  0x45   : > { %6602 = vmatpush3.bf16.msra.mxu1 %v7798_v40  ;;  %v526_v40 = vshll.u32 %v8213_v0, 16  ;;  %v550_v16 = vshll.u32 %v8254_v50, 16  ;;  %v524_v20 = vrot.slane %v523_v5, 4  ;;  %v537_v34 = vor.u32 %v536_v11, %v533_v4  ;;  %v7800_v4 = vld [vmem:[%s9757_s1 + $0x178] sm:$0xff]   ;;  %v7811_v11 = vld [vmem:[%s9757_s1 + $0x80] sm:$0xff]  }
  0x46   : > { %6603 = vmatprep.subr.bf16.mxu1 %v7801_v1  ;;  %9869 = vst [vmem:[#allocation6_spill] sm:$0xff] %v8250_v43  ;;  %v494_v44 = vrot.slane %v493_v28, 4  ;;  %v546_v29 = vrot.slane %v544_v6, 4  ;;  %v554_v37 = vshrl.u32 %v8254_v50, 16  ;;  %v560_v48 = vshll.u32 %v8261_v2, 16 }
  0x47   : > { %6922 = vmatpush3.bf16.msra.mxu0 %v7794_v57  ;;  %v528_v54 = vrot.slane %v526_v40, 5  ;;  %v7805_v57 = vld [vmem:[%s9757_s1 + $0x30] sm:$0xff]   ;;  %v552_v35 = vrot.slane %v550_v16, 5  ;;  %v7807_v40 = vld [vmem:[%s9757_s1 + $0x38] sm:$0xff]   ;;  %v564_v49 = vshrl.u32 %v8261_v2, 16  ;;  %v538_v53 = vrot.slane %v537_v34, 4 }
  0x48   : > { %6540 = vmatmul.mubr.bf16.gmra.mrb[8].mxu1 %v8194_v47  ;;  %6923 = vmatprep.subr.bf16.mxu0 %v7796_v21  ;;  %v499_v58 = vsel %vm8062_vm2, %v494_v44, %v498_v10  ;;  %v514_v10 = vrot.slane %v513_v61, 4  ;;  %v556_v55 = vrot.slane %v554_v37, 4  ;;  %v562_v63 = vrot.slane %v560_v48, 5 }
  0x49   : > { %6543 = vmatprep.mubr.bf16.mxu1 %v8222_v15  ;;  %6604 = vmatpush3.bf16.msra.mxu1 %v7801_v1  ;;  %v540_v1 = vshll.u32 %v8245_v41, 16  ;;  %v8275_v19 = vcombine.low %v499_v58, %v509_v9  ;;  %v570_v58 = vshll.u32 %v8270_v8, 16  ;;  %v8664_v15 = vld [vmem:[%s7989_s23 + $0x10c] sm:$0xf] }
  0x4a   : > { %6605 = vmatprep.subr.bf16.mxu1 %v7803_v33  ;;  %6860 = vmatmul.mubr.bf16.gmra.mrb[8].mxu0 %v8250_v43  ;;  %v519_v12 = vsel %vm8062_vm2, %v514_v10, %v518_v52  ;;  %v557_v6 = vor.u32 %v556_v55, %v552_v35  ;;  %v8306_v10 = vld [vmem:[%s7989_s23 + $0x80] sm:$0xf] }
  0x4b   : > { %6924 = vmatpush3.bf16.msra.mxu0 %v7796_v21  ;;  %9870 = vst [vmem:[#allocation7_spill] sm:$0xff] %v8275_v19  ;;  %v542_v28 = vrot.slane %v540_v1, 5  ;;  %v231_v21 = vld [vmem:[%s7989_s23 + $0x78] sm:$0xf]  ;;  %6863 = vmatprep.mubr.bf16.mxu0 %v8275_v19  ;;  %v572_v9 = vrot.slane %v570_v58, 5  ;;  %v598_v55 = vshrl.u32 %v8306_v10, 16 }
  0x4c   : > { %6925 = vmatprep.subr.bf16.mxu0 %v7797_v42  ;;  %v575_v5 = vshrl.u32 %v231_v21, 16  ;;  %v558_v34 = vrot.slane %v557_v6, 4  ;;  %v237_v58 = vld [vmem:[%s7989_s23 + $0x90] sm:$0xf] }
  0x4d   : > { %6606 = vmatpush3.bf16.msra.mxu1 %v7803_v33  ;;  %v529_v33 = vsel %vm8062_vm2, %v524_v20, %v528_v54  ;;  %v547_v44 = vor.u32 %v546_v29, %v542_v28  ;;  %v566_v54 = vrot.slane %v564_v49, 4  ;;  %v543_v1 = vsel %vm8062_vm2, %v538_v53, %v542_v28  ;;  %v234_v29 = vld [vmem:[%s7989_s23 + $0x84] sm:$0xf] }
  0x4e   : > { %6607 = vmatprep.subr.bf16.mxu1 %v7805_v57  ;;  %v8293_v52 = vcombine.low %v519_v12, %v529_v33  ;;  %v577_v20 = vrot.slane %v575_v5, 4  ;;  %v584_v28 = vshll.u32 %v8298_v60, 16  ;;  %v8320_v33 = vld [vmem:[%s7989_s23 + $0x88] sm:$0x1]  ;;  %v594_v53 = vshll.u32 %v8306_v10, 16 }
  0x4f   : > { %6926 = vmatpush3.bf16.msra.mxu0 %v7797_v42  ;;  %v548_v61 = vrot.slane %v547_v44, 4  ;;  %v578_v42 = vshll.u32 %v231_v21, 16  ;;  %v567_v16 = vor.u32 %v566_v54, %v562_v63  ;;  %v588_v21 = vshrl.u32 %v8298_v60, 16  ;;  %v236_v44 = vld [vmem:[%s7989_s23 + $0x8c] sm:$0xf] }
  0x50   : > { %6544 = vmatmul.mubr.bf16.gmra.mrb[12].mxu1 %v8250_v43  ;;  %9871 = vst [vmem:[#allocation8_spill] sm:$0xff] %v8293_v52  ;;  %6927 = vmatprep.subr.bf16.mxu0 %v7799_v30  ;;  %v586_v49 = vrot.slane %v584_v28, 5  ;;  %v604_v5 = vshll.u32 %v234_v29, 16  ;;  %v596_v6 = vrot.slane %v594_v53, 5  ;;  %v628_v53 = vshll.u32 %v237_v58, 16 }
  0x51   : > { %6547 = vmatprep.mubr.bf16.mxu1 %v8275_v19  ;;  %6608 = vmatpush3.bf16.msra.mxu1 %v7805_v57  ;;  %v553_v57 = vsel %vm8062_vm2, %v548_v61, %v552_v35  ;;  %v580_v37 = vrot.slane %v578_v42, 5  ;;  %v8326_v35 = vld [vmem:[%s9757_s1 + $0x180] sm:$0xff]   ;;  %v568_v48 = vrot.slane %v567_v16, 4  ;;  %v563_v61 = vsel %vm8062_vm2, %v558_v34, %v562_v63 }
  0x52   : > { %6609 = vmatprep.subr.bf16.mxu1 %v7807_v40  ;;  %6864 = vmatmul.mubr.bf16.gmra.mrb[12].mxu0 %v8293_v52  ;;  %v8316_v12 = vcombine.low %v543_v1, %v553_v57  ;;  %v590_v54 = vrot.slane %v588_v21, 4  ;;  %v600_v42 = vrot.slane %v598_v55, 4  ;;  %v608_v57 = vshrl.u32 %v234_v29, 16  ;;  %v8345_v21 = vld [vmem:[%s7989_s23 + $0x94] sm:$0xf] }
  0x53   : > { %6928 = vmatpush3.bf16.msra.mxu0 %v7799_v30  ;;  %v581_v30 = vor.u32 %v580_v37, %v577_v20  ;;  %v573_v1 = vsel %vm8062_vm2, %v568_v48, %v572_v9  ;;  %v606_v63 = vrot.slane %v604_v5, 5  ;;  %v614_v34 = vshll.u32 %v8320_v33, 16 }
  0x54   : > { %9872 = vst [vmem:[#allocation9_spill] sm:$0xff] %v8316_v12  ;;  %6929 = vmatprep.subr.bf16.mxu0 %v7800_v4  ;;  %6867 = vmatprep.mubr.bf16.mxu0 %v8316_v12  ;;  %v8337_v16 = vcombine.low %v563_v61, %v573_v1  ;;  %v591_v28 = vor.u32 %v590_v54, %v586_v49  ;;  %v619_v37 = vshrl.u32 %v236_v44, 16  ;;  %v622_v48 = vshll.u32 %v236_v44, 16  ;;  %v239_v54 = vld [vmem:[%s7989_s23 + $0x98] sm:$0xf] }
  0x55   : > { %6610 = vmatpush3.bf16.msra.mxu1 %v7807_v40  ;;  %v582_v40 = vrot.slane %v581_v30, 4  ;;  %v601_v20 = vor.u32 %v600_v42, %v596_v6  ;;  %v616_v61 = vrot.slane %v614_v34, 5  ;;  %v630_v42 = vrot.slane %v628_v53, 5 }
  0x56   : > { %6675 = vmatprep.subr.bf16.mxu1 %v7811_v11  ;;  %9873 = vst [vmem:[#allocation10_spill] sm:$0xff] %v8337_v16  ;;  %v610_v11 = vrot.slane %v608_v57, 4  ;;  %v592_v29 = vrot.slane %v591_v28, 4  ;;  %v621_v30 = vrot.slane %v619_v37, 4  ;;  %v624_v1 = vrot.slane %v622_v48, 5 }
  0x57   : > { %6930 = vmatpush3.bf16.msra.mxu0 %v7800_v4  ;;  %v587_v9 = vsel %vm8062_vm2, %v582_v40, %v586_v49  ;;  %v602_v4 = vrot.slane %v601_v20, 4  ;;  %v632_v49 = vshrl.u32 %v237_v58, 16  ;;  %v240_v57 = vld [vmem:[%s7989_s23 + $0x9c] sm:$0x1]  ;;  %v638_v20 = vshll.u32 %v8345_v21, 16 }
  0x58   : > { %6548 = vmatmul.mubr.bf16.gmra.mrb[16].mxu1 %v8293_v52  ;;  %6995 = vmatprep.subr.bf16.mxu0 %v8326_v35  ;;  %v611_v55 = vor.u32 %v610_v11, %v606_v63  ;;  %v597_v5 = vsel %vm8062_vm2, %v592_v29, %v596_v6  ;;  %v241_v11 = vld [vmem:[%s7989_s23 + $0xa0] sm:$0xf]  ;;  %v625_v34 = vor.u32 %v624_v1, %v621_v30  ;;  %v642_v23 = vshrl.u32 %v8345_v21, 16  ;;  %v242_v6 = vld [vmem:[%s7989_s23 + $0xa4] sm:$0xf] }
  0x59   : > { %6551 = vmatprep.mubr.bf16.mxu1 %v8316_v12  ;;  %v8352_v40 = vcombine.low %v587_v9, %v597_v5  ;;  %v607_v44 = vsel %vm8062_vm2, %v602_v4, %v606_v63  ;;  %v634_v37 = vrot.slane %v632_v49, 4  ;;  %v648_v12 = vshll.u32 %v239_v54, 16  ;;  %v243_v48 = vld [vmem:[%s7989_s23 + $0xa8] sm:$0xf] }
  0x5a   : > { %6868 = vmatmul.mubr.bf16.gmra.mrb[16].mxu0 %v8337_v16  ;;  %v612_v28 = vrot.slane %v611_v55, 4  ;;  %v640_v63 = vrot.slane %v638_v20, 5  ;;  %v652_v9 = vshrl.u32 %v239_v54, 16  ;;  %v658_v29 = vshll.u32 %v240_v57, 16 }
  0x5b   : > { %9874 = vst [vmem:[#allocation11_spill] sm:$0xff] %v8352_v40  ;;  %6871 = vmatprep.mubr.bf16.mxu0 %v8352_v40  ;;  %v626_v4 = vrot.slane %v625_v34, 4  ;;  %v635_v55 = vor.u32 %v634_v37, %v630_v42  ;;  %v644_v30 = vrot.slane %v642_v23, 4  ;;  %v650_v5 = vrot.slane %v648_v12, 5 }
  0x5c   : > { %v617_v58 = vsel %vm8062_vm2, %v612_v28, %v616_v61  ;;  %v654_v1 = vrot.slane %v652_v9, 4  ;;  %v660_v49 = vrot.slane %v658_v29, 5  ;;  %v663_v52 = vshrl.u32 %v241_v11, 16  ;;  %v244_v9 = vld [vmem:[%s7989_s23 + $0xac] sm:$0xf] }
  0x5d   : > { %v8365_v53 = vcombine.low %v607_v44, %v617_v58  ;;  %v636_v61 = vrot.slane %v635_v55, 4  ;;  %v645_v28 = vor.u32 %v644_v30, %v640_v63  ;;  %v666_v54 = vshll.u32 %v241_v11, 16  ;;  %v245_v30 = vld [vmem:[%s7989_s23 + $0xb0] sm:$0x1] }
  0x5e   : > { %v655_v57 = vor.u32 %v654_v1, %v650_v5  ;;  %v665_v44 = vrot.slane %v663_v52, 4  ;;  %v672_v20 = vshll.u32 %v242_v6, 16  ;;  %v676_v34 = vshrl.u32 %v242_v6, 16 }
  0x5f   : > { %9875 = vst [vmem:[#allocation12_spill] sm:$0xff] %v8365_v53  ;;  %v641_v23 = vsel %vm8062_vm2, %v636_v61, %v640_v63  ;;  %v646_v12 = vrot.slane %v645_v28, 4  ;;  %v668_v37 = vrot.slane %v666_v54, 5  ;;  %v682_v58 = vshll.u32 %v243_v48, 16 }
  0x60   : > { %6552 = vmatmul.mubr.bf16.gmra.mrb[20].mxu1 %v8337_v16  ;;  %v631_v16 = vsel %vm8062_vm2, %v626_v4, %v630_v42  ;;  %v656_v42 = vrot.slane %v655_v57, 4  ;;  %v674_v4 = vrot.slane %v672_v20, 5  ;;  %v678_v55 = vrot.slane %v676_v34, 4  ;;  %v246_v20 = vld [vmem:[%s7989_s23 + $0xb4] sm:$0xf] }
  0x61   : > { %6555 = vmatprep.mubr.bf16.mxu1 %v8352_v40  ;;  %v8374_v29 = vcombine.low %v631_v16, %v641_v23  ;;  %v651_v11 = vsel %vm8062_vm2, %v646_v12, %v650_v5  ;;  %v669_v52 = vor.u32 %v668_v37, %v665_v44  ;;  %v684_v1 = vrot.slane %v682_v58, 5  ;;  %v8395_v37 = vld [vmem:[%s7989_s23 + $0xb8] sm:$0xf] }
  0x62   : > { %6872 = vmatmul.mubr.bf16.gmra.mrb[20].mxu0 %v8365_v53  ;;  %v686_v6 = vshrl.u32 %v243_v48, 16  ;;  %v661_v16 = vsel %vm8062_vm2, %v656_v42, %v660_v49  ;;  %v679_v63 = vor.u32 %v678_v55, %v674_v4  ;;  %v692_v61 = vshll.u32 %v244_v9, 16 }
  0x63   : > { %9876 = vst [vmem:[#allocation13_spill] sm:$0xff] %v8374_v29  ;;  %6875 = vmatprep.mubr.bf16.mxu0 %v8374_v29  ;;  %v696_v28 = vshrl.u32 %v244_v9, 16  ;;  %v8383_v54 = vcombine.low %v651_v11, %v661_v16  ;;  %v670_v57 = vrot.slane %v669_v52, 4  ;;  %v702_v44 = vshll.u32 %v245_v30, 16 }
  0x64   : > { %v688_v5 = vrot.slane %v686_v6, 4  ;;  %v680_v48 = vrot.slane %v679_v63, 4  ;;  %v694_v34 = vrot.slane %v692_v61, 5  ;;  %v9878_v12 = vmov 0 }
  0x65   : > { %9877 = vst [vmem:[#allocation14_spill] sm:$0xff] %v8383_v54  ;;  %v698_v23 = vrot.slane %v696_v28, 4  ;;  %v9879_v12 = vsel %vm8389_vm5, 4294967295, %v9878_v12  ;;  %v5924_v49 = vrot.slane %v8042_v22, 9  ;;  %v675_v58 = vsel %vm8062_vm2, %v670_v57, %v674_v4 }
  0x66   : > { %9880 = vst [vmem:[#allocation15_spill] sm:$0xff] %v9879_v12  ;;  %v689_v9 = vor.u32 %v688_v5, %v684_v1  ;;  %v704_v42 = vrot.slane %v702_v44, 5  ;;  %v2059_v55 = vrot.slane %v8045_v25, 5  ;;  %v685_v30 = vsel %vm8062_vm2, %v680_v48, %v684_v1 }
  0x67   : > { %v699_v11 = vor.u32 %v698_v23, %v694_v34  ;;  %v2062_v52 = vrot.slane %v8048_v26, 5  ;;  %v2065_v22 = vrot.slane %v8083_v62, 5  ;;  %v8405_v6 = vcombine.low %v675_v58, %v685_v30  ;;  %v8415_v62 = vld [vmem:[%s7989_s23 + $0xbc] sm:$0xf] }
  0x68   : > { %6556 = vmatmul.mubr.bf16.gmra.mrb[24].mxu1 %v8365_v53  ;;  %v690_v16 = vrot.slane %v689_v9, 4  ;;  %v2060_v4 = vsel %vm8389_vm5, %v5924_v49, %v2059_v55  ;;  %v2061_v63 = vrot.slane %v2059_v55, 4  ;;  %v707_v57 = vshrl.u32 %v246_v20, 16  ;;  %v8622_v53 = vld [vmem:[%s7989_s23 + $0x100] sm:$0x1] }
  0x69   : > { %6559 = vmatprep.mubr.bf16.mxu1 %v8374_v29  ;;  %9881 = vst [vmem:[#allocation16_spill] sm:$0xff] %v8405_v6  ;;  %v700_v61 = vrot.slane %v699_v11, 4  ;;  %v2064_v25 = vrot.slane %v2062_v52, 4  ;;  %v2067_v28 = vrot.slane %v2065_v22, 4  ;;  %v710_v5 = vshll.u32 %v246_v20, 16 }
  0x6a   : > { %6876 = vmatmul.mubr.bf16.gmra.mrb[24].mxu0 %v8383_v54  ;;  %v695_v1 = vsel %vm8062_vm2, %v690_v16, %v694_v34  ;;  %v2063_v26 = vsel %vm8389_vm5, %v2061_v63, %v2062_v52  ;;  %v716_v44 = vshll.u32 %v8395_v37, 16  ;;  %v9883_v34 = vrot.slane %v8086_v3, 5  ;;  %v8435_v11 = vld [vmem:[%s7989_s23 + $0xc0] sm:$0xf] }
  0x6b   : > { %6879 = vmatprep.mubr.bf16.mxu0 %v8405_v6  ;;  %v705_v48 = vsel %vm8062_vm2, %v700_v61, %v704_v42  ;;  %v8421_v23 = vcombine.low %v2060_v4, %v2063_v26  ;;  %v2066_v49 = vsel %vm8389_vm5, %v2064_v25, %v2065_v22  ;;  %v709_v55 = vrot.slane %v707_v57, 4  ;;  %v8438_v42 = vld [vmem:[%s7989_s23 + $0xc4] sm:$0x1] }
  0x6c   : > { %v2069_v58 = vsel %vm8389_vm5, %v2067_v28, %v9883_v34  ;;  %v8429_v9 = vcombine.low %v695_v1, %v705_v48  ;;  %v712_v30 = vrot.slane %v710_v5, 5  ;;  %v718_v52 = vrot.slane %v716_v44, 5 }
  0x6d   : > { %9882 = vst [vmem:[#allocation17_spill] sm:$0xff] %v8421_v23  ;;  %v8432_v20 = vcombine.low %v2066_v49, %v2069_v58  ;;  %v720_v22 = vshrl.u32 %v8395_v37, 16  ;;  %v726_v3 = vshll.u32 %v8415_v62, 16  ;;  %v5925_v16 = vrot.slane %v8103_v13, 9  ;;  %v8454_v58 = vld [vmem:[%s7989_s23 + $0xc8] sm:$0xf] }
  0x6e   : > { %9884 = vst [vmem:[#allocation18_spill] sm:$0xff] %v8429_v9  ;;  %v713_v4 = vor.u32 %v712_v30, %v709_v55  ;;  %v2072_v63 = vrot.slane %v8106_v14, 5  ;;  %v2075_v61 = vrot.slane %v8114_v24, 5  ;;  %v730_v25 = vshrl.u32 %v8415_v62, 16 }
  0x6f   : > { %9885 = vst [vmem:[#allocation19_spill] sm:$0xff] %v8432_v20  ;;  %v722_v28 = vrot.slane %v720_v22, 4  ;;  %v728_v57 = vrot.slane %v726_v3, 5  ;;  %v736_v1 = vshll.u32 %v8435_v11, 16  ;;  %v740_v26 = vshrl.u32 %v8435_v11, 16 }
  0x70   : > { %6560 = vmatmul.mubr.bf16.gmra.mrb[28].mxu1 %v8383_v54  ;;  %v714_v13 = vrot.slane %v713_v4, 4  ;;  %v2073_v14 = vsel %vm8389_vm5, %v5925_v16, %v2072_v63  ;;  %v2074_v5 = vrot.slane %v2072_v63, 4  ;;  %v732_v24 = vrot.slane %v730_v25, 4  ;;  %v8461_v4 = vld [vmem:[%s7989_s23 + $0xcc] sm:$0xf] }
  0x71   : > { %6563 = vmatprep.mubr.bf16.mxu1 %v8405_v6  ;;  %v723_v44 = vor.u32 %v722_v28, %v718_v52  ;;  %v738_v48 = vrot.slane %v736_v1, 5  ;;  %v742_v49 = vrot.slane %v740_v26, 4  ;;  %v746_v34 = vshll.u32 %v8438_v42, 16  ;;  %v8467_v1 = vld [vmem:[%s7989_s23 + $0xd0] sm:$0xf] }
  0x72   : > { %6880 = vmatmul.mubr.bf16.gmra.mrb[28].mxu0 %v8429_v9  ;;  %v719_v55 = vsel %vm8062_vm2, %v714_v13, %v718_v52  ;;  %v2076_v30 = vsel %vm8389_vm5, %v2074_v5, %v2075_v61  ;;  %v733_v22 = vor.u32 %v732_v24, %v728_v57  ;;  %v2077_v3 = vrot.slane %v2075_v61, 4  ;;  %v8492_v6 = vld [vmem:[%s7989_s23 + $0xd8] sm:$0x1] }
  0x73   : > { %6931 = vmatprep.mubr.bf16.mxu0 %v8421_v23  ;;  %v724_v16 = vrot.slane %v723_v44, 4  ;;  %v8464_v63 = vcombine.low %v2073_v14, %v2076_v30  ;;  %v743_v25 = vor.u32 %v742_v49, %v738_v48  ;;  %v748_v28 = vrot.slane %v746_v34, 5  ;;  %v7804_v49 = vld [vmem:[%s9757_s1 + $0x188] sm:$0xff]  }
  0x74   : > { %v734_v26 = vrot.slane %v733_v22, 4  ;;  %v2078_v52 = vrot.slane %v8118_v31, 5  ;;  %v2081_v13 = vrot.slane %v8127_v36, 5  ;;  %v751_v5 = vshrl.u32 %v8454_v58, 16  ;;  %v8486_v22 = vld [vmem:[%s7989_s23 + $0xd4] sm:$0xf] }
  0x75   : > { %9886 = vst [vmem:[#allocation20_spill] sm:$0xff] %v8464_v63  ;;  %v729_v61 = vsel %vm8062_vm2, %v724_v16, %v728_v57  ;;  %v744_v24 = vrot.slane %v743_v25, 4  ;;  %v754_v14 = vshll.u32 %v8454_v58, 16  ;;  %v760_v44 = vshll.u32 %v8461_v4, 16 }
  0x76   : > { %v8479_v34 = vcombine.low %v719_v55, %v729_v61  ;;  %v739_v31 = vsel %vm8062_vm2, %v734_v26, %v738_v48  ;;  %v2079_v36 = vsel %vm8389_vm5, %v2077_v3, %v2078_v52  ;;  %v2080_v30 = vrot.slane %v2078_v52, 4  ;;  %v7806_v48 = vld [vmem:[%s9757_s1 + $0x190] sm:$0xff]  }
  0x77   : > { %v749_v57 = vsel %vm8062_vm2, %v744_v24, %v748_v28  ;;  %v753_v16 = vrot.slane %v751_v5, 4  ;;  %v756_v25 = vrot.slane %v754_v14, 5  ;;  %v764_v28 = vshrl.u32 %v8461_v4, 16 }
  0x78   : > { %6564 = vmatmul.mubr.bf16.gmra.mrb[32].mxu1 %v8429_v9  ;;  %9887 = vst [vmem:[#allocation21_spill] sm:$0xff] %v8479_v34  ;;  %v762_v9 = vrot.slane %v760_v44, 5  ;;  %v8499_v55 = vcombine.low %v739_v31, %v749_v57  ;;  %v2082_v3 = vsel %vm8389_vm5, %v2080_v30, %v2081_v13  ;;  %v770_v26 = vshll.u32 %v8467_v1, 16  ;;  %v8513_v31 = vld [vmem:[%s7989_s23 + $0xdc] sm:$0xf] }
  0x79   : > { %6567 = vmatprep.mubr.bf16.mxu1 %v8479_v34  ;;  %v8506_v52 = vcombine.low %v2079_v36, %v2082_v3  ;;  %v757_v5 = vor.u32 %v756_v25, %v753_v16  ;;  %v5926_v61 = vrot.slane %v8133_v46, 9  ;;  %v766_v24 = vrot.slane %v764_v28, 4 }
  0x7a   : > { %6932 = vmatmul.mubr.bf16.vlgmr.msra.gmra.mrb[0].mxu0 %v8432_v20  ;;  %9888 = vst [vmem:[#allocation22_spill] sm:$0xff] %v8499_v55  ;;  %v772_v14 = vrot.slane %v770_v26, 5  ;;  %v2088_v44 = vrot.slane %v8155_v7, 5  ;;  %v774_v13 = vshrl.u32 %v8467_v1, 16  ;;  %v780_v46 = vshll.u32 %v8486_v22, 16  ;;  %v7808_v7 = vld [vmem:[%s9757_s1 + $0x198] sm:$0xff]  }
  0x7b   : > { %6996 = vmatpush3.bf16.msra.mxu0 %v8326_v35  ;;  %6935 = vmatprep.mubr.bf16.mxu0 %v8464_v63  ;;  %9889 = vst [vmem:[#allocation23_spill] sm:$0xff] %v8506_v52  ;;  %v2085_v35 = vrot.slane %v8145_v59, 5  ;;  %v758_v30 = vrot.slane %v757_v5, 4  ;;  %v767_v16 = vor.u32 %v766_v24, %v762_v9  ;;  %v784_v25 = vshrl.u32 %v8486_v22, 16 }
  0x7c   : > { %6997 = vmatprep.subr.bf16.mxu0 %v7804_v49  ;;  %v776_v59 = vrot.slane %v774_v13, 4  ;;  %v790_v3 = vshll.u32 %v8492_v6, 16  ;;  %v782_v5 = vrot.slane %v780_v46, 5  ;;  %v2091_v34 = vrot.slane %v8164_v17, 5 }
  0x7d   : > { %v2086_v36 = vsel %vm8389_vm5, %v5926_v61, %v2085_v35  ;;  %v2087_v57 = vrot.slane %v2085_v35, 4  ;;  %v763_v28 = vsel %vm8062_vm2, %v758_v30, %v762_v9  ;;  %v2090_v61 = vrot.slane %v2088_v44, 4  ;;  %v8534_v30 = vld [vmem:[%s7989_s23 + $0xe0] sm:$0xf] }
  0x7e   : > { %v768_v35 = vrot.slane %v767_v16, 4  ;;  %v777_v13 = vor.u32 %v776_v59, %v772_v14  ;;  %v2094_v9 = vrot.slane %v8171_v27, 5  ;;  %v8541_v16 = vld [vmem:[%s7989_s23 + $0xe4] sm:$0xf]  ;;  %v798_v59 = vshll.u32 %v8513_v31, 16 }
  0x7f   : > { %6998 = vmatpush3.bf16.msra.mxu0 %v7804_v49  ;;  %v2089_v26 = vsel %vm8389_vm5, %v2087_v57, %v2088_v44  ;;  %v792_v49 = vrot.slane %v790_v3, 5  ;;  %v795_v57 = vshrl.u32 %v8513_v31, 16  ;;  %v2092_v17 = vsel %vm8389_vm5, %v2090_v61, %v2091_v34 }
  0x80   : > { %6568 = vmatmul.mubr.bf16.gmra.mrb[36].mxu1 %v8499_v55  ;;  %6999 = vmatprep.subr.bf16.mxu0 %v7806_v48  ;;  %v8528_v24 = vcombine.low %v2086_v36, %v2089_v26  ;;  %v786_v55 = vrot.slane %v784_v25, 4  ;;  %v773_v44 = vsel %vm8062_vm2, %v768_v35, %v772_v14  ;;  %v778_v36 = vrot.slane %v777_v13, 4  ;;  %v8549_v26 = vld [vmem:[%s7989_s23 + $0xe8] sm:$0xf] }
  0x81   : > { %v8544_v25 = vcombine.low %v763_v28, %v773_v44  ;;  %v2093_v27 = vrot.slane %v2091_v34, 4  ;;  %v797_v3 = vrot.slane %v795_v57, 4  ;;  %v804_v28 = vshll.u32 %v8534_v30, 16  ;;  %v8564_v44 = vld [vmem:[%s7989_s23 + $0xec] sm:$0x1] }
  0x82   : > { %9890 = vst [vmem:[#allocation24_spill] sm:$0xff] %v8528_v24  ;;  %6936 = vmatmul.mubr.bf16.gmra.mrb[4].mxu0 %v8506_v52  ;;  %v787_v46 = vor.u32 %v786_v55, %v782_v5  ;;  %v7812_v55 = vld [vmem:[%s9757_s1 + $0x1a0] sm:$0xff]   ;;  %v783_v14 = vsel %vm8062_vm2, %v778_v36, %v782_v5  ;;  %v808_v61 = vshrl.u32 %v8534_v30, 16  ;;  %v814_v13 = vshll.u32 %v8541_v16, 16 }
  0x83   : > { %6939 = vmatprep.mubr.bf16.mxu0 %v8528_v24  ;;  %7000 = vmatpush3.bf16.msra.mxu0 %v7806_v48  ;;  %9891 = vst [vmem:[#allocation25_spill] sm:$0xff] %v8544_v25  ;;  %v800_v48 = vrot.slane %v798_v59, 5  ;;  %v2095_v34 = vsel %vm8389_vm5, %v2093_v27, %v2094_v9  ;;  %v5927_v57 = vrot.slane %v8183_v39, 9  ;;  %v806_v59 = vrot.slane %v804_v28, 5  ;;  %v7818_v39 = vld [vmem:[%s9757_s1 + $0x1a8] sm:$0xff]  }
  0x84   : > { %7001 = vmatprep.subr.bf16.mxu0 %v7808_v7  ;;  %v788_v35 = vrot.slane %v787_v46, 4  ;;  %6571 = vmatprep.mubr.bf16.mxu1 %v8544_v25  ;;  %v8568_v36 = vcombine.low %v2092_v17, %v2095_v34  ;;  %v810_v9 = vrot.slane %v808_v61, 4  ;;  %v816_v27 = vrot.slane %v814_v13, 5  ;;  %v8591_v13 = vld [vmem:[%s7989_s23 + $0xf4] sm:$0xf] }
  0x85   : > { %v801_v46 = vor.u32 %v800_v48, %v797_v3  ;;  %v2098_v54 = vrot.slane %v8192_v45, 5  ;;  %v818_v17 = vshrl.u32 %v8541_v16, 16  ;;  %v824_v3 = vshll.u32 %v8549_v26, 16 }
  0x86   : > { %v793_v5 = vsel %vm8062_vm2, %v788_v35, %v792_v49  ;;  %9892 = vst [vmem:[#allocation26_spill] sm:$0xff] %v8568_v36  ;;  %v2101_v49 = vrot.slane %v8198_v51, 5  ;;  %v811_v45 = vor.u32 %v810_v9, %v806_v59  ;;  %v828_v48 = vshrl.u32 %v8549_v26, 16 }
  0x87   : > { %7002 = vmatpush3.bf16.msra.mxu0 %v7808_v7  ;;  %v8570_v25 = vcombine.low %v783_v14, %v793_v5  ;;  %v802_v29 = vrot.slane %v801_v46, 4  ;;  %v8580_v7 = vld [vmem:[%s7989_s23 + $0xf0] sm:$0xf]  ;;  %v2099_v14 = vsel %vm8389_vm5, %v5927_v57, %v2098_v54  ;;  %v2100_v35 = vrot.slane %v2098_v54, 4  ;;  %v8596_v57 = vld [vmem:[%s7989_s23 + $0xf8] sm:$0xf] }
  0x88   : > { %7003 = vmatprep.subr.bf16.mxu0 %v7812_v55  ;;  %v820_v28 = vrot.slane %v818_v17, 4  ;;  %v826_v34 = vrot.slane %v824_v3, 5  ;;  %v834_v61 = vshll.u32 %v8564_v44, 16  ;;  %v812_v5 = vrot.slane %v811_v45, 4 }
  0x89   : > { %9893 = vst [vmem:[#allocation27_spill] sm:$0xff] %v8570_v25  ;;  %6572 = vmatmul.mubr.bf16.gmra.mrb[40].mxu1 %v8570_v25  ;;  %v807_v51 = vsel %vm8062_vm2, %v802_v29, %v806_v59  ;;  %v2102_v46 = vsel %vm8389_vm5, %v2100_v35, %v2101_v49  ;;  %v830_v9 = vrot.slane %v828_v48, 4  ;;  %v2103_v25 = vrot.slane %v2101_v49, 4  ;;  %v7824_v29 = vld [vmem:[%s9757_s1 + $0x1b0] sm:$0xff]   ;;  %v7830_v48 = vld [vmem:[%s9757_s1 + $0x1b8] sm:$0xff]  }
  0x8a   : > { %6940 = vmatmul.mubr.bf16.gmra.mrb[8].mxu0 %v8568_v36  ;;  %v8601_v54 = vcombine.low %v2099_v14, %v2102_v46  ;;  %v821_v59 = vor.u32 %v820_v28, %v816_v27  ;;  %v836_v17 = vrot.slane %v834_v61, 5  ;;  %v2104_v3 = vrot.slane %v8203_v56, 5 }
  0x8b   : > { %7004 = vmatpush3.bf16.msra.mxu0 %v7812_v55  ;;  %v817_v55 = vsel %vm8062_vm2, %v812_v5, %v816_v27  ;;  %v831_v45 = vor.u32 %v830_v9, %v826_v34  ;;  %v2107_v49 = vrot.slane %v8213_v0, 5  ;;  %v839_v35 = vshrl.u32 %v8580_v7, 16  ;;  %v8619_v9 = vld [vmem:[%s7989_s23 + $0xfc] sm:$0xf] }
  0x8c   : > { %7005 = vmatprep.subr.bf16.mxu0 %v7818_v39  ;;  %9894 = vst [vmem:[#allocation28_spill] sm:$0xff] %v8601_v54  ;;  %v8611_v14 = vcombine.low %v807_v51, %v817_v55  ;;  %6943 = vmatprep.mubr.bf16.mxu0 %v8601_v54  ;;  %v822_v28 = vrot.slane %v821_v59, 4  ;;  %v2105_v56 = vsel %vm8389_vm5, %v2103_v25, %v2104_v3  ;;  %v2106_v61 = vrot.slane %v2104_v3, 4 }
  0x8d   : > { %v832_v27 = vrot.slane %v831_v45, 4  ;;  %v841_v5 = vrot.slane %v839_v35, 4  ;;  %v842_v0 = vshll.u32 %v8580_v7, 16  ;;  %v848_v46 = vshll.u32 %v8591_v13, 16 }
  0x8e   : > { %9895 = vst [vmem:[#allocation29_spill] sm:$0xff] %v8611_v14  ;;  %6575 = vmatprep.mubr.bf16.mxu1 %v8611_v14  ;;  %v827_v51 = vsel %vm8062_vm2, %v822_v28, %v826_v34  ;;  %v2108_v25 = vsel %vm8389_vm5, %v2106_v61, %v2107_v49  ;;  %v858_v59 = vshll.u32 %v8596_v57, 16  ;;  %v5928_v34 = vrot.slane %v8233_v32, 9 }
  0x8f   : > { %7006 = vmatpush3.bf16.msra.mxu0 %v7818_v39  ;;  %v852_v39 = vshrl.u32 %v8591_v13, 16  ;;  %v837_v3 = vsel %vm8062_vm2, %v832_v27, %v836_v17  ;;  %v8633_v55 = vcombine.low %v2105_v56, %v2108_v25  ;;  %v844_v45 = vrot.slane %v842_v0, 5  ;;  %v8645_v56 = vld [vmem:[%s9757_s1 + $0x1c0] sm:$0xff]  }
  0x90   : > { %7007 = vmatprep.subr.bf16.mxu0 %v7824_v29  ;;  %v850_v35 = vrot.slane %v848_v46, 5  ;;  %v8635_v40 = vcombine.low %v827_v51, %v837_v3  ;;  %v860_v19 = vrot.slane %v858_v59, 5  ;;  %v2111_v28 = vrot.slane %v8245_v41, 5  ;;  %9898 = vst [vmem:[#allocation32_spill] sm:$0xff] %v8645_v56 }
  0x91   : > { %9896 = vst [vmem:[#allocation30_spill] sm:$0xff] %v8633_v55  ;;  %v854_v14 = vrot.slane %v852_v39, 4  ;;  %v845_v49 = vor.u32 %v844_v45, %v841_v5  ;;  %v2114_v61 = vrot.slane %v8254_v50, 5  ;;  %v862_v17 = vshrl.u32 %v8596_v57, 16  ;;  %v8652_v50 = vld [vmem:[%s7989_s23 + $0x104] sm:$0xf] }
  0x92   : > { %9897 = vst [vmem:[#allocation31_spill] sm:$0xff] %v8635_v40  ;;  %6944 = vmatmul.mubr.bf16.gmra.mrb[12].mxu0 %v8633_v55  ;;  %6576 = vmatmul.mubr.bf16.gmra.mrb[44].mxu1 %v8635_v40  ;;  %v872_v27 = vshrl.u32 %v8619_v9, 16  ;;  %v878_v41 = vshll.u32 %v8622_v53, 16  ;;  %v2112_v0 = vsel %vm8389_vm5, %v5928_v34, %v2111_v28  ;;  %v2113_v46 = vrot.slane %v2111_v28, 4  ;;  %v8768_v55 = vld [vmem:[%s7989_s23 + $0x90] sm:$0xf] }
  0x93   : > { %7008 = vmatpush3.bf16.msra.mxu0 %v7824_v29  ;;  %v855_v32 = vor.u32 %v854_v14, %v850_v35  ;;  %v868_v29 = vshll.u32 %v8619_v9, 16  ;;  %v846_v5 = vrot.slane %v845_v49, 4  ;;  %v864_v51 = vrot.slane %v862_v17, 4  ;;  %v8657_v14 = vld [vmem:[%s7989_s23 + $0x108] sm:$0xf] }
  0x94   : > { %7009 = vmatprep.subr.bf16.mxu0 %v7830_v48  ;;  %v874_v59 = vrot.slane %v872_v27, 4  ;;  %v880_v3 = vrot.slane %v878_v41, 5  ;;  %v2115_v40 = vsel %vm8389_vm5, %v2113_v46, %v2114_v61  ;;  %v2116_v49 = vrot.slane %v2114_v61, 4 }
  0x95   : > { %v856_v25 = vrot.slane %v855_v32, 4  ;;  %v870_v39 = vrot.slane %v868_v29, 5  ;;  %v851_v45 = vsel %vm8062_vm2, %v846_v5, %v850_v35  ;;  %v865_v43 = vor.u32 %v864_v51, %v860_v19 }
  0x96   : > { %v8669_v28 = vcombine.low %v2112_v0, %v2115_v40  ;;  %v2120_v29 = vrot.slane %v8270_v8, 5  ;;  %v883_v61 = vshrl.u32 %v8652_v50, 16  ;;  %v886_v41 = vshll.u32 %v8652_v50, 16  ;;  %v8686_v0 = vld [vmem:[%s7989_s23 + $0x110] sm:$0xf] }
  0x97   : > { %7010 = vmatpush3.bf16.msra.mxu0 %v7830_v48  ;;  %v861_v34 = vsel %vm8062_vm2, %v856_v25, %v860_v19  ;;  %v875_v17 = vor.u32 %v874_v59, %v870_v39  ;;  %v2117_v48 = vrot.slane %v8261_v2, 5  ;;  %v866_v35 = vrot.slane %v865_v43, 4 }
  0x98   : > { %7075 = vmatprep.subr.bf16.mxu0 %v8645_v56  ;;  %9899 = vst [vmem:[#allocation33_spill] sm:$0xff] %v8669_v28  ;;  %v8672_v32 = vcombine.low %v851_v45, %v861_v34  ;;  %6947 = vmatprep.mubr.bf16.mxu0 %v8669_v28  ;;  %v885_v43 = vrot.slane %v883_v61, 4  ;;  %v892_v8 = vshll.u32 %v8657_v14, 16  ;;  %v896_v5 = vshrl.u32 %v8657_v14, 16  ;;  %v8694_v45 = vld [vmem:[%s7989_s23 + $0x114] sm:$0x1] }
  0x99   : > { %v876_v27 = vrot.slane %v875_v17, 4  ;;  %v2118_v19 = vsel %vm8389_vm5, %v2116_v49, %v2117_v48  ;;  %v2119_v40 = vrot.slane %v2117_v48, 4  ;;  %v871_v2 = vsel %vm8062_vm2, %v866_v35, %v870_v39  ;;  %v8701_v61 = vld [vmem:[%s7989_s23 + $0x78] sm:$0xf] }
  0x9a   : > { %9900 = vst [vmem:[#allocation34_spill] sm:$0xff] %v8672_v32  ;;  %6579 = vmatprep.mubr.bf16.mxu1 %v8672_v32  ;;  %v888_v25 = vrot.slane %v886_v41, 5  ;;  %v902_v59 = vshll.u32 %v8664_v15, 16  ;;  %v894_v34 = vrot.slane %v892_v8, 5  ;;  %v898_v17 = vrot.slane %v896_v5, 4 }
  0x9b   : > { %v881_v46 = vsel %vm8062_vm2, %v876_v27, %v880_v3  ;;  %v2121_v51 = vsel %vm8389_vm5, %v2119_v40, %v2120_v29  ;;  %v5929_v3 = vrot.slane %v8701_v61, 9  ;;  %v2124_v29 = vrot.slane %v8298_v60, 5  ;;  %v8714_v60 = vld [vmem:[%s7989_s23 + $0x118] sm:$0xf] }
  0x9c   : > { %v8696_v39 = vcombine.low %v871_v2, %v881_v46  ;;  %v8698_v49 = vcombine.low %v2118_v19, %v2121_v51  ;;  %v889_v48 = vor.u32 %v888_v25, %v885_v43  ;;  %v904_v35 = vrot.slane %v902_v59, 5  ;;  %v8717_v46 = vld [vmem:[%s7989_s23 + $0x11c] sm:$0xf] }
  0x9d   : > { %v899_v27 = vor.u32 %v898_v17, %v894_v34  ;;  %v2127_v19 = vrot.slane %v8306_v10, 5  ;;  %v906_v40 = vshrl.u32 %v8664_v15, 16  ;;  %v912_v41 = vshll.u32 %v8686_v0, 16 }
  0x9e   : > { %9901 = vst [vmem:[#allocation35_spill] sm:$0xff] %v8696_v39  ;;  %9902 = vst [vmem:[#allocation36_spill] sm:$0xff] %v8698_v49  ;;  %6580 = vmatmul.mubr.bf16.gmra.mrb[48].mxu1 %v8696_v39  ;;  %6948 = vmatmul.mubr.bf16.gmra.mrb[16].mxu0 %v8698_v49  ;;  %v890_v2 = vrot.slane %v889_v48, 4  ;;  %v2125_v43 = vsel %vm8389_vm5, %v5929_v3, %v2124_v29  ;;  %v2126_v8 = vrot.slane %v2124_v29, 4  ;;  %v916_v5 = vshrl.u32 %v8686_v0, 16 }
  0x9f   : > { %v900_v51 = vrot.slane %v899_v27, 4  ;;  %v908_v25 = vrot.slane %v906_v40, 4  ;;  %v914_v10 = vrot.slane %v912_v41, 5  ;;  %v922_v59 = vshll.u32 %v8694_v45, 16  ;;  %v8729_v27 = vld [vmem:[%s7989_s23 + $0x120] sm:$0xf] }
  0xa0   : > { %v895_v17 = vsel %vm8062_vm2, %v890_v2, %v894_v34  ;;  %v2128_v48 = vsel %vm8389_vm5, %v2126_v8, %v2127_v19  ;;  %v918_v3 = vrot.slane %v916_v5, 4  ;;  %v2129_v29 = vrot.slane %v2127_v19, 4  ;;  %v8734_v49 = vld [vmem:[%s7989_s23 + $0x84] sm:$0xf] }
  0xa1   : > { %v905_v39 = vsel %vm8062_vm2, %v900_v51, %v904_v35  ;;  %v8726_v32 = vcombine.low %v2125_v43, %v2128_v48  ;;  %v909_v47 = vor.u32 %v908_v25, %v904_v35  ;;  %v924_v18 = vrot.slane %v922_v59, 5  ;;  %v8747_v25 = vld [vmem:[%s7989_s23 + $0x124] sm:$0xf] }
  0xa2   : > { %v8731_v40 = vcombine.low %v895_v17, %v905_v39  ;;  %v919_v41 = vor.u32 %v918_v3, %v914_v10  ;;  %v2130_v34 = vrot.slane %v8734_v49, 5  ;;  %v2133_v2 = vrot.slane %v8320_v33, 5  ;;  %v8752_v3 = vld [vmem:[%s7989_s23 + $0x128] sm:$0x1] }
  0xa3   : > { %9903 = vst [vmem:[#allocation37_spill] sm:$0xff] %v8726_v32  ;;  %6951 = vmatprep.mubr.bf16.mxu0 %v8726_v32  ;;  %v910_v19 = vrot.slane %v909_v47, 4  ;;  %v927_v43 = vshrl.u32 %v8714_v60, 16  ;;  %v930_v35 = vshll.u32 %v8714_v60, 16  ;;  %v936_v8 = vshll.u32 %v8717_v46, 16 }
  0xa4   : > { %9904 = vst [vmem:[#allocation38_spill] sm:$0xff] %v8731_v40  ;;  %6583 = vmatprep.mubr.bf16.mxu1 %v8731_v40  ;;  %v920_v39 = vrot.slane %v919_v41, 4  ;;  %v2131_v5 = vsel %vm8389_vm5, %v2129_v29, %v2130_v34  ;;  %v2132_v51 = vrot.slane %v2130_v34, 4  ;;  %v940_v33 = vshrl.u32 %v8717_v46, 16 }
  0xa5   : > { %v915_v47 = vsel %vm8062_vm2, %v910_v19, %v914_v10  ;;  %v929_v59 = vrot.slane %v927_v43, 4  ;;  %v932_v17 = vrot.slane %v930_v35, 5  ;;  %v938_v48 = vrot.slane %v936_v8, 5  ;;  %v8764_v19 = vld [vmem:[%s7989_s23 + $0x8c] sm:$0xf] }
  0xa6   : > { %v925_v41 = vsel %vm8062_vm2, %v920_v39, %v924_v18  ;;  %v2134_v29 = vsel %vm8389_vm5, %v2132_v51, %v2133_v2  ;;  %v942_v34 = vrot.slane %v940_v33, 4  ;;  %v946_v40 = vshll.u32 %v8729_v27, 16 }
  0xa7   : > { %v8759_v32 = vcombine.low %v915_v47, %v925_v41  ;;  %v8761_v28 = vcombine.low %v2131_v5, %v2134_v29  ;;  %v933_v10 = vor.u32 %v932_v17, %v929_v59  ;;  %v5930_v43 = vrot.slane %v8764_v19, 9  ;;  %v8778_v47 = vld [vmem:[%s7989_s23 + $0x12c] sm:$0xf] }
  0xa8   : > { %v943_v35 = vor.u32 %v942_v34, %v938_v48  ;;  %v948_v8 = vrot.slane %v946_v40, 5  ;;  %v2137_v18 = vrot.slane %v8768_v55, 5  ;;  %v2140_v2 = vrot.slane %v8345_v21, 5 }
  0xa9   : > { %9905 = vst [vmem:[#allocation39_spill] sm:$0xff] %v8759_v32  ;;  %9906 = vst [vmem:[#allocation40_spill] sm:$0xff] %v8761_v28  ;;  %6584 = vmatmul.mubr.bf16.gmra.mrb[52].mxu1 %v8759_v32  ;;  %6952 = vmatmul.mubr.bf16.gmra.mrb[20].mxu0 %v8761_v28  ;;  %v934_v39 = vrot.slane %v933_v10, 4  ;;  %v950_v5 = vshrl.u32 %v8729_v27, 16  ;;  %v956_v51 = vshll.u32 %v8747_v25, 16  ;;  %v960_v33 = vshrl.u32 %v8747_v25, 16 }
  0xaa   : > { %v944_v40 = vrot.slane %v943_v35, 4  ;;  %v2138_v59 = vsel %vm8389_vm5, %v5930_v43, %v2137_v18  ;;  %v2139_v21 = vrot.slane %v2137_v18, 4  ;;  %v966_v17 = vshll.u32 %v8752_v3, 16  ;;  %v8790_v43 = vld [vmem:[%s7989_s23 + $0x130] sm:$0xf] }
  0xab   : > { %v939_v41 = vsel %vm8062_vm2, %v934_v39, %v938_v48  ;;  %v952_v29 = vrot.slane %v950_v5, 4  ;;  %v958_v34 = vrot.slane %v956_v51, 5  ;;  %v962_v10 = vrot.slane %v960_v33, 4  ;;  %v8797_v39 = vld [vmem:[%s7989_s23 + $0x98] sm:$0xf] }
  0xac   : > { %v949_v32 = vsel %vm8062_vm2, %v944_v40, %v948_v8  ;;  %v2141_v35 = vsel %vm8389_vm5, %v2139_v21, %v2140_v2  ;;  %v968_v28 = vrot.slane %v966_v17, 5  ;;  %v2142_v54 = vrot.slane %v2140_v2, 4  ;;  %v7886_v51 = vld [vmem:[%s7989_s23 + $0x9c] sm:$0x1] }
  0xad   : > { %v8792_v18 = vcombine.low %v939_v41, %v949_v32  ;;  %v8794_v36 = vcombine.low %v2138_v59, %v2141_v35  ;;  %v953_v24 = vor.u32 %v952_v29, %v948_v8  ;;  %v963_v48 = vor.u32 %v962_v10, %v958_v34  ;;  %v8806_v59 = vld [vmem:[%s7989_s23 + $0x134] sm:$0xf] }
  0xae   : > { %v2143_v5 = vrot.slane %v8797_v39, 5  ;;  %v2146_v33 = vrot.slane %v7886_v51, 5  ;;  %v971_v40 = vshrl.u32 %v8778_v47, 16  ;;  %v974_v21 = vshll.u32 %v8778_v47, 16 }
  0xaf   : > { %9907 = vst [vmem:[#allocation41_spill] sm:$0xff] %v8792_v18  ;;  %9908 = vst [vmem:[#allocation42_spill] sm:$0xff] %v8794_v36  ;;  %6587 = vmatprep.mubr.bf16.mxu1 %v8792_v18  ;;  %6955 = vmatprep.mubr.bf16.mxu0 %v8794_v36  ;;  %v954_v32 = vrot.slane %v953_v24, 4  ;;  %v964_v2 = vrot.slane %v963_v48, 4  ;;  %v980_v8 = vshll.u32 %v8790_v43, 16  ;;  %v984_v17 = vshrl.u32 %v8790_v43, 16 }
  0xb0   : > { %v2144_v41 = vsel %vm8389_vm5, %v2142_v54, %v2143_v5  ;;  %v2145_v29 = vrot.slane %v2143_v5, 4  ;;  %v973_v10 = vrot.slane %v971_v40, 4  ;;  %v976_v35 = vrot.slane %v974_v21, 5  ;;  %v8822_v40 = vld [vmem:[%s7989_s23 + $0x138] sm:$0xf] }
  0xb1   : > { %v959_v24 = vsel %vm8062_vm2, %v954_v32, %v958_v34  ;;  %v969_v48 = vsel %vm8062_vm2, %v964_v2, %v968_v28  ;;  %v982_v51 = vrot.slane %v980_v8, 5  ;;  %v986_v18 = vrot.slane %v984_v17, 4  ;;  %v8827_v34 = vld [vmem:[%s7989_s23 + $0xa0] sm:$0xf]  ;;  %v8831_v32 = vld [vmem:[%s7989_s23 + $0xa4] sm:$0xf] }
  0xb2   : > { %v8816_v36 = vcombine.low %v959_v24, %v969_v48  ;;  %v2147_v52 = vsel %vm8389_vm5, %v2145_v29, %v2146_v33  ;;  %v977_v54 = vor.u32 %v976_v35, %v973_v10  ;;  %v990_v5 = vshll.u32 %v8806_v59, 16  ;;  %9911 = vst [vmem:[#allocation45_spill] sm:$0xff] %v8827_v34  ;;  %9912 = vst [vmem:[#allocation46_spill] sm:$0xff] %v8831_v32  ;;  %v8835_v8 = vld [vmem:[%s7989_s23 + $0x13c] sm:$0x1] }
  0xb3   : > { %v8824_v21 = vcombine.low %v2144_v41, %v2147_v52  ;;  %v987_v63 = vor.u32 %v986_v18, %v982_v51  ;;  %v5931_v28 = vrot.slane %v8827_v34, 9  ;;  %v2150_v2 = vrot.slane %v8831_v32, 5  ;;  %v8839_v29 = vld [vmem:[%s7989_s23 + $0xa8] sm:$0xf]  ;;  %v7891_v34 = vld [vmem:[%s7989_s23 + $0xb0] sm:$0x1] }
  0xb4   : > { %9909 = vst [vmem:[#allocation43_spill] sm:$0xff] %v8816_v36  ;;  %6588 = vmatmul.mubr.bf16.gmra.mrb[56].mxu1 %v8816_v36  ;;  %v978_v33 = vrot.slane %v977_v54, 4  ;;  %v992_v17 = vrot.slane %v990_v5, 5  ;;  %9913 = vst [vmem:[#allocation47_spill] sm:$0xff] %v8839_v29  ;;  %v2153_v52 = vrot.slane %v8839_v29, 5  ;;  %v994_v18 = vshrl.u32 %v8806_v59, 16 }
  0xb5   : > { %9910 = vst [vmem:[#allocation44_spill] sm:$0xff] %v8824_v21  ;;  %6956 = vmatmul.mubr.bf16.gmra.mrb[24].mxu0 %v8824_v21  ;;  %v988_v41 = vrot.slane %v987_v63, 4  ;;  %v2151_v10 = vsel %vm8389_vm5, %v5931_v28, %v2150_v2  ;;  %v2152_v35 = vrot.slane %v2150_v2, 4  ;;  %v1000_v24 = vshll.u32 %v8822_v40, 16 }
  0xb6   : > { %v983_v48 = vsel %vm8062_vm2, %v978_v33, %v982_v51  ;;  %v996_v54 = vrot.slane %v994_v18, 4  ;;  %v1004_v5 = vshrl.u32 %v8822_v40, 16  ;;  %v1010_v36 = vshll.u32 %v8835_v8, 16  ;;  %v8860_v18 = vld [vmem:[%s7989_s23 + $0xac] sm:$0xf] }
  0xb7   : > { %v993_v21 = vsel %vm8062_vm2, %v988_v41, %v992_v17  ;;  %v2154_v63 = vsel %vm8389_vm5, %v2152_v35, %v2153_v52  ;;  %v1002_v28 = vrot.slane %v1000_v24, 5  ;;  %v2155_v2 = vrot.slane %v2153_v52, 4  ;;  %v8867_v52 = vld [vmem:[%s7989_s23 + $0xb4] sm:$0xf] }
  0xb8   : > { %v8855_v20 = vcombine.low %v983_v48, %v993_v21  ;;  %v8857_v23 = vcombine.low %v2151_v10, %v2154_v63  ;;  %v997_v56 = vor.u32 %v996_v54, %v992_v17  ;;  %v1006_v51 = vrot.slane %v1004_v5, 4 }
  0xb9   : > { %v1012_v33 = vrot.slane %v1010_v36, 5  ;;  %v2156_v29 = vrot.slane %v8860_v18, 5  ;;  %v2159_v32 = vrot.slane %v7891_v34, 5  ;;  %v5932_v21 = vrot.slane %v8867_v52, 9 }
  0xba   : > { %9914 = vst [vmem:[#allocation48_spill] sm:$0xff] %v8855_v20  ;;  %6591 = vmatprep.mubr.bf16.mxu1 %v8855_v20  ;;  %6959 = vmatprep.mubr.bf16.mxu0 %v8857_v23  ;;  %v998_v41 = vrot.slane %v997_v56, 4  ;;  %v1007_v35 = vor.u32 %v1006_v51, %v1002_v28  ;;  %v2163_v36 = vrot.slane %v8395_v37, 5  ;;  %v2166_v34 = vrot.slane %v8415_v62, 5 }
  0xbb   : > { %v2157_v17 = vsel %vm8389_vm5, %v2155_v2, %v2156_v29  ;;  %v2158_v10 = vrot.slane %v2156_v29, 4  ;;  %v2169_v37 = vrot.slane %v8435_v11, 5  ;;  %v2172_v51 = vrot.slane %v8438_v42, 5  ;;  %v8887_v2 = vld [vmem:[%s7989_s23] sm:$0xf] }
  0xbc   : > { %v1003_v24 = vsel %vm8062_vm2, %v998_v41, %v1002_v28  ;;  %v1008_v48 = vrot.slane %v1007_v35, 4  ;;  %v2164_v56 = vsel %vm8389_vm5, %v5932_v21, %v2163_v36  ;;  %v2165_v54 = vrot.slane %v2163_v36, 4  ;;  %v8890_v28 = vld [vmem:[%s7989_s23 + $0x4] sm:$0xf] }
  0xbd   : > { %v2160_v5 = vsel %vm8389_vm5, %v2158_v10, %v2159_v32  ;;  %v2168_v63 = vrot.slane %v2166_v34, 4  ;;  %v5883_v41 = vcombine.low %v8887_v2, %v8890_v28  ;;  %v2171_v42 = vrot.slane %v2169_v37, 4 }
  0xbe   : > { %v1013_v29 = vsel %vm8062_vm2, %v1008_v48, %v1012_v33  ;;  %v8884_v62 = vcombine.low %v2157_v17, %v2160_v5  ;;  %v2167_v32 = vsel %vm8389_vm5, %v2165_v54, %v2166_v34  ;;  %v5933_v33 = vrot.slane %v8454_v58, 9  ;;  %v8918_v48 = vld [vmem:[%s7989_s23 + $0xc] sm:$0xf] }
  0xbf   : > { %v8896_v35 = vcombine.low %v1003_v24, %v1013_v29  ;;  %v8898_v11 = vcombine.low %v2164_v56, %v2167_v32  ;;  %v2176_v21 = vrot.slane %v8461_v4, 5  ;;  %v2179_v36 = vrot.slane %v8467_v1, 5  ;;  %v8915_v24 = vld [vmem:[%s7989_s23 + $0x8] sm:$0xf]  ;;  %v7897_v29 = vld [vmem:[%s7989_s23 + $0x14] sm:$0xf] }
  0xc0   : > { %6960 = vmatmul.mubr.bf16.gmra.mrb[28].mxu0 %v8884_v62  ;;  %v2170_v17 = vsel %vm8389_vm5, %v2168_v63, %v2169_v37  ;;  %v2173_v10 = vsel %vm8389_vm5, %v2171_v42, %v2172_v51  ;;  %v2182_v34 = vrot.slane %v8486_v22, 5  ;;  %v2189_v1 = vrot.slane %v8534_v30, 5  ;;  %v7898_v30 = vld [vmem:[%s7989_s23 + $0x18] sm:$0xf] }
  0xc1   : > { %9915 = vst [vmem:[#allocation49_spill] sm:$0xff] %v8896_v35  ;;  %9916 = vst [vmem:[#allocation50_spill] sm:$0xff] %v8898_v11  ;;  %6592 = vmatmul.mubr.bf16.gmra.mrb[60].mxu1 %v8896_v35  ;;  %6963 = vmatprep.mubr.bf16.mxu0 %v8898_v11  ;;  %v2177_v58 = vsel %vm8389_vm5, %v5933_v33, %v2176_v21  ;;  %v2178_v4 = vrot.slane %v2176_v21, 4  ;;  %v5884_v56 = vcombine.low %v8915_v24, %v8918_v48  ;;  %v7817_v21 = vld [vmem:[%s9757_s1 + $0x88] sm:$0xff]  }
  0xc2   : > { %6611 = vmatprep.mubr.bf16.mxu1 %v5883_v41  ;;  %v8922_v54 = vcombine.low %v2170_v17, %v2173_v10  ;;  %v2181_v63 = vrot.slane %v2179_v36, 4  ;;  %v2184_v37 = vrot.slane %v2182_v34, 4  ;;  %v2185_v51 = vrot.slane %v8492_v6, 5 }
  0xc3   : > { %v2180_v5 = vsel %vm8389_vm5, %v2178_v4, %v2179_v36  ;;  %v8931_v41 = vcombine.low %v7897_v29, %v7898_v30  ;;  %v5934_v32 = vrot.slane %v8513_v31, 9  ;;  %v2191_v42 = vrot.slane %v2189_v1, 4  ;;  %v7901_v4 = vld [vmem:[%s7989_s23 + $0x20] sm:$0xf]  ;;  %v7902_v29 = vld [vmem:[%s7989_s23 + $0x28] sm:$0xf] }
  0xc4   : > { %v8926_v22 = vcombine.low %v2177_v58, %v2180_v5  ;;  %v2192_v33 = vrot.slane %v8541_v16, 5  ;;  %v2183_v6 = vsel %vm8389_vm5, %v2181_v63, %v2182_v34  ;;  %v2186_v31 = vsel %vm8389_vm5, %v2184_v37, %v2185_v51  ;;  %v7899_v16 = vld [vmem:[%s9757_s1 + $0x80] sm:$0xff]   ;;  %v7900_v58 = vld [vmem:[%s7989_s23 + $0x1c] sm:$0xf]  ;;  %v7903_v30 = vld [vmem:[%s7989_s23 + $0x2c] sm:$0xf] }
  0xc5   : > { %9917 = vst [vmem:[#allocation51_spill] sm:$0xff] %v8931_v41  ;;  %v2195_v36 = vrot.slane %v8549_v26, 5  ;;  %v2190_v17 = vsel %vm8389_vm5, %v5934_v32, %v2189_v1  ;;  %v2202_v34 = vrot.slane %v8591_v13, 5  ;;  %v7823_v26 = vld [vmem:[%s9757_s1 + $0x90] sm:$0xff]   ;;  %v8961_v5 = vcombine.low %v2183_v6, %v2186_v31 }
  0xc6   : > { %v2193_v10 = vsel %vm8389_vm5, %v2191_v42, %v2192_v33  ;;  %v2194_v37 = vrot.slane %v2192_v33, 4  ;;  %v2198_v51 = vrot.slane %v8564_v44, 5  ;;  %v8968_v13 = vcombine.low %v7902_v29, %v7903_v30  ;;  %v7829_v33 = vld [vmem:[%s9757_s1 + $0x98] sm:$0xff]   ;;  %v7907_v30 = vld [vmem:[%s7989_s23 + $0x40] sm:$0xf] }
  0xc7   : > { %v8963_v63 = vcombine.low %v2190_v17, %v2193_v10  ;;  %v2197_v1 = vrot.slane %v2195_v36, 4  ;;  %v5935_v32 = vrot.slane %v8580_v7, 9  ;;  %v2204_v42 = vrot.slane %v2202_v34, 4  ;;  %v7904_v17 = vld [vmem:[%s7989_s23 + $0x30] sm:$0xf] }
  0xc8   : > { %6964 = vmatmul.mubr.bf16.gmra.mrb[32].mxu0 %v8922_v54  ;;  %v2196_v44 = vsel %vm8389_vm5, %v2194_v37, %v2195_v36  ;;  %v2215_v31 = vrot.slane %v8657_v14, 5  ;;  %v7835_v36 = vld [vmem:[%s9757_s1 + $0xa0] sm:$0xff]   ;;  %v7905_v10 = vld [vmem:[%s7989_s23 + $0x34] sm:$0xf]  ;;  %v7906_v29 = vld [vmem:[%s7989_s23 + $0x3c] sm:$0xf] }
  0xc9   : > { %6612 = vmatmul.mubr.bf16.vlgmr.msra.gmra.mrb[0].mxu1 %v5884_v56  ;;  %6967 = vmatprep.mubr.bf16.mxu0 %v8926_v22  ;;  %v8959_v56 = vcombine.low %v7900_v58, %v7901_v4  ;;  %9919 = vst [vmem:[#allocation53_spill] sm:$0xff] %v8963_v63  ;;  %v2199_v7 = vsel %vm8389_vm5, %v2197_v1, %v2198_v51  ;;  %v2211_v51 = vrot.slane %v8622_v53, 5  ;;  %v2218_v35 = vrot.slane %v8664_v15, 5 }
  0xca   : > { %6676 = vmatpush3.bf16.msra.mxu1 %v7899_v16  ;;  %6615 = vmatprep.mubr.bf16.mxu1 %v8931_v41  ;;  %v2205_v16 = vrot.slane %v8596_v57, 5  ;;  %v2208_v57 = vrot.slane %v8619_v9, 5  ;;  %v8994_v58 = vcombine.low %v7904_v17, %v7905_v10  ;;  %v8996_v4 = vcombine.low %v2196_v44, %v2199_v7  ;;  %v7908_v17 = vld [vmem:[%s7989_s23 + $0x44] sm:$0xf]  ;;  %v7909_v10 = vld [vmem:[%s7989_s23 + $0x48] sm:$0xf] }
  0xcb   : > { %6677 = vmatprep.subr.bf16.mxu1 %v7817_v21  ;;  %9918 = vst [vmem:[#allocation52_spill] sm:$0xff] %v8959_v56  ;;  %v5937_v38 = vrot.slane %v8714_v60, 9 }
  0xcc   : > { %v2206_v6 = vsel %vm8389_vm5, %v2204_v42, %v2205_v16  ;;  %9920 = vst [vmem:[#allocation54_spill] sm:$0xff] %v8996_v4  ;;  %v2210_v1 = vrot.slane %v2208_v57, 4  ;;  %v2217_v42 = vrot.slane %v2215_v31, 4 }
  0xce   : > { %6678 = vmatpush3.bf16.msra.mxu1 %v7817_v21  ;;  %v2203_v21 = vsel %vm8389_vm5, %v5935_v32, %v2202_v34  ;;  %v2207_v34 = vrot.slane %v2205_v16, 4  ;;  %v5936_v32 = vrot.slane %v8652_v50, 9  ;;  %v7841_v16 = vld [vmem:[%s9757_s1 + $0xa8] sm:$0xff]   ;;  %v2212_v44 = vsel %vm8389_vm5, %v2210_v1, %v2211_v51 }
  0xcf   : > { %6679 = vmatprep.subr.bf16.mxu1 %v7823_v26  ;;  %v8998_v37 = vcombine.low %v2203_v21, %v2206_v6  ;;  %v2219_v21 = vsel %vm8389_vm5, %v2217_v42, %v2218_v35  ;;  %v2228_v6 = vrot.slane %v8717_v46, 5  ;;  %v7911_v42 = vld [vmem:[%s7989_s23 + $0x54] sm:$0xf] }
  0xd0   : > { %6968 = vmatmul.mubr.bf16.gmra.mrb[36].mxu0 %v8961_v5  ;;  %v2209_v53 = vsel %vm8389_vm5, %v2207_v34, %v2208_v57  ;;  %v2216_v7 = vsel %vm8389_vm5, %v5936_v32, %v2215_v31  ;;  %v7847_v57 = vld [vmem:[%s9757_s1 + $0xb0] sm:$0xff]   ;;  %v9029_v34 = vcombine.low %v7908_v17, %v7909_v10  ;;  %v2220_v31 = vrot.slane %v2218_v35, 4  ;;  %v7913_v10 = vld [vmem:[%s7989_s23 + $0x5c] sm:$0xf] }
  0xd1   : > { %6616 = vmatmul.mubr.bf16.gmra.mrb[4].mxu1 %v8959_v56  ;;  %6971 = vmatprep.mubr.bf16.mxu0 %v8963_v63  ;;  %9921 = vst [vmem:[#allocation55_spill] sm:$0xff] %v8998_v37  ;;  %v9031_v1 = vcombine.low %v2209_v53, %v2212_v44  ;;  %v9033_v51 = vcombine.low %v2216_v7, %v2219_v21  ;;  %v7910_v32 = vld [vmem:[%s7989_s23 + $0x50] sm:$0xf]  ;;  %v2230_v20 = vrot.slane %v2228_v6, 4  ;;  %v2231_v56 = vrot.slane %v8729_v27, 5 }
  0xd2   : > { %6619 = vmatprep.mubr.bf16.mxu1 %v8968_v13  ;;  %6680 = vmatpush3.bf16.msra.mxu1 %v7823_v26  ;;  %v9003_v26 = vcombine.low %v7906_v29, %v7907_v30  ;;  %v2224_v30 = vrot.slane %v8694_v45, 5  ;;  %v9044_v53 = vcombine.low %v8714_v60, %v8717_v46  ;;  %v9048_v35 = vcombine.low %v8729_v27, %v8747_v25  ;;  %v7853_v45 = vld [vmem:[%s9757_s1 + $0xb8] sm:$0xff]  }
  0xd3   : > { %6681 = vmatprep.subr.bf16.mxu1 %v7829_v33  ;;  %9922 = vst [vmem:[#allocation56_spill] sm:$0xff] %v9031_v1  ;;  %9923 = vst [vmem:[#allocation57_spill] sm:$0xff] %v9033_v51  ;;  %v9055_v44 = vcombine.low %v8778_v47, %v8790_v43  ;;  %v9060_v60 = vcombine.low %v8806_v59, %v8822_v40  ;;  %v2229_v7 = vsel %vm8389_vm5, %v5937_v38, %v2228_v6 }
  0xd4   : > { %9924 = vst [vmem:[#allocation58_spill] sm:$0xff] %v9044_v53  ;;  %9925 = vst [vmem:[#allocation59_spill] sm:$0xff] %v9048_v35  ;;  %v2232_v21 = vsel %vm8389_vm5, %v2230_v20, %v2231_v56  ;;  %v2241_v17 = vrot.slane %v8790_v43, 5  ;;  %v2233_v6 = vrot.slane %v2231_v56, 4  ;;  %v2237_v43 = vrot.slane %v8752_v3, 5 }
  0xd5   : > { %9926 = vst [vmem:[#allocation60_spill] sm:$0xff] %v9055_v44  ;;  %9927 = vst [vmem:[#allocation61_spill] sm:$0xff] %v9060_v60  ;;  %v9086_v38 = vcombine.low %v2229_v7, %v2232_v21  ;;  %v9114_v7 = vld [vmem:[%s7989_s23 + $0x140] sm:$0xf]  ;;  %v7916_v21 = vld [vmem:[%s7989_s23 + $0x6c] sm:$0xf] }
  0xd6   : > { %6682 = vmatpush3.bf16.msra.mxu1 %v7829_v33  ;;  %v2221_v33 = vrot.slane %v8686_v0, 5  ;;  %v2243_v41 = vrot.slane %v2241_v17, 4 }
  0xd7   : > { %6683 = vmatprep.subr.bf16.mxu1 %v7835_v36  ;;  %9929 = vst [vmem:[#allocation63_spill] sm:$0xff] %v9086_v38 }
  0xd8   : > { %6972 = vmatmul.mubr.bf16.gmra.mrb[40].mxu0 %v8996_v4  ;;  %v2223_v29 = vrot.slane %v2221_v33, 4  ;;  %v2222_v46 = vsel %vm8389_vm5, %v2220_v31, %v2221_v33  ;;  %v9078_v33 = vld [vmem:[%s9757_s1 + $0xc0] sm:$0xff]  }
  0xd9   : > { %6620 = vmatmul.mubr.bf16.gmra.mrb[8].mxu1 %v8994_v58  ;;  %6975 = vmatprep.mubr.bf16.mxu0 %v8998_v37 }
  0xda   : > { %6623 = vmatprep.mubr.bf16.mxu1 %v9003_v26  ;;  %6684 = vmatpush3.bf16.msra.mxu1 %v7835_v36  ;;  %v9038_v36 = vcombine.low %v7910_v32, %v7911_v42  ;;  %v2225_v27 = vsel %vm8389_vm5, %v2223_v29, %v2224_v30  ;;  %v7915_v30 = vld [vmem:[%s7989_s23 + $0x68] sm:$0xf]  ;;  %v5938_v42 = vrot.slane %v8778_v47, 9 }
  0xdb   : > { %6685 = vmatprep.subr.bf16.mxu1 %v7841_v16  ;;  %v9084_v29 = vcombine.low %v2222_v46, %v2225_v27  ;;  %v9096_v46 = vld [vmem:[%s7989_s23 + $0x144] sm:$0xf] }
  0xdc   : > { %v2242_v56 = vsel %vm8389_vm5, %v5938_v42, %v2241_v17  ;;  %v3701_v27 = vrot.slane %v9096_v46, 5  ;;  %v6047_v42 = vrot.slane %v9114_v7, 9 }
  0xdd   : > { %9928 = vst [vmem:[#allocation62_spill] sm:$0xff] %v9084_v29 }
  0xde   : > { %6686 = vmatpush3.bf16.msra.mxu1 %v7841_v16  ;;  %v2234_v16 = vrot.slane %v8747_v25, 5  ;;  %v7912_v25 = vld [vmem:[%s7989_s23 + $0x58] sm:$0xf] }
  0xdf   : > { %6687 = vmatprep.subr.bf16.mxu1 %v7847_v57  ;;  %v9082_v31 = vcombine.low %v7912_v25, %v7913_v10  ;;  %v2244_v25 = vrot.slane %v8806_v59, 5  ;;  %v2247_v59 = vrot.slane %v8822_v40, 5  ;;  %v7917_v10 = vld [vmem:[%s7989_s23 + $0x70] sm:$0xf] }
  0xe0   : > { %6976 = vmatmul.mubr.bf16.gmra.mrb[44].mxu0 %v9031_v1  ;;  %v2236_v20 = vrot.slane %v2234_v16, 4  ;;  %v2235_v3 = vsel %vm8389_vm5, %v2233_v6, %v2234_v16  ;;  %v9117_v16 = vld [vmem:[%s7989_s23 + $0x148] sm:$0xf]  ;;  %v9121_v6 = vcombine.low %v7916_v21, %v7917_v10  ;;  %v9135_v10 = vld [vmem:[%s7989_s23 + $0x14c] sm:$0xf] }
  0xe1   : > { %6624 = vmatmul.mubr.bf16.gmra.mrb[12].mxu1 %v9029_v34  ;;  %6979 = vmatprep.mubr.bf16.mxu0 %v9033_v51  ;;  %v2249_v17 = vrot.slane %v2247_v59, 4  ;;  %v3704_v21 = vrot.slane %v9117_v16, 5 }
  0xe2   : > { %6627 = vmatprep.mubr.bf16.mxu1 %v9038_v36  ;;  %6688 = vmatpush3.bf16.msra.mxu1 %v7847_v57  ;;  %v7914_v57 = vld [vmem:[%s7989_s23 + $0x64] sm:$0xf]  ;;  %v2238_v47 = vsel %vm8389_vm5, %v2236_v20, %v2237_v43  ;;  %v2246_v43 = vrot.slane %v2244_v25, 4 }
  0xe3   : > { %6689 = vmatprep.subr.bf16.mxu1 %v7853_v45  ;;  %v9091_v32 = vcombine.low %v7914_v57, %v7915_v30  ;;  %v9123_v40 = vcombine.low %v2235_v3, %v2238_v47  ;;  %v2250_v57 = vrot.slane %v8835_v8, 5  ;;  %v3702_v3 = vsel %vm8389_vm5, %v6047_v42, %v3701_v27 }
  0xe4   : > { %v2248_v8 = vsel %vm8389_vm5, %v2246_v43, %v2247_v59 }
  0xe5   : > { %9930 = vst [vmem:[#allocation64_spill] sm:$0xff] %v9123_v40 }
  0xe6   : > { %6690 = vmatpush3.bf16.msra.mxu1 %v7853_v45  ;;  %v2245_v45 = vsel %vm8389_vm5, %v2243_v41, %v2244_v25  ;;  %v7918_v41 = vld [vmem:[%s7989_s23 + $0x7c] sm:$0xf]  ;;  %v3707_v25 = vrot.slane %v9135_v10, 5 }
  0xe7   : > { %6755 = vmatprep.subr.bf16.mxu1 %v9078_v33  ;;  %v9125_v20 = vcombine.low %v2242_v56, %v2245_v45  ;;  %v9130_v30 = vcombine.low %v8701_v61, %v7918_v41  ;;  %v2251_v61 = vsel %vm8389_vm5, %v2249_v17, %v2250_v57  ;;  %v9151_v56 = vld [vmem:[%s7989_s23 + $0x150] sm:$0x1]  ;;  %v7919_v45 = vld [vmem:[%s7989_s23 + $0x80] sm:$0xf]  ;;  %v3706_v17 = vrot.slane %v3704_v21, 4 }
  0xe8   : > { %6980 = vmatmul.mubr.bf16.gmra.mrb[48].mxu0 %v9084_v29  ;;  %v9155_v41 = vcombine.low %v7919_v45, %v8734_v49  ;;  %v9157_v59 = vcombine.low %v2248_v8, %v2251_v61  ;;  %v3709_v57 = vrot.slane %v3707_v25, 4  ;;  %v9936_v8 = vld [vmem:[#allocation45_spill] sm:$0xff]  ;;  %v9938_v45 = vld [vmem:[#allocation32_spill] sm:$0xff] }
  0xe9   : > { %6628 = vmatmul.mubr.bf16.gmra.mrb[16].mxu1 %v9082_v31  ;;  %6983 = vmatprep.mubr.bf16.mxu0 %v9086_v38  ;;  %9931 = vst [vmem:[#allocation65_spill] sm:$0xff] %v9125_v20  ;;  %v3703_v38 = vrot.slane %v3701_v27, 4  ;;  %v9164_v27 = vcombine.low %v8764_v19, %v8768_v55  ;;  %v3708_v49 = vsel %vm8389_vm5, %v3706_v17, %v3707_v25  ;;  %v9935_v19 = vld [vmem:[#allocation46_spill] sm:$0xff] }
  0xea   : > { %6631 = vmatprep.mubr.bf16.mxu1 %v9091_v32  ;;  %9932 = vst [vmem:[#allocation66_spill] sm:$0xff] %v9157_v59  ;;  %v9182_v61 = vcombine.low %v9936_v8, %v9935_v19  ;;  %v7923_v17 = vld [vmem:[%s7989_s23 + $0xc0] sm:$0xf]  ;;  %v7854_v19 = vld [vmem:[%s9757_s1 + $0x1d8] sm:$0xff]  }
  0xeb   : > { %v3705_v47 = vsel %vm8389_vm5, %v3703_v38, %v3704_v21  ;;  %v7920_v21 = vld [vmem:[%s7989_s23 + $0x94] sm:$0xf]  ;;  %v7858_v8 = vld [vmem:[%s9757_s1 + $0x1e0] sm:$0xff]  }
  0xec   : > { %v9159_v43 = vcombine.low %v3702_v3, %v3705_v47  ;;  %v9178_v55 = vcombine.low %v7920_v21, %v8797_v39  ;;  %v7921_v39 = vld [vmem:[%s7989_s23 + $0xb8] sm:$0xf]  ;;  %v7842_v47 = vld [vmem:[%s9757_s1 + $0x1c8] sm:$0xff]  }
  0xed   : > { %v9194_v3 = vcombine.low %v8867_v52, %v7921_v39  ;;  %v7922_v52 = vld [vmem:[%s7989_s23 + $0xbc] sm:$0xf]  ;;  %v7927_v39 = vld [vmem:[%s7989_s23 + $0xd4] sm:$0xf] }
  0xee   : > { %9933 = vst [vmem:[#allocation67_spill] sm:$0xff] %v9159_v43 }
  0xf0   : > { %6984 = vmatmul.mubr.bf16.gmra.mrb[52].mxu0 %v9123_v40 }
  0xf1   : > { %6632 = vmatmul.mubr.bf16.gmra.mrb[20].mxu1 %v9121_v6  ;;  %6987 = vmatprep.mubr.bf16.mxu0 %v9125_v20  ;;  %v3710_v20 = vrot.slane %v9151_v56, 5 }
  0xf2   : > { %6635 = vmatprep.mubr.bf16.mxu1 %v9130_v30 }
  0xf3   : > { %v3711_v38 = vsel %vm8389_vm5, %v3709_v57, %v3710_v20  ;;  %v9937_v20 = vld [vmem:[#allocation47_spill] sm:$0xff]  ;;  %v9209_v57 = vcombine.low %v7922_v52, %v7923_v17  ;;  %v7929_v52 = vld [vmem:[%s7989_s23 + $0xe0] sm:$0xf] }
  0xf4   : > { %v9174_v42 = vcombine.low %v3708_v49, %v3711_v38  ;;  %v9190_v25 = vcombine.low %v9937_v20, %v8860_v18  ;;  %v7848_v18 = vld [vmem:[%s9757_s1 + $0x1d0] sm:$0xff]   ;;  %v7924_v49 = vld [vmem:[%s7989_s23 + $0xc8] sm:$0xf]  ;;  %v7925_v38 = vld [vmem:[%s7989_s23 + $0xcc] sm:$0xf] }
  0xf5   : > { %v9213_v21 = vcombine.low %v7924_v49, %v7925_v38  ;;  %v7926_v20 = vld [vmem:[%s7989_s23 + $0xd0] sm:$0xf]  ;;  %v7930_v38 = vld [vmem:[%s7989_s23 + $0xe4] sm:$0xf] }
  0xf6   : > { %9934 = vst [vmem:[#allocation68_spill] sm:$0xff] %v9174_v42  ;;  %v7862_v49 = vld [vmem:[%s9757_s1 + $0x1f0] sm:$0xff]  }
  0xf8   : > { %6988 = vmatmul.mubr.bf16.gmra.mrb[56].mxu0 %v9157_v59 }
  0xf9   : > { %6636 = vmatmul.mubr.bf16.gmra.mrb[24].mxu1 %v9155_v41  ;;  %6991 = vmatprep.mubr.bf16.mxu0 %v9159_v43  ;;  %v9955_v43 = vld [vmem:[#allocation40_spill] sm:$0xff] }
  0xfa   : > { %6639 = vmatprep.mubr.bf16.mxu1 %v9164_v27 }
 0x100   : > { %6992 = vmatmul.mubr.bf16.gmra.mrb[60].mxu0 %v9174_v42 }
 0x101   : > { %6640 = vmatmul.mubr.bf16.gmra.mrb[28].mxu1 %v9178_v55  ;;  %7011 = vmatprep.mubr.bf16.mxu0 %v8968_v13 }
 0x102   : > { %6643 = vmatprep.mubr.bf16.mxu1 %v9182_v61 }
 0x108   : > { %7012 = vmatmul.mubr.bf16.vlgmr.msra.gmra.mrb[0].mxu0 %v8994_v58 }
 0x109   : > { %6644 = vmatmul.mubr.bf16.gmra.mrb[32].mxu1 %v9190_v25  ;;  %7076 = vmatpush3.bf16.msra.mxu0 %v9938_v45  ;;  %v7928_v45 = vld [vmem:[%s7989_s23 + $0xdc] sm:$0xf] }
 0x10a   : > { %6647 = vmatprep.mubr.bf16.mxu1 %v9194_v3  ;;  %7015 = vmatprep.mubr.bf16.mxu0 %v9003_v26  ;;  %v9231_v17 = vcombine.low %v7928_v45, %v7929_v52  ;;  %v7933_v45 = vld [vmem:[%s7989_s23 + $0xf4] sm:$0xf] }
 0x10b   : > { %7077 = vmatprep.subr.bf16.mxu0 %v7842_v47 }
 0x10d   : > { %7078 = vmatpush3.bf16.msra.mxu0 %v7842_v47  ;;  %v9227_v47 = vcombine.low %v7926_v20, %v7927_v39  ;;  %v7932_v39 = vld [vmem:[%s7989_s23 + $0xf0] sm:$0xf] }
 0x10e   : > { %7079 = vmatprep.subr.bf16.mxu0 %v7848_v18  ;;  %v9249_v52 = vcombine.low %v7932_v39, %v7933_v45  ;;  %v9269_v39 = vcombine.low %v8652_v50, %v8657_v14  ;;  %v5923_v50 = vrot.slane %v8887_v2, 9  ;;  %v2049_v45 = vrot.slane %v8915_v24, 5  ;;  %v7935_v2 = vld [vmem:[%s7989_s23 + $0x10] sm:$0x1] }
 0x110   : > { %7016 = vmatmul.mubr.bf16.gmra.mrb[4].mxu0 %v9029_v34 }
 0x111   : > { %6648 = vmatmul.mubr.bf16.gmra.mrb[36].mxu1 %v9209_v57  ;;  %7019 = vmatprep.mubr.bf16.mxu0 %v9038_v36 }
 0x112   : > { %6651 = vmatprep.mubr.bf16.mxu1 %v9213_v21  ;;  %7080 = vmatpush3.bf16.msra.mxu0 %v7848_v18  ;;  %v7860_v18 = vld [vmem:[%s9757_s1 + $0x1e8] sm:$0xff]  }
 0x113   : > { %7081 = vmatprep.subr.bf16.mxu0 %v7854_v19 }
 0x116   : > { %7082 = vmatpush3.bf16.msra.mxu0 %v7854_v19  ;;  %v7931_v19 = vld [vmem:[%s7989_s23 + $0xe8] sm:$0xf] }
 0x117   : > { %7083 = vmatprep.subr.bf16.mxu0 %v7858_v8  ;;  %v9245_v20 = vcombine.low %v7930_v38, %v7931_v19  ;;  %v9261_v38 = vld [vmem:[%s9757_s1 + $0x200] sm:$0xff]  }
 0x118   : > { %7020 = vmatmul.mubr.bf16.gmra.mrb[8].mxu0 %v9082_v31 }
 0x119   : > { %6652 = vmatmul.mubr.bf16.gmra.mrb[40].mxu1 %v9227_v47  ;;  %7023 = vmatprep.mubr.bf16.mxu0 %v9091_v32 }
 0x11a   : > { %6655 = vmatprep.mubr.bf16.mxu1 %v9231_v17  ;;  %7084 = vmatpush3.bf16.msra.mxu0 %v7858_v8  ;;  %v7866_v8 = vld [vmem:[%s9757_s1 + $0x1f8] sm:$0xff]  }
 0x11b   : > { %7085 = vmatprep.subr.bf16.mxu0 %v7860_v18 }
 0x11e   : > { %7086 = vmatpush3.bf16.msra.mxu0 %v7860_v18  ;;  %v7934_v18 = vld [vmem:[%s7989_s23 + $0xf8] sm:$0xf] }
 0x11f   : > { %7087 = vmatprep.subr.bf16.mxu0 %v7862_v49  ;;  %v9265_v19 = vcombine.low %v7934_v18, %v8619_v9  ;;  %v2046_v9 = vrot.slane %v8890_v28, 5  ;;  %v2051_v18 = vrot.slane %v2049_v45, 4 }
 0x120   : > { %7024 = vmatmul.mubr.bf16.gmra.mrb[12].mxu0 %v9121_v6 }
 0x121   : > { %6656 = vmatmul.mubr.bf16.gmra.mrb[44].mxu1 %v9245_v20  ;;  %7027 = vmatprep.mubr.bf16.mxu0 %v9130_v30  ;;  %v2048_v14 = vrot.slane %v2046_v9, 4 }
 0x122   : > { %6659 = vmatprep.mubr.bf16.mxu1 %v9249_v52  ;;  %7088 = vmatpush3.bf16.msra.mxu0 %v7862_v49  ;;  %v9278_v49 = vcombine.low %v8664_v15, %v8686_v0  ;;  %v2052_v15 = vrot.slane %v8918_v48, 5  ;;  %v2047_v0 = vsel %vm8389_vm5, %v5923_v50, %v2046_v9 }
 0x123   : > { %7089 = vmatprep.subr.bf16.mxu0 %v7866_v8  ;;  %v2050_v28 = vsel %vm8389_vm5, %v2048_v14, %v2049_v45  ;;  %v7859_v14 = vld [vmem:[%s9757_s1 + $0xc8] sm:$0xff]   ;;  %v9940_v45 = vld [vmem:[#allocation17_spill] sm:$0xff] }
 0x124   : > { %9939 = vst [vmem:[#allocation46_spill] sm:$0xff] %v9278_v49  ;;  %v5955_v24 = vcombine.low %v2047_v0, %v2050_v28  ;;  %v2054_v42 = vrot.slane %v2052_v15, 4  ;;  %v2053_v48 = vsel %vm8389_vm5, %v2051_v18, %v2052_v15  ;;  %v7861_v15 = vld [vmem:[%s9757_s1 + $0xd0] sm:$0xff]   ;;  %v9941_v0 = vld [vmem:[#allocation19_spill] sm:$0xff]  ;;  %v7869_v28 = vld [vmem:[%s9757_s1 + $0xe0] sm:$0xff]  }
 0x125   : > { %v9944_v18 = vld [vmem:[#allocation24_spill] sm:$0xff] }
 0x126   : > { %7090 = vmatpush3.bf16.msra.mxu0 %v7866_v8  ;;  %v2055_v8 = vrot.slane %v7935_v2, 5  ;;  %v7871_v2 = vld [vmem:[%s9757_s1 + $0xe8] sm:$0xff]  }
 0x127   : > { %7155 = vmatprep.subr.bf16.mxu0 %v9261_v38 }
 0x128   : > { %7028 = vmatmul.mubr.bf16.gmra.mrb[16].mxu0 %v9155_v41  ;;  %v2056_v9 = vsel %vm8389_vm5, %v2054_v42, %v2055_v8  ;;  %v7864_v42 = vld [vmem:[%s9757_s1 + $0xd8] sm:$0xff]   ;;  %v9943_v8 = vld [vmem:[#allocation23_spill] sm:$0xff] }
 0x129   : > { %6660 = vmatmul.mubr.bf16.gmra.mrb[48].mxu1 %v9265_v19  ;;  %7031 = vmatprep.mubr.bf16.mxu0 %v9164_v27  ;;  %v5956_v50 = vcombine.low %v2053_v48, %v2056_v9  ;;  %v7875_v48 = vld [vmem:[%s9757_s1 + $0xf8] sm:$0xff]   ;;  %v9945_v9 = vld [vmem:[#allocation26_spill] sm:$0xff] }
 0x12a   : > { %6663 = vmatprep.mubr.bf16.mxu1 %v9269_v39 }
 0x130   : > { %7032 = vmatmul.mubr.bf16.gmra.mrb[20].mxu0 %v9178_v55 }
 0x131   : > { %6664 = vmatmul.mubr.bf16.gmra.mrb[52].mxu1 %v9278_v49  ;;  %7035 = vmatprep.mubr.bf16.mxu0 %v9182_v61 }
 0x132   : > { %6667 = vmatprep.mubr.bf16.mxu1 %v9044_v53 }
 0x138   : > { %7036 = vmatmul.mubr.bf16.gmra.mrb[24].mxu0 %v9190_v25 }
 0x139   : > { %6668 = vmatmul.mubr.bf16.gmra.mrb[56].mxu1 %v9048_v35  ;;  %7039 = vmatprep.mubr.bf16.mxu0 %v9194_v3 }
 0x13a   : > { %6671 = vmatprep.mubr.bf16.mxu1 %v9055_v44 }
 0x140   : > { %7040 = vmatmul.mubr.bf16.gmra.mrb[28].mxu0 %v9209_v57 }
 0x141   : > { %6672 = vmatmul.mubr.bf16.gmra.mrb[60].mxu1 %v9060_v60  ;;  %7043 = vmatprep.mubr.bf16.mxu0 %v9213_v21 }
 0x142   : > { %6691 = vmatprep.mubr.bf16.mxu1 %v5955_v24  ;;  %v7873_v24 = vld [vmem:[%s9757_s1 + $0xf0] sm:$0xff]  }
 0x148   : > { %7044 = vmatmul.mubr.bf16.gmra.mrb[32].mxu0 %v9227_v47 }
 0x149   : > { %6692 = vmatmul.mubr.bf16.vlgmr.msra.gmra.mrb[0].mxu1 %v5956_v50  ;;  %7047 = vmatprep.mubr.bf16.mxu0 %v9231_v17  ;;  %v9946_v50 = vld [vmem:[#allocation28_spill] sm:$0xff] }
 0x14a   : > { %6756 = vmatpush3.bf16.msra.mxu1 %v9078_v33  ;;  %6695 = vmatprep.mubr.bf16.mxu1 %v9940_v45  ;;  %v9942_v33 = vld [vmem:[#allocation20_spill] sm:$0xff]  ;;  %v9947_v45 = vld [vmem:[#allocation30_spill] sm:$0xff] }
 0x14b   : > { %6757 = vmatprep.subr.bf16.mxu1 %v7859_v14 }
 0x14e   : > { %6758 = vmatpush3.bf16.msra.mxu1 %v7859_v14  ;;  %v9344_v14 = vld [vmem:[%s9757_s1 + $0x100] sm:$0xff]  }
 0x14f   : > { %6759 = vmatprep.subr.bf16.mxu1 %v7861_v15 }
 0x150   : > { %7048 = vmatmul.mubr.bf16.gmra.mrb[36].mxu0 %v9245_v20 }
 0x151   : > { %6696 = vmatmul.mubr.bf16.gmra.mrb[4].mxu1 %v9941_v0  ;;  %7051 = vmatprep.mubr.bf16.mxu0 %v9249_v52  ;;  %v9950_v0 = vld [vmem:[#allocation36_spill] sm:$0xff] }
 0x152   : > { %6699 = vmatprep.mubr.bf16.mxu1 %v9942_v33  ;;  %6760 = vmatpush3.bf16.msra.mxu1 %v7861_v15  ;;  %v9948_v15 = vld [vmem:[#allocation33_spill] sm:$0xff] }
 0x153   : > { %6761 = vmatprep.subr.bf16.mxu1 %v7864_v42 }
 0x156   : > { %6762 = vmatpush3.bf16.msra.mxu1 %v7864_v42  ;;  %v9353_v42 = vcombine.low %v9114_v7, %v9096_v46 }
 0x157   : > { %6763 = vmatprep.subr.bf16.mxu1 %v7869_v28 }
 0x158   : > { %7052 = vmatmul.mubr.bf16.gmra.mrb[40].mxu0 %v9265_v19  ;;  %9949 = vst [vmem:[#allocation45_spill] sm:$0xff] %v9353_v42 }
 0x159   : > { %6700 = vmatmul.mubr.bf16.gmra.mrb[8].mxu1 %v9943_v8  ;;  %7055 = vmatprep.mubr.bf16.mxu0 %v9269_v39 }
 0x15a   : > { %6703 = vmatprep.mubr.bf16.mxu1 %v9944_v18  ;;  %6764 = vmatpush3.bf16.msra.mxu1 %v7869_v28  ;;  %v9951_v28 = vld [vmem:[#allocation37_spill] sm:$0xff] }
 0x15b   : > { %6765 = vmatprep.subr.bf16.mxu1 %v7871_v2 }
 0x15e   : > { %6766 = vmatpush3.bf16.msra.mxu1 %v7871_v2  ;;  %v9360_v2 = vld [vmem:[%s7989_s23 + $0x154] sm:$0xf] }
 0x15f   : > { %6767 = vmatprep.subr.bf16.mxu1 %v7873_v24  ;;  %9952 = vst [vmem:[#allocation47_spill] sm:$0xff] %v9360_v2 }
 0x160   : > { %7056 = vmatmul.mubr.bf16.gmra.mrb[44].mxu0 %v9278_v49  ;;  %v9958_v49 = vld [vmem:[#allocation3_spill] sm:$0xff] }
 0x161   : > { %6704 = vmatmul.mubr.bf16.gmra.mrb[12].mxu1 %v9945_v9  ;;  %7059 = vmatprep.mubr.bf16.mxu0 %v9044_v53  ;;  %v9957_v53 = vld [vmem:[#allocation44_spill] sm:$0xff] }
 0x162   : > { %6707 = vmatprep.mubr.bf16.mxu1 %v9946_v50  ;;  %6768 = vmatpush3.bf16.msra.mxu1 %v7873_v24  ;;  %v9363_v24 = vld [vmem:[%s7989_s23 + $0x158] sm:$0xf] }
 0x163   : > { %6769 = vmatprep.subr.bf16.mxu1 %v7875_v48  ;;  %9953 = vst [vmem:[#allocation32_spill] sm:$0xff] %v9363_v24  ;;  %v6090_v12 = vcombine.low %v9360_v2, %v9363_v24 }
 0x166   : > { %6770 = vmatpush3.bf16.msra.mxu1 %v7875_v48  ;;  %v9367_v48 = vcombine.low %v9117_v16, %v9135_v10 }
 0x167   : > { %7235 = vmatprep.subr.bf16.mxu1 %v9344_v14 }
 0x168   : > { %7060 = vmatmul.mubr.bf16.gmra.mrb[48].mxu0 %v9048_v35  ;;  %9954 = vst [vmem:[#allocation17_spill] sm:$0xff] %v9367_v48 }
 0x169   : > { %6708 = vmatmul.mubr.bf16.gmra.mrb[16].mxu1 %v9947_v45  ;;  %7063 = vmatprep.mubr.bf16.mxu0 %v9055_v44  ;;  %v9956_v44 = vld [vmem:[#allocation42_spill] sm:$0xff] }
 0x16a   : > { %6711 = vmatprep.mubr.bf16.mxu1 %v9948_v15 }
 0x170   : > { %7064 = vmatmul.mubr.bf16.gmra.mrb[52].mxu0 %v9060_v60  ;;  %v9374_v60 = vld [vmem:[%s7989_s23 + $0x15c] sm:$0xf] }
 0x171   : > { %6712 = vmatmul.mubr.bf16.gmra.mrb[20].mxu1 %v9950_v0  ;;  %7067 = vmatprep.mubr.bf16.mxu0 %v9353_v42  ;;  %v9377_v42 = vld [vmem:[%s7989_s23 + $0x160] sm:$0xf] }
 0x172   : > { %6715 = vmatprep.mubr.bf16.mxu1 %v9951_v28  ;;  %v6091_v35 = vcombine.low %v9374_v60, %v9377_v42 }
 0x178   : > { %7068 = vmatmul.mubr.bf16.gmra.mrb[56].mxu0 %v9367_v48  ;;  %v9959_v48 = vld [vmem:[#allocation4_spill] sm:$0xff] }
 0x179   : > { %6716 = vmatmul.mubr.bf16.gmra.mrb[24].mxu1 %v9955_v43  ;;  %7071 = vmatprep.mubr.bf16.mxu0 %v6090_v12  ;;  %v7872_v12 = vld [vmem:[%s9757_s1 + $0x208] sm:$0xff]  }
 0x17a   : > { %6719 = vmatprep.mubr.bf16.mxu1 %v9956_v44  ;;  %v9960_v44 = vld [vmem:[#allocation5_spill] sm:$0xff] }
 0x180   : > { %7072 = vmatmul.mubr.bf16.gmra.mrb[60].mxu0 %v6091_v35  ;;  %v7874_v35 = vld [vmem:[%s9757_s1 + $0x210] sm:$0xff]  }
 0x181   : > { %6720 = vmatmul.mubr.bf16.gmra.mrb[28].mxu1 %v9957_v53  ;;  %7091 = vmatprep.mubr.bf16.mxu0 %v9958_v49  ;;  %v7876_v49 = vld [vmem:[%s9757_s1 + $0x218] sm:$0xff]  }
 0x182   : > { %6723 = vmatprep.mubr.bf16.mxu1 %v8857_v23 }
 0x188   : > { %7092 = vmatmul.mubr.bf16.vlgmr.msra.gmra.mrb[0].mxu0 %v9959_v48  ;;  %v9961_v48 = vld [vmem:[#allocation6_spill] sm:$0xff] }
 0x189   : > { %6724 = vmatmul.mubr.bf16.gmra.mrb[32].mxu1 %v8884_v62  ;;  %7156 = vmatpush3.bf16.msra.mxu0 %v9261_v38  ;;  %v9962_v38 = vld [vmem:[#allocation7_spill] sm:$0xff] }
 0x18a   : > { %6727 = vmatprep.mubr.bf16.mxu1 %v8898_v11  ;;  %7095 = vmatprep.mubr.bf16.mxu0 %v9960_v44  ;;  %v7877_v44 = vld [vmem:[%s9757_s1 + $0x220] sm:$0xff]   ;;  %v9963_v11 = vld [vmem:[#allocation8_spill] sm:$0xff] }
 0x18b   : > { %7157 = vmatprep.subr.bf16.mxu0 %v7872_v12 }
 0x18d   : > { %7158 = vmatpush3.bf16.msra.mxu0 %v7872_v12  ;;  %v7878_v12 = vld [vmem:[%s9757_s1 + $0x228] sm:$0xff]  }
 0x18e   : > { %7159 = vmatprep.subr.bf16.mxu0 %v7874_v35 }
 0x190   : > { %7096 = vmatmul.mubr.bf16.gmra.mrb[4].mxu0 %v9961_v48  ;;  %v9964_v48 = vld [vmem:[#allocation9_spill] sm:$0xff] }
 0x191   : > { %6728 = vmatmul.mubr.bf16.gmra.mrb[36].mxu1 %v8922_v54  ;;  %7099 = vmatprep.mubr.bf16.mxu0 %v9962_v38  ;;  %v9965_v38 = vld [vmem:[#allocation10_spill] sm:$0xff] }
 0x192   : > { %6731 = vmatprep.mubr.bf16.mxu1 %v8926_v22  ;;  %7160 = vmatpush3.bf16.msra.mxu0 %v7874_v35  ;;  %v7879_v35 = vld [vmem:[%s9757_s1 + $0x230] sm:$0xff]  }
 0x193   : > { %7161 = vmatprep.subr.bf16.mxu0 %v7876_v49 }
 0x196   : > { %7162 = vmatpush3.bf16.msra.mxu0 %v7876_v49  ;;  %v7880_v49 = vld [vmem:[%s9757_s1 + $0x238] sm:$0xff]  }
 0x197   : > { %7163 = vmatprep.subr.bf16.mxu0 %v7877_v44 }
 0x198   : > { %7100 = vmatmul.mubr.bf16.gmra.mrb[8].mxu0 %v9963_v11  ;;  %v9966_v11 = vld [vmem:[#allocation11_spill] sm:$0xff] }
 0x199   : > { %6732 = vmatmul.mubr.bf16.gmra.mrb[40].mxu1 %v8961_v5  ;;  %7103 = vmatprep.mubr.bf16.mxu0 %v9964_v48  ;;  %v9969_v48 = vld [vmem:[#allocation14_spill] sm:$0xff] }
 0x19a   : > { %6735 = vmatprep.mubr.bf16.mxu1 %v8963_v63  ;;  %7164 = vmatpush3.bf16.msra.mxu0 %v7877_v44  ;;  %v9967_v44 = vld [vmem:[#allocation12_spill] sm:$0xff] }
 0x19b   : > { %7165 = vmatprep.subr.bf16.mxu0 %v7878_v12 }
 0x19e   : > { %7166 = vmatpush3.bf16.msra.mxu0 %v7878_v12  ;;  %v9968_v12 = vld [vmem:[#allocation13_spill] sm:$0xff] }
 0x19f   : > { %7167 = vmatprep.subr.bf16.mxu0 %v7879_v35 }
 0x1a0   : > { %7104 = vmatmul.mubr.bf16.gmra.mrb[12].mxu0 %v9965_v38  ;;  %v9970_v38 = vld [vmem:[#allocation16_spill] sm:$0xff] }
 0x1a1   : > { %6736 = vmatmul.mubr.bf16.gmra.mrb[44].mxu1 %v8996_v4  ;;  %7107 = vmatprep.mubr.bf16.mxu0 %v9966_v11  ;;  %v9971_v11 = vld [vmem:[#allocation63_spill] sm:$0xff] }
 0x1a2   : > { %6739 = vmatprep.mubr.bf16.mxu1 %v8998_v37  ;;  %7168 = vmatpush3.bf16.msra.mxu0 %v7879_v35  ;;  %v9972_v37 = vld [vmem:[#allocation18_spill] sm:$0xff]  ;;  %v9973_v35 = vld [vmem:[#allocation21_spill] sm:$0xff] }
 0x1a3   : > { %7169 = vmatprep.subr.bf16.mxu0 %v7880_v49 }
 0x1a6   : > { %7170 = vmatpush3.bf16.msra.mxu0 %v7880_v49  ;;  %v9974_v49 = vld [vmem:[#allocation65_spill] sm:$0xff] }
 0x1a8   : > { %7108 = vmatmul.mubr.bf16.gmra.mrb[16].mxu0 %v9967_v44  ;;  %v9975_v44 = vld [vmem:[#allocation22_spill] sm:$0xff] }
 0x1a9   : > { %6740 = vmatmul.mubr.bf16.gmra.mrb[48].mxu1 %v9031_v1  ;;  %7111 = vmatprep.mubr.bf16.mxu0 %v9968_v12  ;;  %v9976_v12 = vld [vmem:[#allocation25_spill] sm:$0xff] }
 0x1aa   : > { %6743 = vmatprep.mubr.bf16.mxu1 %v9033_v51  ;;  %v9985_v51 = vld [vmem:[#allocation39_spill] sm:$0xff] }
 0x1b0   : > { %7112 = vmatmul.mubr.bf16.gmra.mrb[20].mxu0 %v9969_v48  ;;  %v9977_v48 = vld [vmem:[#allocation51_spill] sm:$0xff] }
 0x1b1   : > { %6744 = vmatmul.mubr.bf16.gmra.mrb[52].mxu1 %v9084_v29  ;;  %7115 = vmatprep.mubr.bf16.mxu0 %v9970_v38  ;;  %v9978_v29 = vld [vmem:[#allocation27_spill] sm:$0xff]  ;;  %v9979_v38 = vld [vmem:[#allocation52_spill] sm:$0xff] }
 0x1b2   : > { %6747 = vmatprep.mubr.bf16.mxu1 %v9971_v11  ;;  %v9980_v11 = vld [vmem:[#allocation29_spill] sm:$0xff] }
 0x1b8   : > { %7116 = vmatmul.mubr.bf16.gmra.mrb[24].mxu0 %v9972_v37  ;;  %v7937_v37 = vld [vmem:[%s9757_s1 + $0x108] sm:$0xff]  }
 0x1b9   : > { %6748 = vmatmul.mubr.bf16.gmra.mrb[56].mxu1 %v9123_v40  ;;  %7119 = vmatprep.mubr.bf16.mxu0 %v9973_v35  ;;  %v3242_v40 = vshrl.u32 %v9096_v46, 16 }
 0x1ba   : > { %6751 = vmatprep.mubr.bf16.mxu1 %v9974_v49  ;;  %v3238_v49 = vshll.u32 %v9096_v46, 16  ;;  %v3252_v46 = vshrl.u32 %v9117_v16, 16 }
 0x1c0   : > { %7120 = vmatmul.mubr.bf16.gmra.mrb[28].mxu0 %v9975_v44 }
 0x1c1   : > { %6752 = vmatmul.mubr.bf16.gmra.mrb[60].mxu1 %v9157_v59  ;;  %7123 = vmatprep.mubr.bf16.mxu0 %v9976_v12  ;;  %v9981_v59 = vld [vmem:[#allocation31_spill] sm:$0xff] }
 0x1c2   : > { %6771 = vmatprep.mubr.bf16.mxu1 %v9977_v48  ;;  %v7938_v48 = vld [vmem:[%s9757_s1 + $0x110] sm:$0xff]  }
 0x1c8   : > { %7124 = vmatmul.mubr.bf16.gmra.mrb[32].mxu0 %v9978_v29 }
 0x1c9   : > { %6772 = vmatmul.mubr.bf16.vlgmr.msra.gmra.mrb[0].mxu1 %v9979_v38  ;;  %7127 = vmatprep.mubr.bf16.mxu0 %v9980_v11  ;;  %v9982_v38 = vld [vmem:[#allocation34_spill] sm:$0xff] }
 0x1ca   : > { %7243 = vmatpush3.bf16.msra.mxu1 %v9344_v14  ;;  %6775 = vmatprep.mubr.bf16.mxu1 %v8968_v13  ;;  %v7939_v13 = vld [vmem:[%s9757_s1 + $0x118] sm:$0xff]   ;;  %v7940_v14 = vld [vmem:[%s9757_s1 + $0x120] sm:$0xff]  }
 0x1cb   : > { %7236 = vmatprep.subr.bf16.mxu1 %v7937_v37 }
 0x1ce   : > { %7244 = vmatpush3.bf16.msra.mxu1 %v7937_v37  ;;  %v9983_v37 = vld [vmem:[#allocation35_spill] sm:$0xff] }
 0x1cf   : > { %7237 = vmatprep.subr.bf16.mxu1 %v7938_v48 }
 0x1d0   : > { %7128 = vmatmul.mubr.bf16.gmra.mrb[36].mxu0 %v9981_v59  ;;  %v3262_v59 = vshrl.u32 %v9135_v10, 16 }
 0x1d1   : > { %6776 = vmatmul.mubr.bf16.gmra.mrb[4].mxu1 %v8994_v58  ;;  %7131 = vmatprep.mubr.bf16.mxu0 %v9982_v38  ;;  %v9984_v58 = vld [vmem:[#allocation38_spill] sm:$0xff]  ;;  %v3240_v38 = vrot.slane %v3238_v49, 5  ;;  %v9986_v49 = vld [vmem:[#allocation41_spill] sm:$0xff] }
 0x1d2   : > { %6779 = vmatprep.mubr.bf16.mxu1 %v9003_v26  ;;  %7245 = vmatpush3.bf16.msra.mxu1 %v7938_v48  ;;  %v3229_v26 = vshrl.u32 %v9114_v7, 16  ;;  %v3232_v48 = vshll.u32 %v9114_v7, 16  ;;  %v7942_v7 = vld [vmem:[%s9757_s1 + $0x130] sm:$0xff]  }
 0x1d3   : > { %7238 = vmatprep.subr.bf16.mxu1 %v7939_v13 }
 0x1d6   : > { %7246 = vmatpush3.bf16.msra.mxu1 %v7939_v13  ;;  %v7941_v13 = vld [vmem:[%s9757_s1 + $0x128] sm:$0xff]  }
 0x1d7   : > { %7239 = vmatprep.subr.bf16.mxu1 %v7940_v14 }
 0x1d8   : > { %7132 = vmatmul.mubr.bf16.gmra.mrb[40].mxu0 %v9983_v37  ;;  %v3231_v37 = vrot.slane %v3229_v26, 4 }
 0x1d9   : > { %6780 = vmatmul.mubr.bf16.gmra.mrb[8].mxu1 %v9029_v34  ;;  %7135 = vmatprep.mubr.bf16.mxu0 %v9984_v58  ;;  %v3234_v34 = vrot.slane %v3232_v48, 5  ;;  %v3244_v58 = vrot.slane %v3242_v40, 4  ;;  %v4569_v48 = vshrl.u32 %v9360_v2, 16 }
 0x1da   : > { %6783 = vmatprep.mubr.bf16.mxu1 %v9038_v36  ;;  %7247 = vmatpush3.bf16.msra.mxu1 %v7940_v14  ;;  %v3248_v36 = vshll.u32 %v9117_v16, 16  ;;  %v3258_v14 = vshll.u32 %v9135_v10, 16  ;;  %v4578_v16 = vshll.u32 %v9363_v24, 16  ;;  %v7943_v10 = vld [vmem:[%s9757_s1 + $0x138] sm:$0xff]  }
 0x1db   : > { %7240 = vmatprep.subr.bf16.mxu1 %v7941_v13  ;;  %v3235_v40 = vor.u32 %v3234_v34, %v3231_v37  ;;  %v3245_v26 = vor.u32 %v3244_v58, %v3240_v38  ;;  %v3264_v58 = vrot.slane %v3262_v59, 4  ;;  %v4571_v11 = vrot.slane %v4569_v48, 4  ;;  %v9988_v59 = vld [vmem:[#allocation48_spill] sm:$0xff] }
 0x1dc   : > { %v3260_v37 = vrot.slane %v3258_v14, 5  ;;  %v4580_v29 = vrot.slane %v4578_v16, 5 }
 0x1dd   : > { %v3236_v34 = vrot.slane %v3235_v40, 4  ;;  %v3246_v1 = vrot.slane %v3245_v26, 4  ;;  %v4588_v40 = vshll.u32 %v9374_v60, 16  ;;  %v4598_v26 = vshll.u32 %v9377_v42, 16 }
 0x1de   : > { %7248 = vmatpush3.bf16.msra.mxu1 %v7941_v13  ;;  %v4572_v13 = vshll.u32 %v9360_v2, 16  ;;  %v3265_v63 = vor.u32 %v3264_v58, %v3260_v37 }
 0x1df   : > { %7241 = vmatprep.subr.bf16.mxu1 %v7942_v7  ;;  %v3241_v14 = vsel %vm8062_vm2, %v3236_v34, %v3240_v38  ;;  %v4600_v38 = vrot.slane %v4598_v26, 5  ;;  %v10020_v26 = vld [vmem:[#allocation66_spill] sm:$0xff] }
 0x1e0   : > { %7136 = vmatmul.mubr.bf16.gmra.mrb[44].mxu0 %v9985_v51  ;;  %v4582_v51 = vshrl.u32 %v9363_v24, 16  ;;  %v4574_v2 = vrot.slane %v4572_v13, 5  ;;  %v9987_v24 = vld [vmem:[#allocation43_spill] sm:$0xff]  ;;  %v3266_v13 = vrot.slane %v3265_v63, 4 }
 0x1e1   : > { %6784 = vmatmul.mubr.bf16.gmra.mrb[12].mxu1 %v9082_v31  ;;  %7139 = vmatprep.mubr.bf16.mxu0 %v9986_v49  ;;  %v3250_v31 = vrot.slane %v3248_v36, 5  ;;  %v3254_v49 = vrot.slane %v3252_v46, 4  ;;  %v3268_v36 = vshll.u32 %v9151_v56, 16 }
 0x1e2   : > { %6787 = vmatprep.mubr.bf16.mxu1 %v9091_v32  ;;  %7249 = vmatpush3.bf16.msra.mxu1 %v7942_v7  ;;  %v4584_v4 = vrot.slane %v4582_v51, 4  ;;  %v4592_v32 = vshrl.u32 %v9374_v60, 16  ;;  %v4602_v7 = vshrl.u32 %v9377_v42, 16 }
 0x1e3   : > { %7242 = vmatprep.subr.bf16.mxu1 %v7943_v10  ;;  %v3255_v12 = vor.u32 %v3254_v49, %v3250_v31  ;;  %v3251_v51 = vsel %vm8062_vm2, %v3246_v1, %v3250_v31  ;;  %v4575_v49 = vor.u32 %v4574_v2, %v4571_v11  ;;  %v3270_v16 = vrot.slane %v3268_v36, 5  ;;  %v9505_v31 = vld [vmem:[%s7989_s23 + $0x164] sm:$0x1] }
 0x1e4   : > { %v4585_v48 = vor.u32 %v4584_v4, %v4580_v29  ;;  %v9502_v56 = vcombine.low %v3241_v14, %v3251_v51  ;;  %v4594_v58 = vrot.slane %v4592_v32, 4  ;;  %v4604_v34 = vrot.slane %v4602_v7, 4 }
 0x1e5   : > { %v3271_v63 = vsel %vm8062_vm2, %v3266_v13, %v3270_v16  ;;  %v4608_v11 = vshll.u32 %v9505_v31, 16  ;;  %v10023_v13 = vld [vmem:[#allocation48_spill] sm:$0xff] }
 0x1e6   : > { %7250 = vmatpush3.bf16.msra.mxu1 %v7943_v10  ;;  %v4590_v10 = vrot.slane %v4588_v40, 5  ;;  %v4586_v1 = vrot.slane %v4585_v48, 4  ;;  %v4605_v2 = vor.u32 %v4604_v34, %v4600_v38  ;;  %v5044_v40 = vrot.slane %v9374_v60, 5  ;;  %v10022_v48 = vld [vmem:[#allocation67_spill] sm:$0xff] }
 0x1e7   : > { %v4610_v14 = vrot.slane %v4608_v11, 5  ;;  %v5050_v60 = vrot.slane %v9505_v31, 5 }
 0x1e8   : > { %7140 = vmatmul.mubr.bf16.gmra.mrb[48].mxu0 %v9987_v24  ;;  %v9990_v24 = vld [vmem:[#allocation49_spill] sm:$0xff]  ;;  %v4595_v4 = vor.u32 %v4594_v58, %v4590_v10  ;;  %v4591_v32 = vsel %vm8062_vm2, %v4586_v1, %v4590_v10  ;;  %v4606_v36 = vrot.slane %v4605_v2, 4  ;;  %v5046_v34 = vrot.slane %v5044_v40, 4 }
 0x1e9   : > { %6788 = vmatmul.mubr.bf16.gmra.mrb[16].mxu1 %v9121_v6  ;;  %7143 = vmatprep.mubr.bf16.mxu0 %v9988_v59  ;;  %v3256_v6 = vrot.slane %v3255_v12, 4  ;;  %v4576_v59 = vrot.slane %v4575_v49, 4  ;;  %v10021_v49 = vld [vmem:[#allocation43_spill] sm:$0xff] }
 0x1ea   : > { %6791 = vmatprep.mubr.bf16.mxu1 %v9130_v30  ;;  %v4596_v7 = vrot.slane %v4595_v4, 4 }
 0x1eb   : > { %v3261_v30 = vsel %vm8062_vm2, %v3256_v6, %v3260_v37  ;;  %v4581_v12 = vsel %vm8062_vm2, %v4576_v59, %v4580_v29  ;;  %v4611_v29 = vsel %vm8062_vm2, %v4606_v36, %v4610_v14  ;;  %v5047_v6 = vrot.slane %v9377_v42, 5 }
 0x1ec   : > { %v9520_v37 = vcombine.low %v3261_v30, %v3271_v63  ;;  %v10025_v30 = vld [vmem:[#allocation68_spill] sm:$0xff] }
 0x1ed   : > { %v5049_v1 = vrot.slane %v5047_v6, 4  ;;  %v5048_v42 = vsel %vm8389_vm5, %v5046_v34, %v5047_v6 }
 0x1ef   : > { %v5051_v63 = vsel %vm8389_vm5, %v5049_v1, %v5050_v60 }
 0x1f0   : > { %7144 = vmatmul.mubr.bf16.gmra.mrb[52].mxu0 %v9990_v24  ;;  %v6144_v4 = vcombine.low %v5048_v42, %v5051_v63 }
 0x1f1   : > { %6792 = vmatmul.mubr.bf16.gmra.mrb[20].mxu1 %v9155_v41  ;;  %7147 = vmatprep.mubr.bf16.mxu0 %v9502_v56  ;;  %v6116_v41 = vcombine.low %v4581_v12, %v4591_v32 }
 0x1f2   : > { %6795 = vmatprep.mubr.bf16.mxu1 %v9164_v27  ;;  %v4601_v27 = vsel %vm8062_vm2, %v4596_v7, %v4600_v38 }
 0x1f3   : > { %v6117_v59 = vcombine.low %v4601_v27, %v4611_v29 }
 0x1f8   : > { %7148 = vmatmul.mubr.bf16.gmra.mrb[56].mxu0 %v9520_v37 }
 0x1f9   : > { %6796 = vmatmul.mubr.bf16.gmra.mrb[24].mxu1 %v9178_v55  ;;  %7151 = vmatprep.mubr.bf16.mxu0 %v6116_v41  ;;  %v9991_v55 = vld [vmem:[#allocation46_spill] sm:$0xff] }
 0x1fa   : > { %6799 = vmatprep.mubr.bf16.mxu1 %v9182_v61  ;;  %v9992_v61 = vld [vmem:[#allocation42_spill] sm:$0xff] }
 0x200   : > { %7152 = vmatmul.mubr.bf16.gmra.mrb[60].mxu0 %v6117_v59 }
 0x201   : > { %6800 = vmatmul.mubr.bf16.gmra.mrb[28].mxu1 %v9190_v25  ;;  %7171 = vmatprep.mubr.bf16.mxu0 %v9942_v33  ;;  %v9993_v25 = vld [vmem:[#allocation58_spill] sm:$0xff] }
 0x202   : > { %6803 = vmatprep.mubr.bf16.mxu1 %v9194_v3  ;;  %v9994_v3 = vld [vmem:[#allocation59_spill] sm:$0xff]  ;;  %v10010_v33 = vld [vmem:[#allocation62_spill] sm:$0xff] }
 0x208   : > { %7172 = vmatmul.mubr.bf16.vlgmr.msra.gmra.mrb[0].mxu0 %v9943_v8  ;;  %v10011_v8 = vld [vmem:[#allocation35_spill] sm:$0xff] }
 0x209   : > { %6804 = vmatmul.mubr.bf16.gmra.mrb[32].mxu1 %v9209_v57  ;;  %7175 = vmatprep.mubr.bf16.mxu0 %v9944_v18  ;;  %v9995_v57 = vld [vmem:[#allocation60_spill] sm:$0xff]  ;;  %v10012_v18 = vld [vmem:[#allocation63_spill] sm:$0xff] }
 0x20a   : > { %6807 = vmatprep.mubr.bf16.mxu1 %v9213_v21  ;;  %v9996_v21 = vld [vmem:[#allocation61_spill] sm:$0xff] }
 0x210   : > { %7176 = vmatmul.mubr.bf16.gmra.mrb[4].mxu0 %v9945_v9  ;;  %v10013_v9 = vld [vmem:[#allocation38_spill] sm:$0xff] }
 0x211   : > { %6808 = vmatmul.mubr.bf16.gmra.mrb[36].mxu1 %v9227_v47  ;;  %7179 = vmatprep.mubr.bf16.mxu0 %v9946_v50  ;;  %v9997_v47 = vld [vmem:[#allocation50_spill] sm:$0xff]  ;;  %v10014_v50 = vld [vmem:[#allocation64_spill] sm:$0xff] }
 0x212   : > { %6811 = vmatprep.mubr.bf16.mxu1 %v9231_v17  ;;  %v9999_v17 = vld [vmem:[#allocation17_spill] sm:$0xff] }
 0x218   : > { %7180 = vmatmul.mubr.bf16.gmra.mrb[8].mxu0 %v9947_v45  ;;  %v10015_v45 = vld [vmem:[#allocation39_spill] sm:$0xff] }
 0x219   : > { %6812 = vmatmul.mubr.bf16.gmra.mrb[40].mxu1 %v9245_v20  ;;  %7183 = vmatprep.mubr.bf16.mxu0 %v9948_v15  ;;  %v10003_v20 = vld [vmem:[#allocation27_spill] sm:$0xff]  ;;  %v10016_v15 = vld [vmem:[#allocation65_spill] sm:$0xff] }
 0x21a   : > { %6815 = vmatprep.mubr.bf16.mxu1 %v9249_v52  ;;  %v10004_v52 = vld [vmem:[#allocation55_spill] sm:$0xff] }
 0x220   : > { %7184 = vmatmul.mubr.bf16.gmra.mrb[12].mxu0 %v9950_v0  ;;  %v10017_v0 = vld [vmem:[#allocation41_spill] sm:$0xff] }
 0x221   : > { %6816 = vmatmul.mubr.bf16.gmra.mrb[44].mxu1 %v9265_v19  ;;  %7187 = vmatprep.mubr.bf16.mxu0 %v9951_v28  ;;  %v10006_v19 = vld [vmem:[#allocation56_spill] sm:$0xff] }
 0x222   : > { %6819 = vmatprep.mubr.bf16.mxu1 %v9269_v39  ;;  %v10008_v39 = vld [vmem:[#allocation57_spill] sm:$0xff]  ;;  %v10018_v28 = vld [vmem:[#allocation32_spill] sm:$0xff] }
 0x228   : > { %7188 = vmatmul.mubr.bf16.gmra.mrb[16].mxu0 %v9955_v43  ;;  %v9998_v43 = vld [vmem:[#allocation45_spill] sm:$0xff] }
 0x229   : > { %6820 = vmatmul.mubr.bf16.gmra.mrb[48].mxu1 %v9991_v55  ;;  %7191 = vmatprep.mubr.bf16.mxu0 %v9992_v61 }
 0x22a   : > { %6823 = vmatprep.mubr.bf16.mxu1 %v9993_v25 }
 0x230   : > { %7192 = vmatmul.mubr.bf16.gmra.mrb[20].mxu0 %v9957_v53  ;;  %v10002_v53 = vld [vmem:[#allocation54_spill] sm:$0xff] }
 0x231   : > { %6824 = vmatmul.mubr.bf16.gmra.mrb[52].mxu1 %v9994_v3  ;;  %7195 = vmatprep.mubr.bf16.mxu0 %v8857_v23  ;;  %v10000_v23 = vld [vmem:[#allocation53_spill] sm:$0xff] }
 0x232   : > { %6827 = vmatprep.mubr.bf16.mxu1 %v9995_v57 }
 0x238   : > { %7196 = vmatmul.mubr.bf16.gmra.mrb[24].mxu0 %v8884_v62  ;;  %v10001_v62 = vld [vmem:[#allocation25_spill] sm:$0xff] }
 0x239   : > { %6828 = vmatmul.mubr.bf16.gmra.mrb[56].mxu1 %v9996_v21  ;;  %7199 = vmatprep.mubr.bf16.mxu0 %v9997_v47 }
 0x23a   : > { %6831 = vmatprep.mubr.bf16.mxu1 %v9998_v43 }
 0x240   : > { %7200 = vmatmul.mubr.bf16.gmra.mrb[28].mxu0 %v8922_v54  ;;  %v10005_v54 = vld [vmem:[#allocation29_spill] sm:$0xff] }
 0x241   : > { %6832 = vmatmul.mubr.bf16.gmra.mrb[60].mxu1 %v9999_v17  ;;  %7203 = vmatprep.mubr.bf16.mxu0 %v8926_v22  ;;  %v10007_v22 = vld [vmem:[#allocation31_spill] sm:$0xff] }
 0x242   : > { %6883 = vmatprep.mubr.bf16.mxu1 %v9973_v35  ;;  %v5041_v35 = vrot.slane %v10018_v28, 5 }
 0x244   : > { %v5043_v51 = vrot.slane %v5041_v35, 4 }
 0x246   : > { %v5045_v58 = vsel %vm8389_vm5, %v5043_v51, %v5044_v40 }
 0x248   : > { %7204 = vmatmul.mubr.bf16.gmra.mrb[32].mxu0 %v8961_v5  ;;  %v10009_v5 = vld [vmem:[#allocation34_spill] sm:$0xff] }
 0x249   : > { %6884 = vmatmul.mubr.bf16.vlgmr.msra.gmra.mrb[32].mxu1 %v9975_v44  ;;  %7207 = vmatprep.mubr.bf16.mxu0 %v10000_v23  ;;  %v10019_v44 = vld [vmem:[#allocation47_spill] sm:$0xff] }
 0x24a   : > { %6887 = vmatprep.mubr.bf16.mxu1 %v10001_v62  ;;  %v6126_v46 = vrot.slane %v10019_v44, 9 }
 0x24c   : > { %v5042_v10 = vsel %vm8389_vm5, %v6126_v46, %v5041_v35 }
 0x24d   : > { %v6143_v38 = vcombine.low %v5042_v10, %v5045_v58 }
 0x250   : > { %7208 = vmatmul.mubr.bf16.gmra.mrb[36].mxu0 %v10002_v53 }
 0x251   : > { %6888 = vmatmul.mubr.bf16.gmra.mrb[36].mxu1 %v10003_v20  ;;  %7211 = vmatprep.mubr.bf16.mxu0 %v10004_v52 }
 0x252   : > { %6891 = vmatprep.mubr.bf16.mxu1 %v10005_v54 }
 0x258   : > { %7212 = vmatmul.mubr.bf16.gmra.mrb[40].mxu0 %v10006_v19 }
 0x259   : > { %6892 = vmatmul.mubr.bf16.gmra.mrb[40].mxu1 %v10007_v22  ;;  %7215 = vmatprep.mubr.bf16.mxu0 %v10008_v39 }
 0x25a   : > { %6895 = vmatprep.mubr.bf16.mxu1 %v10009_v5 }
 0x260   : > { %7216 = vmatmul.mubr.bf16.gmra.mrb[44].mxu0 %v10010_v33 }
 0x261   : > { %6896 = vmatmul.mubr.bf16.gmra.mrb[44].mxu1 %v10011_v8  ;;  %7219 = vmatprep.mubr.bf16.mxu0 %v10012_v18 }
 0x262   : > { %6899 = vmatprep.mubr.bf16.mxu1 %v10013_v9 }
 0x268   : > { %7220 = vmatmul.mubr.bf16.gmra.mrb[48].mxu0 %v10014_v50 }
 0x269   : > { %6900 = vmatmul.mubr.bf16.gmra.mrb[48].mxu1 %v10015_v45  ;;  %7223 = vmatprep.mubr.bf16.mxu0 %v10016_v15 }
 0x26a   : > { %6903 = vmatprep.mubr.bf16.mxu1 %v10017_v0 }
 0x270   : > { %7224 = vmatmul.mubr.bf16.gmra.mrb[52].mxu0 %v10020_v26 }
 0x271   : > { %6904 = vmatmul.mubr.bf16.gmra.mrb[52].mxu1 %v10021_v49  ;;  %7227 = vmatprep.mubr.bf16.mxu0 %v10022_v48 }
 0x272   : > { %6907 = vmatprep.mubr.bf16.mxu1 %v10023_v13 }
 0x278   : > { %7228 = vmatmul.mubr.bf16.gmra.mrb[56].mxu0 %v10025_v30 }
 0x279   : > { %6908 = vmatmul.mubr.bf16.gmra.mrb[56].mxu1 %v9990_v24  ;;  %7231 = vmatprep.mubr.bf16.mxu0 %v6143_v38 }
 0x27a   : > { %6911 = vmatprep.mubr.bf16.mxu1 %v9502_v56 }
 0x280   : > { %7232 = vmatmul.mubr.bf16.gmra.mrb[60].mxu0 %v6144_v4 }
 0x281   : > { %6912 = vmatmul.mubr.bf16.gmra.mrb[60].mxu1 %v9520_v37 }
 0x29c   : > { %v6773_v2 = vpop.f32.mrb[0].mxu1 }
 0x29d   : > { %v2909_v11 = vpop.f32.mrb[1].mxu1 }
 0x29e   : > { %v6774_v31 = vpop.f32.mrb[2].mxu1 }
 0x29f   : > { %v2912_v12 = vpop.f32.mrb[3].mxu1 }
 0x2a4   : > { %v6777_v32 = vpop.f32.mrb[4].mxu1 }
 0x2a5   : > { %v2925_v41 = vpop.f32.mrb[5].mxu1 }
 0x2a6   : > { %v6778_v24 = vpop.f32.mrb[6].mxu1 }
 0x2a7   : > { %v2928_v7 = vpop.f32.mrb[7].mxu1 }
 0x2ac   : > { %v9605_v36 = vpop.f32.mrb[8].mxu1 }
 0x2ad   : > { %v9607_v14 = vpop.f32.mrb[9].mxu1 }
 0x2ae   : > { %v9609_v27 = vpop.f32.mrb[10].mxu1 }
 0x2af   : > { %v9611_v29 = vpop.f32.mrb[11].mxu1 }
 0x2b4   : > { %v9613_v56 = vpop.f32.mrb[12].mxu1 }
 0x2b5   : > { %v9615_v59 = vpop.f32.mrb[13].mxu1 }
 0x2b6   : > { %v9617_v37 = vpop.f32.mrb[14].mxu1 }
 0x2b7   : > { %v9619_v55 = vpop.f32.mrb[15].mxu1 }
 0x2bc   : > { %v9621_v61 = vpop.f32.mrb[16].mxu1 }
 0x2bd   : > { %v9623_v25 = vpop.f32.mrb[17].mxu1 }
 0x2be   : > { %v9625_v3 = vpop.f32.mrb[18].mxu1 }
 0x2bf   : > { %v9627_v57 = vpop.f32.mrb[19].mxu1 }
 0x2c4   : > { %v9629_v21 = vpop.f32.mrb[20].mxu1 }
 0x2c5   : > { %v9631_v47 = vpop.f32.mrb[21].mxu1 }
 0x2c6   : > { %v9633_v43 = vpop.f32.mrb[22].mxu1 }
 0x2c7   : > { %v9635_v17 = vpop.f32.mrb[23].mxu1 }
 0x2cc   : > { %v9637_v23 = vpop.f32.mrb[24].mxu1 }
 0x2cd   : > { %v9639_v62 = vpop.f32.mrb[25].mxu1 }
 0x2ce   : > { %v9641_v53 = vpop.f32.mrb[26].mxu1 }
 0x2cf   : > { %v9643_v20 = vpop.f32.mrb[27].mxu1 }
 0x2d4   : > { %v9645_v52 = vpop.f32.mrb[28].mxu1 }
 0x2d5   : > { %v9647_v54 = vpop.f32.mrb[29].mxu1 }
 0x2d6   : > { %v9649_v19 = vpop.f32.mrb[30].mxu1 }
 0x2d7   : > { %v9651_v22 = vpop.f32.mrb[31].mxu1 }
 0x2db   : > { %v7173_v39 = vpop.f32.mrb[0].mxu0 }
 0x2dc   : > { %v7251_v5 = vadd.f32 %v7173_v39, %v6773_v2  ;;  %v5159_v33 = vpop.f32.mrb[1].mxu0 }
 0x2dd   : > { %v7252_v8 = vadd.f32 %v5159_v33, %v2909_v11  ;;  %v7174_v18 = vpop.f32.mrb[2].mxu0 }
 0x2de   : > { %5480 = vst [vmem:[%s7994_s26 + $0x10] sm:$0xff] %v7251_v5  ;;  %v7253_v9 = vadd.f32 %v7174_v18, %v6774_v31  ;;  %v5162_v50 = vpop.f32.mrb[3].mxu0  ;;  %v5617_v35 = vmul.f32 %v7251_v5, %v7251_v5 }
 0x2df   : > { %5478 = vst [vmem:[%s7994_s26] sm:$0xff] %v7252_v8  ;;  %v7254_v45 = vadd.f32 %v5162_v50, %v2912_v12  ;;  %v5615_v15 = vmul.f32 %v7252_v8, %v7252_v8 }
 0x2e0   : > { %5481 = vst [vmem:[%s7994_s26 + $0x18] sm:$0xff] %v7253_v9  ;;  %v5618_v49 = vmul.f32 %v7253_v9, %v7253_v9 }
 0x2e1   : > { %5479 = vst [vmem:[%s7994_s26 + $0x8] sm:$0xff] %v7254_v45  ;;  %v5543_v0 = vadd.f32 %v7254_v45, %v7252_v8  ;;  %v5616_v28 = vmul.f32 %v7254_v45, %v7254_v45 }
 0x2e3   : > { %v5544_v44 = vadd.f32 %v7251_v5, %v5543_v0  ;;  %v5679_v46 = vadd.f32 %v5616_v28, %v5615_v15  ;;  %v7177_v51 = vpop.f32.mrb[4].mxu0 }
 0x2e4   : > { %v7255_v40 = vadd.f32 %v7177_v51, %v6777_v32  ;;  %v5175_v26 = vpop.f32.mrb[5].mxu0 }
 0x2e5   : > { %v5680_v48 = vadd.f32 %v5679_v46, %v5617_v35  ;;  %v7256_v6 = vadd.f32 %v5175_v26, %v2925_v41  ;;  %v5545_v13 = vadd.f32 %v7253_v9, %v5544_v44  ;;  %v7178_v16 = vpop.f32.mrb[6].mxu0 }
 0x2e6   : > { %5484 = vst [vmem:[%s7994_s26 + $0x30] sm:$0xff] %v7255_v40  ;;  %v7257_v10 = vadd.f32 %v7178_v16, %v6778_v24  ;;  %v5178_v58 = vpop.f32.mrb[7].mxu0  ;;  %v5621_v4 = vmul.f32 %v7255_v40, %v7255_v40 }
 0x2e7   : > { %5482 = vst [vmem:[%s7994_s26 + $0x20] sm:$0xff] %v7256_v6  ;;  %v5546_v38 = vadd.f32 %v7256_v6, %v5545_v13  ;;  %v5619_v34 = vmul.f32 %v7256_v6, %v7256_v6  ;;  %v5681_v1 = vadd.f32 %v5680_v48, %v5618_v49  ;;  %v7258_v60 = vadd.f32 %v5178_v58, %v2928_v7 }
 0x2e8   : > { %5485 = vst [vmem:[%s7994_s26 + $0x38] sm:$0xff] %v7257_v10  ;;  %v5622_v41 = vmul.f32 %v7257_v10, %v7257_v10 }
 0x2e9   : > { %v5682_v30 = vadd.f32 %v5681_v1, %v5619_v34  ;;  %5483 = vst [vmem:[%s7994_s26 + $0x28] sm:$0xff] %v7258_v60  ;;  %v5547_v42 = vadd.f32 %v7258_v60, %v5546_v38  ;;  %v5620_v63 = vmul.f32 %v7258_v60, %v7258_v60 }
 0x2eb   : > { %v5548_v2 = vadd.f32 %v7255_v40, %v5547_v42  ;;  %v5683_v11 = vadd.f32 %v5682_v30, %v5620_v63  ;;  %v7181_v31 = vpop.f32.mrb[8].mxu0 }
 0x2ec   : > { %v7259_v12 = vadd.f32 %v7181_v31, %v9605_v36  ;;  %v5191_v32 = vpop.f32.mrb[9].mxu0 }
 0x2ed   : > { %v5684_v24 = vadd.f32 %v5683_v11, %v5621_v4  ;;  %v7260_v7 = vadd.f32 %v5191_v32, %v9607_v14  ;;  %v5549_v39 = vadd.f32 %v7257_v10, %v5548_v2  ;;  %v7182_v5 = vpop.f32.mrb[10].mxu0 }
 0x2ee   : > { %5488 = vst [vmem:[%s7994_s26 + $0x50] sm:$0xff] %v7259_v12  ;;  %v7261_v33 = vadd.f32 %v7182_v5, %v9609_v27  ;;  %v5194_v8 = vpop.f32.mrb[11].mxu0  ;;  %v5625_v14 = vmul.f32 %v7259_v12, %v7259_v12 }
 0x2ef   : > { %5486 = vst [vmem:[%s7994_s26 + $0x40] sm:$0xff] %v7260_v7  ;;  %v5550_v18 = vadd.f32 %v7260_v7, %v5549_v39  ;;  %v5623_v9 = vmul.f32 %v7260_v7, %v7260_v7  ;;  %v5685_v50 = vadd.f32 %v5684_v24, %v5622_v41  ;;  %v7262_v45 = vadd.f32 %v5194_v8, %v9611_v29 }
 0x2f0   : > { %5489 = vst [vmem:[%s7994_s26 + $0x58] sm:$0xff] %v7261_v33  ;;  %v5626_v51 = vmul.f32 %v7261_v33, %v7261_v33 }
 0x2f1   : > { %v5686_v36 = vadd.f32 %v5685_v50, %v5623_v9  ;;  %5487 = vst [vmem:[%s7994_s26 + $0x48] sm:$0xff] %v7262_v45  ;;  %v5551_v15 = vadd.f32 %v7262_v45, %v5550_v18  ;;  %v5624_v0 = vmul.f32 %v7262_v45, %v7262_v45 }
 0x2f3   : > { %v5552_v28 = vadd.f32 %v7259_v12, %v5551_v15  ;;  %v5687_v35 = vadd.f32 %v5686_v36, %v5624_v0  ;;  %v7185_v44 = vpop.f32.mrb[12].mxu0 }
 0x2f4   : > { %v7263_v27 = vadd.f32 %v7185_v44, %v9613_v56  ;;  %v5207_v46 = vpop.f32.mrb[13].mxu0 }
 0x2f5   : > { %v5688_v40 = vadd.f32 %v5687_v35, %v5625_v14  ;;  %v7264_v29 = vadd.f32 %v5207_v46, %v9615_v59  ;;  %v5553_v26 = vadd.f32 %v7261_v33, %v5552_v28  ;;  %v7186_v49 = vpop.f32.mrb[14].mxu0 }
 0x2f6   : > { %5492 = vst [vmem:[%s7994_s26 + $0x70] sm:$0xff] %v7263_v27  ;;  %v7265_v48 = vadd.f32 %v7186_v49, %v9617_v37  ;;  %v5210_v6 = vpop.f32.mrb[15].mxu0  ;;  %v5629_v59 = vmul.f32 %v7263_v27, %v7263_v27 }
 0x2f7   : > { %5490 = vst [vmem:[%s7994_s26 + $0x60] sm:$0xff] %v7264_v29  ;;  %v5554_v13 = vadd.f32 %v7264_v29, %v5553_v26  ;;  %v5627_v16 = vmul.f32 %v7264_v29, %v7264_v29  ;;  %v5689_v10 = vadd.f32 %v5688_v40, %v5626_v51  ;;  %v7266_v58 = vadd.f32 %v5210_v6, %v9619_v55 }
 0x2f8   : > { %5493 = vst [vmem:[%s7994_s26 + $0x78] sm:$0xff] %v7265_v48  ;;  %v5630_v63 = vmul.f32 %v7265_v48, %v7265_v48 }
 0x2f9   : > { %v5690_v56 = vadd.f32 %v5689_v10, %v5627_v16  ;;  %5491 = vst [vmem:[%s7994_s26 + $0x68] sm:$0xff] %v7266_v58  ;;  %v5555_v38 = vadd.f32 %v7266_v58, %v5554_v13  ;;  %v5628_v34 = vmul.f32 %v7266_v58, %v7266_v58 }
 0x2fb   : > { %v5556_v1 = vadd.f32 %v7263_v27, %v5555_v38  ;;  %v5691_v60 = vadd.f32 %v5690_v56, %v5628_v34  ;;  %v7189_v30 = vpop.f32.mrb[16].mxu0 }
 0x2fc   : > { %v7267_v37 = vadd.f32 %v7189_v30, %v9621_v61  ;;  %v5223_v42 = vpop.f32.mrb[17].mxu0 }
 0x2fd   : > { %v5692_v4 = vadd.f32 %v5691_v60, %v5629_v59  ;;  %v7268_v55 = vadd.f32 %v5223_v42, %v9623_v25  ;;  %v5557_v2 = vadd.f32 %v7265_v48, %v5556_v1  ;;  %v7190_v11 = vpop.f32.mrb[18].mxu0 }
 0x2fe   : > { %5496 = vst [vmem:[%s7994_s26 + $0x90] sm:$0xff] %v7267_v37  ;;  %v7269_v31 = vadd.f32 %v7190_v11, %v9625_v3  ;;  %v5226_v12 = vpop.f32.mrb[19].mxu0  ;;  %v5633_v25 = vmul.f32 %v7267_v37, %v7267_v37 }
 0x2ff   : > { %5494 = vst [vmem:[%s7994_s26 + $0x80] sm:$0xff] %v7268_v55  ;;  %v5558_v32 = vadd.f32 %v7268_v55, %v5557_v2  ;;  %v5631_v41 = vmul.f32 %v7268_v55, %v7268_v55  ;;  %v5693_v24 = vadd.f32 %v5692_v4, %v5630_v63  ;;  %v7270_v7 = vadd.f32 %v5226_v12, %v9627_v57 }
 0x300   : > { %5497 = vst [vmem:[%s7994_s26 + $0x98] sm:$0xff] %v7269_v31  ;;  %v5634_v50 = vmul.f32 %v7269_v31, %v7269_v31 }
 0x301   : > { %v5694_v61 = vadd.f32 %v5693_v24, %v5631_v41  ;;  %5495 = vst [vmem:[%s7994_s26 + $0x88] sm:$0xff] %v7270_v7  ;;  %v5559_v39 = vadd.f32 %v7270_v7, %v5558_v32  ;;  %v5632_v5 = vmul.f32 %v7270_v7, %v7270_v7 }
 0x303   : > { %v5560_v33 = vadd.f32 %v7267_v37, %v5559_v39  ;;  %v5695_v8 = vadd.f32 %v5694_v61, %v5632_v5  ;;  %v7193_v18 = vpop.f32.mrb[20].mxu0 }
 0x304   : > { %v7271_v3 = vadd.f32 %v7193_v18, %v9629_v21  ;;  %v5239_v9 = vpop.f32.mrb[21].mxu0 }
 0x305   : > { %v5696_v45 = vadd.f32 %v5695_v8, %v5633_v25  ;;  %v7272_v57 = vadd.f32 %v5239_v9, %v9631_v47  ;;  %v5561_v36 = vadd.f32 %v7269_v31, %v5560_v33  ;;  %v7194_v15 = vpop.f32.mrb[22].mxu0 }
 0x306   : > { %5500 = vst [vmem:[%s7994_s26 + $0xb0] sm:$0xff] %v7271_v3  ;;  %v7273_v0 = vadd.f32 %v7194_v15, %v9633_v43  ;;  %v5242_v14 = vpop.f32.mrb[23].mxu0  ;;  %v5637_v47 = vmul.f32 %v7271_v3, %v7271_v3 }
 0x307   : > { %5498 = vst [vmem:[%s7994_s26 + $0xa0] sm:$0xff] %v7272_v57  ;;  %v5562_v28 = vadd.f32 %v7272_v57, %v5561_v36  ;;  %v5635_v35 = vmul.f32 %v7272_v57, %v7272_v57  ;;  %v5697_v44 = vadd.f32 %v5696_v45, %v5634_v50  ;;  %v7274_v27 = vadd.f32 %v5242_v14, %v9635_v17 }
 0x308   : > { %5501 = vst [vmem:[%s7994_s26 + $0xb8] sm:$0xff] %v7273_v0  ;;  %v5638_v48 = vmul.f32 %v7273_v0, %v7273_v0 }
 0x309   : > { %v5698_v21 = vadd.f32 %v5697_v44, %v5635_v35  ;;  %5499 = vst [vmem:[%s7994_s26 + $0xa8] sm:$0xff] %v7274_v27  ;;  %v5563_v46 = vadd.f32 %v7274_v27, %v5562_v28  ;;  %v5636_v51 = vmul.f32 %v7274_v27, %v7274_v27 }
 0x30b   : > { %v5564_v40 = vadd.f32 %v7271_v3, %v5563_v46  ;;  %v5699_v29 = vadd.f32 %v5698_v21, %v5636_v51  ;;  %v7197_v26 = vpop.f32.mrb[24].mxu0 }
 0x30c   : > { %v7275_v43 = vadd.f32 %v7197_v26, %v9637_v23  ;;  %v5255_v49 = vpop.f32.mrb[25].mxu0 }
 0x30d   : > { %v5700_v6 = vadd.f32 %v5699_v29, %v5637_v47  ;;  %v7276_v17 = vadd.f32 %v5255_v49, %v9639_v62  ;;  %v5565_v13 = vadd.f32 %v7273_v0, %v5564_v40  ;;  %v7198_v16 = vpop.f32.mrb[26].mxu0 }
 0x30e   : > { %5504 = vst [vmem:[%s7994_s26 + $0xd0] sm:$0xff] %v7275_v43  ;;  %v7277_v10 = vadd.f32 %v7198_v16, %v9641_v53  ;;  %v5258_v58 = vpop.f32.mrb[27].mxu0  ;;  %v5641_v62 = vmul.f32 %v7275_v43, %v7275_v43 }
 0x30f   : > { %5502 = vst [vmem:[%s7994_s26 + $0xc0] sm:$0xff] %v7276_v17  ;;  %v5566_v56 = vadd.f32 %v7276_v17, %v5565_v13  ;;  %v5639_v38 = vmul.f32 %v7276_v17, %v7276_v17  ;;  %v5701_v34 = vadd.f32 %v5700_v6, %v5638_v48  ;;  %v7278_v59 = vadd.f32 %v5258_v58, %v9643_v20 }
 0x310   : > { %5505 = vst [vmem:[%s7994_s26 + $0xd8] sm:$0xff] %v7277_v10  ;;  %v5642_v4 = vmul.f32 %v7277_v10, %v7277_v10 }
 0x311   : > { %v5702_v23 = vadd.f32 %v5701_v34, %v5639_v38  ;;  %5503 = vst [vmem:[%s7994_s26 + $0xc8] sm:$0xff] %v7278_v59  ;;  %v5567_v1 = vadd.f32 %v7278_v59, %v5566_v56  ;;  %v5640_v60 = vmul.f32 %v7278_v59, %v7278_v59 }
 0x313   : > { %v5568_v30 = vadd.f32 %v7275_v43, %v5567_v1  ;;  %v5703_v37 = vadd.f32 %v5702_v23, %v5640_v60  ;;  %v7201_v42 = vpop.f32.mrb[28].mxu0 }
 0x314   : > { %v7279_v53 = vadd.f32 %v7201_v42, %v9645_v52  ;;  %v5271_v63 = vpop.f32.mrb[29].mxu0 }
 0x315   : > { %v5704_v55 = vadd.f32 %v5703_v37, %v5641_v62  ;;  %v7280_v20 = vadd.f32 %v5271_v63, %v9647_v54  ;;  %v5569_v2 = vadd.f32 %v7277_v10, %v5568_v30  ;;  %v7202_v11 = vpop.f32.mrb[30].mxu0 }
 0x316   : > { %5508 = vst [vmem:[%s7994_s26 + $0xf0] sm:$0xff] %v7279_v53  ;;  %v7281_v31 = vadd.f32 %v7202_v11, %v9649_v19  ;;  %v5274_v12 = vpop.f32.mrb[31].mxu0  ;;  %v5645_v5 = vmul.f32 %v7279_v53, %v7279_v53 }
 0x317   : > { %5506 = vst [vmem:[%s7994_s26 + $0xe0] sm:$0xff] %v7280_v20  ;;  %v5570_v32 = vadd.f32 %v7280_v20, %v5569_v2  ;;  %v5643_v41 = vmul.f32 %v7280_v20, %v7280_v20  ;;  %v5705_v24 = vadd.f32 %v5704_v55, %v5642_v4  ;;  %v7282_v7 = vadd.f32 %v5274_v12, %v9651_v22 }
 0x318   : > { %5509 = vst [vmem:[%s7994_s26 + $0xf8] sm:$0xff] %v7281_v31  ;;  %v5646_v18 = vmul.f32 %v7281_v31, %v7281_v31 }
 0x319   : > { %v5706_v52 = vadd.f32 %v5705_v24, %v5643_v41  ;;  %5507 = vst [vmem:[%s7994_s26 + $0xe8] sm:$0xff] %v7282_v7  ;;  %v5571_v61 = vadd.f32 %v7282_v7, %v5570_v32  ;;  %v5644_v39 = vmul.f32 %v7282_v7, %v7282_v7 }
 0x31b   : > { %v5572_v54 = vadd.f32 %v7279_v53, %v5571_v61  ;;  %v5707_v25 = vadd.f32 %v5706_v52, %v5644_v39  ;;  %v7205_v33 = vpop.f32.mrb[32].mxu0 }
 0x31c   : > { %v6885_v8 = vpop.f32.mrb[32].mxu1  ;;  %v5287_v19 = vpop.f32.mrb[33].mxu0 }
 0x31d   : > { %v5708_v3 = vadd.f32 %v5707_v25, %v5645_v5  ;;  %v7283_v9 = vadd.f32 %v7205_v33, %v6885_v8  ;;  %v3507_v50 = vpop.f32.mrb[33].mxu1  ;;  %v5573_v22 = vadd.f32 %v7281_v31, %v5572_v54  ;;  %v7206_v45 = vpop.f32.mrb[34].mxu0 }
 0x31e   : > { %v7284_v57 = vadd.f32 %v5287_v19, %v3507_v50  ;;  %v6886_v36 = vpop.f32.mrb[34].mxu1  ;;  %v5290_v15 = vpop.f32.mrb[35].mxu0 }
 0x31f   : > { %5512 = vst [vmem:[%s7994_s26 + $0x110] sm:$0xff] %v7283_v9  ;;  %v5709_v0 = vadd.f32 %v5708_v3, %v5646_v18  ;;  %v7285_v14 = vadd.f32 %v7206_v45, %v6886_v36  ;;  %v3510_v28 = vpop.f32.mrb[35].mxu1  ;;  %v5649_v40 = vmul.f32 %v7283_v9, %v7283_v9 }
 0x320   : > { %5510 = vst [vmem:[%s7994_s26 + $0x100] sm:$0xff] %v7284_v57  ;;  %v5574_v35 = vadd.f32 %v7284_v57, %v5573_v22  ;;  %v5647_v44 = vmul.f32 %v7284_v57, %v7284_v57  ;;  %v7286_v27 = vadd.f32 %v5290_v15, %v3510_v28 }
 0x321   : > { %5513 = vst [vmem:[%s7994_s26 + $0x118] sm:$0xff] %v7285_v14  ;;  %v5650_v13 = vmul.f32 %v7285_v14, %v7285_v14 }
 0x322   : > { %v5710_v21 = vadd.f32 %v5709_v0, %v5647_v44  ;;  %5511 = vst [vmem:[%s7994_s26 + $0x108] sm:$0xff] %v7286_v27  ;;  %v5575_v46 = vadd.f32 %v7286_v27, %v5574_v35  ;;  %v5648_v51 = vmul.f32 %v7286_v27, %v7286_v27 }
 0x323   : > { %v7209_v47 = vpop.f32.mrb[36].mxu0 }
 0x324   : > { %v5576_v29 = vadd.f32 %v7283_v9, %v5575_v46  ;;  %v5711_v26 = vadd.f32 %v5710_v21, %v5648_v51  ;;  %v6889_v43 = vpop.f32.mrb[36].mxu1  ;;  %v5303_v49 = vpop.f32.mrb[37].mxu0 }
 0x325   : > { %v7287_v48 = vadd.f32 %v7209_v47, %v6889_v43  ;;  %v3523_v6 = vpop.f32.mrb[37].mxu1  ;;  %v7210_v17 = vpop.f32.mrb[38].mxu0 }
 0x326   : > { %v5712_v16 = vadd.f32 %v5711_v26, %v5649_v40  ;;  %v7288_v10 = vadd.f32 %v5303_v49, %v3523_v6  ;;  %v5577_v58 = vadd.f32 %v7285_v14, %v5576_v29  ;;  %v6890_v56 = vpop.f32.mrb[38].mxu1  ;;  %v5306_v38 = vpop.f32.mrb[39].mxu0 }
 0x327   : > { %5516 = vst [vmem:[%s7994_s26 + $0x130] sm:$0xff] %v7287_v48  ;;  %v7289_v34 = vadd.f32 %v7210_v17, %v6890_v56  ;;  %v3526_v59 = vpop.f32.mrb[39].mxu1  ;;  %v5653_v63 = vmul.f32 %v7287_v48, %v7287_v48 }
 0x328   : > { %5514 = vst [vmem:[%s7994_s26 + $0x120] sm:$0xff] %v7288_v10  ;;  %v5578_v23 = vadd.f32 %v7288_v10, %v5577_v58  ;;  %v5651_v1 = vmul.f32 %v7288_v10, %v7288_v10  ;;  %v5713_v60 = vadd.f32 %v5712_v16, %v5650_v13  ;;  %v7290_v62 = vadd.f32 %v5306_v38, %v3526_v59 }
 0x329   : > { %5517 = vst [vmem:[%s7994_s26 + $0x138] sm:$0xff] %v7289_v34  ;;  %v5654_v32 = vmul.f32 %v7289_v34, %v7289_v34 }
 0x32a   : > { %v5714_v30 = vadd.f32 %v5713_v60, %v5651_v1  ;;  %5515 = vst [vmem:[%s7994_s26 + $0x128] sm:$0xff] %v7290_v62  ;;  %v5579_v37 = vadd.f32 %v7290_v62, %v5578_v23  ;;  %v5652_v42 = vmul.f32 %v7290_v62, %v7290_v62 }
 0x32b   : > { %v7213_v53 = vpop.f32.mrb[40].mxu0 }
 0x32c   : > { %v5580_v4 = vadd.f32 %v7287_v48, %v5579_v37  ;;  %v5715_v55 = vadd.f32 %v5714_v30, %v5652_v42  ;;  %v6893_v20 = vpop.f32.mrb[40].mxu1  ;;  %v5319_v2 = vpop.f32.mrb[41].mxu0 }
 0x32d   : > { %v7291_v11 = vadd.f32 %v7213_v53, %v6893_v20  ;;  %v3539_v31 = vpop.f32.mrb[41].mxu1  ;;  %v7214_v12 = vpop.f32.mrb[42].mxu0 }
 0x32e   : > { %v5716_v41 = vadd.f32 %v5715_v55, %v5653_v63  ;;  %v7292_v24 = vadd.f32 %v5319_v2, %v3539_v31  ;;  %v5581_v7 = vadd.f32 %v7289_v34, %v5580_v4  ;;  %v6894_v52 = vpop.f32.mrb[42].mxu1  ;;  %v5322_v61 = vpop.f32.mrb[43].mxu0 }
 0x32f   : > { %5520 = vst [vmem:[%s7994_s26 + $0x150] sm:$0xff] %v7291_v11  ;;  %v7293_v39 = vadd.f32 %v7214_v12, %v6894_v52  ;;  %v3542_v5 = vpop.f32.mrb[43].mxu1  ;;  %v5657_v50 = vmul.f32 %v7291_v11, %v7291_v11 }
 0x330   : > { %5518 = vst [vmem:[%s7994_s26 + $0x140] sm:$0xff] %v7292_v24  ;;  %v5582_v54 = vadd.f32 %v7292_v24, %v5581_v7  ;;  %v5655_v25 = vmul.f32 %v7292_v24, %v7292_v24  ;;  %v5717_v33 = vadd.f32 %v5716_v41, %v5654_v32  ;;  %v7294_v8 = vadd.f32 %v5322_v61, %v3542_v5 }
 0x331   : > { %5521 = vst [vmem:[%s7994_s26 + $0x158] sm:$0xff] %v7293_v39  ;;  %v5658_v28 = vmul.f32 %v7293_v39, %v7293_v39 }
 0x332   : > { %v5718_v19 = vadd.f32 %v5717_v33, %v5655_v25  ;;  %5519 = vst [vmem:[%s7994_s26 + $0x148] sm:$0xff] %v7294_v8  ;;  %v5583_v18 = vadd.f32 %v7294_v8, %v5582_v54  ;;  %v5656_v3 = vmul.f32 %v7294_v8, %v7294_v8 }
 0x333   : > { %v7217_v9 = vpop.f32.mrb[44].mxu0 }
 0x334   : > { %v5584_v22 = vadd.f32 %v7291_v11, %v5583_v18  ;;  %v5719_v45 = vadd.f32 %v5718_v19, %v5656_v3  ;;  %v6897_v57 = vpop.f32.mrb[44].mxu1  ;;  %v5335_v36 = vpop.f32.mrb[45].mxu0 }
 0x335   : > { %v7295_v15 = vadd.f32 %v7217_v9, %v6897_v57  ;;  %v3555_v0 = vpop.f32.mrb[45].mxu1  ;;  %v7218_v14 = vpop.f32.mrb[46].mxu0 }
 0x336   : > { %v5720_v35 = vadd.f32 %v5719_v45, %v5657_v50  ;;  %v7296_v44 = vadd.f32 %v5335_v36, %v3555_v0  ;;  %v5585_v27 = vadd.f32 %v7293_v39, %v5584_v22  ;;  %v6898_v21 = vpop.f32.mrb[46].mxu1  ;;  %v5338_v46 = vpop.f32.mrb[47].mxu0 }
 0x337   : > { %5524 = vst [vmem:[%s7994_s26 + $0x170] sm:$0xff] %v7295_v15  ;;  %v7297_v51 = vadd.f32 %v7218_v14, %v6898_v21  ;;  %v3558_v47 = vpop.f32.mrb[47].mxu1  ;;  %v5661_v13 = vmul.f32 %v7295_v15, %v7295_v15 }
 0x338   : > { %5522 = vst [vmem:[%s7994_s26 + $0x160] sm:$0xff] %v7296_v44  ;;  %v5586_v40 = vadd.f32 %v7296_v44, %v5585_v27  ;;  %v5659_v29 = vmul.f32 %v7296_v44, %v7296_v44  ;;  %v5721_v26 = vadd.f32 %v5720_v35, %v5658_v28  ;;  %v7298_v43 = vadd.f32 %v5338_v46, %v3558_v47 }
 0x339   : > { %5525 = vst [vmem:[%s7994_s26 + $0x178] sm:$0xff] %v7297_v51  ;;  %v5662_v23 = vmul.f32 %v7297_v51, %v7297_v51 }
 0x33a   : > { %v5722_v49 = vadd.f32 %v5721_v26, %v5659_v29  ;;  %5523 = vst [vmem:[%s7994_s26 + $0x168] sm:$0xff] %v7298_v43  ;;  %v5587_v48 = vadd.f32 %v7298_v43, %v5586_v40  ;;  %v5660_v6 = vmul.f32 %v7298_v43, %v7298_v43 }
 0x33b   : > { %v7221_v17 = vpop.f32.mrb[48].mxu0 }
 0x33c   : > { %v5588_v16 = vadd.f32 %v7295_v15, %v5587_v48  ;;  %v5723_v10 = vadd.f32 %v5722_v49, %v5660_v6  ;;  %v6901_v58 = vpop.f32.mrb[48].mxu1  ;;  %v5351_v56 = vpop.f32.mrb[49].mxu0 }
 0x33d   : > { %v7299_v38 = vadd.f32 %v7221_v17, %v6901_v58  ;;  %v3571_v34 = vpop.f32.mrb[49].mxu1  ;;  %v7222_v59 = vpop.f32.mrb[50].mxu0 }
 0x33e   : > { %v5724_v1 = vadd.f32 %v5723_v10, %v5661_v13  ;;  %v7300_v60 = vadd.f32 %v5351_v56, %v3571_v34  ;;  %v5589_v62 = vadd.f32 %v7297_v51, %v5588_v16  ;;  %v6902_v30 = vpop.f32.mrb[50].mxu1  ;;  %v5354_v37 = vpop.f32.mrb[51].mxu0 }
 0x33f   : > { %5528 = vst [vmem:[%s7994_s26 + $0x190] sm:$0xff] %v7299_v38  ;;  %v7301_v42 = vadd.f32 %v7222_v59, %v6902_v30  ;;  %v3574_v53 = vpop.f32.mrb[51].mxu1  ;;  %v5665_v32 = vmul.f32 %v7299_v38, %v7299_v38 }
 0x340   : > { %5526 = vst [vmem:[%s7994_s26 + $0x180] sm:$0xff] %v7300_v60  ;;  %v5590_v63 = vadd.f32 %v7300_v60, %v5589_v62  ;;  %v5663_v4 = vmul.f32 %v7300_v60, %v7300_v60  ;;  %v5725_v55 = vadd.f32 %v5724_v1, %v5662_v23  ;;  %v7302_v20 = vadd.f32 %v5354_v37, %v3574_v53 }
 0x341   : > { %5529 = vst [vmem:[%s7994_s26 + $0x198] sm:$0xff] %v7301_v42  ;;  %v5666_v54 = vmul.f32 %v7301_v42, %v7301_v42 }
 0x342   : > { %v5726_v2 = vadd.f32 %v5725_v55, %v5663_v4  ;;  %5527 = vst [vmem:[%s7994_s26 + $0x188] sm:$0xff] %v7302_v20  ;;  %v5591_v11 = vadd.f32 %v7302_v20, %v5590_v63  ;;  %v5664_v31 = vmul.f32 %v7302_v20, %v7302_v20 }
 0x343   : > { %v7225_v12 = vpop.f32.mrb[52].mxu0 }
 0x344   : > { %v5592_v41 = vadd.f32 %v7299_v38, %v5591_v11  ;;  %v5727_v24 = vadd.f32 %v5726_v2, %v5664_v31  ;;  %v6905_v7 = vpop.f32.mrb[52].mxu1  ;;  %v5367_v52 = vpop.f32.mrb[53].mxu0 }
 0x345   : > { %v7303_v61 = vadd.f32 %v7225_v12, %v6905_v7  ;;  %v3587_v39 = vpop.f32.mrb[53].mxu1  ;;  %v7226_v5 = vpop.f32.mrb[54].mxu0 }
 0x346   : > { %v5728_v25 = vadd.f32 %v5727_v24, %v5665_v32  ;;  %v7304_v33 = vadd.f32 %v5367_v52, %v3587_v39  ;;  %v5593_v8 = vadd.f32 %v7301_v42, %v5592_v41  ;;  %v6906_v19 = vpop.f32.mrb[54].mxu1  ;;  %v5370_v18 = vpop.f32.mrb[55].mxu0 }
 0x347   : > { %5532 = vst [vmem:[%s7994_s26 + $0x1b0] sm:$0xff] %v7303_v61  ;;  %v7305_v3 = vadd.f32 %v7226_v5, %v6906_v19  ;;  %v3590_v9 = vpop.f32.mrb[55].mxu1  ;;  %v5669_v28 = vmul.f32 %v7303_v61, %v7303_v61 }
 0x348   : > { %5530 = vst [vmem:[%s7994_s26 + $0x1a0] sm:$0xff] %v7304_v33  ;;  %v5594_v50 = vadd.f32 %v7304_v33, %v5593_v8  ;;  %v5667_v22 = vmul.f32 %v7304_v33, %v7304_v33  ;;  %v5729_v45 = vadd.f32 %v5728_v25, %v5666_v54  ;;  %v7306_v57 = vadd.f32 %v5370_v18, %v3590_v9 }
 0x349   : > { %5533 = vst [vmem:[%s7994_s26 + $0x1b8] sm:$0xff] %v7305_v3  ;;  %v5670_v40 = vmul.f32 %v7305_v3, %v7305_v3 }
 0x34a   : > { %v5730_v36 = vadd.f32 %v5729_v45, %v5667_v22  ;;  %5531 = vst [vmem:[%s7994_s26 + $0x1a8] sm:$0xff] %v7306_v57  ;;  %v5595_v15 = vadd.f32 %v7306_v57, %v5594_v50  ;;  %v5668_v0 = vmul.f32 %v7306_v57, %v7306_v57 }
 0x34b   : > { %v7229_v14 = vpop.f32.mrb[56].mxu0 }
 0x34c   : > { %v5596_v35 = vadd.f32 %v7303_v61, %v5595_v15  ;;  %v5731_v44 = vadd.f32 %v5730_v36, %v5668_v0  ;;  %v6909_v27 = vpop.f32.mrb[56].mxu1  ;;  %v5383_v21 = vpop.f32.mrb[57].mxu0 }
 0x34d   : > { %v7307_v46 = vadd.f32 %v7229_v14, %v6909_v27  ;;  %v3603_v51 = vpop.f32.mrb[57].mxu1  ;;  %v7230_v47 = vpop.f32.mrb[58].mxu0  ;;  %v5542_v14 = vld [vmem:[%s9759_s3] sm:$0x1] }
 0x34e   : > { %v5732_v29 = vadd.f32 %v5731_v44, %v5669_v28  ;;  %v7308_v26 = vadd.f32 %v5383_v21, %v3603_v51  ;;  %v5597_v43 = vadd.f32 %v7305_v3, %v5596_v35  ;;  %v6910_v49 = vpop.f32.mrb[58].mxu1  ;;  %v5386_v48 = vpop.f32.mrb[59].mxu0  ;;  %v5614_v44 = vld [vmem:[%s9760_s4] sm:$0x1] }
 0x34f   : > { %5536 = vst [vmem:[%s7994_s26 + $0x1d0] sm:$0xff] %v7307_v46  ;;  %v7309_v6 = vadd.f32 %v7230_v47, %v6910_v49  ;;  %v3606_v17 = vpop.f32.mrb[59].mxu1  ;;  %v5673_v23 = vmul.f32 %v7307_v46, %v7307_v46 }
 0x350   : > { %5534 = vst [vmem:[%s7994_s26 + $0x1c0] sm:$0xff] %v7308_v26  ;;  %v5598_v13 = vadd.f32 %v7308_v26, %v5597_v43  ;;  %v5671_v16 = vmul.f32 %v7308_v26, %v7308_v26  ;;  %v5733_v10 = vadd.f32 %v5732_v29, %v5670_v40  ;;  %v7310_v58 = vadd.f32 %v5386_v48, %v3606_v17 }
 0x351   : > { %5537 = vst [vmem:[%s7994_s26 + $0x1d8] sm:$0xff] %v7309_v6  ;;  %v5674_v63 = vmul.f32 %v7309_v6, %v7309_v6 }
 0x352   : > { %v5734_v56 = vadd.f32 %v5733_v10, %v5671_v16  ;;  %5535 = vst [vmem:[%s7994_s26 + $0x1c8] sm:$0xff] %v7310_v58  ;;  %v5599_v38 = vadd.f32 %v7310_v58, %v5598_v13  ;;  %v5672_v34 = vmul.f32 %v7310_v58, %v7310_v58 }
 0x353   : > { %v7233_v59 = vpop.f32.mrb[60].mxu0 }
 0x354   : > { %v5600_v1 = vadd.f32 %v7307_v46, %v5599_v38  ;;  %v5735_v60 = vadd.f32 %v5734_v56, %v5672_v34  ;;  %v6913_v62 = vpop.f32.mrb[60].mxu1  ;;  %v5399_v30 = vpop.f32.mrb[61].mxu0 }
 0x355   : > { %v7311_v37 = vadd.f32 %v7233_v59, %v6913_v62  ;;  %v3619_v42 = vpop.f32.mrb[61].mxu1  ;;  %v7234_v53 = vpop.f32.mrb[62].mxu0 }
 0x356   : > { %v5736_v4 = vadd.f32 %v5735_v60, %v5673_v23  ;;  %v7312_v55 = vadd.f32 %v5399_v30, %v3619_v42  ;;  %v5601_v20 = vadd.f32 %v7309_v6, %v5600_v1  ;;  %v6914_v2 = vpop.f32.mrb[62].mxu1  ;;  %v5402_v11 = vpop.f32.mrb[63].mxu0 }
 0x357   : > { %5540 = vst [vmem:[%s7994_s26 + $0x1f0] sm:$0xff] %v7311_v37  ;;  %v7313_v31 = vadd.f32 %v7234_v53, %v6914_v2  ;;  %v3622_v12 = vpop.f32.mrb[63].mxu1  ;;  %v5677_v5 = vmul.f32 %v7311_v37, %v7311_v37 }
 0x358   : > { %5538 = vst [vmem:[%s7994_s26 + $0x1e0] sm:$0xff] %v7312_v55  ;;  %v5602_v32 = vadd.f32 %v7312_v55, %v5601_v20  ;;  %v5675_v41 = vmul.f32 %v7312_v55, %v7312_v55  ;;  %v5737_v24 = vadd.f32 %v5736_v4, %v5674_v63  ;;  %v7314_v7 = vadd.f32 %v5402_v11, %v3622_v12 }
 0x359   : > { %5541 = vst [vmem:[%s7994_s26 + $0x1f8] sm:$0xff] %v7313_v31  ;;  %v5678_v33 = vmul.f32 %v7313_v31, %v7313_v31 }
 0x35a   : > { %v5738_v52 = vadd.f32 %v5737_v24, %v5675_v41  ;;  %5539 = vst [vmem:[%s7994_s26 + $0x1e8] sm:$0xff] %v7314_v7  ;;  %v5603_v61 = vadd.f32 %v7314_v7, %v5602_v32  ;;  %v5676_v39 = vmul.f32 %v7314_v7, %v7314_v7 }
 0x35c   : > { %v5604_v54 = vadd.f32 %v7311_v37, %v5603_v61  ;;  %v5739_v25 = vadd.f32 %v5738_v52, %v5676_v39 }
 0x35e   : > { %v5605_v8 = vadd.f32 %v7313_v31, %v5604_v54  ;;  %v5740_v19 = vadd.f32 %v5739_v25, %v5677_v5 }
 0x360   : > { %v5606_v18 = vrot.slane %v5605_v8, 4  ;;  %v5741_v3 = vadd.f32 %v5740_v19, %v5678_v33 }
 0x362   : > { %v5607_v9 = vadd.f32 %v5606_v18, %v5605_v8  ;;  %v5742_v50 = vrot.slane %v5741_v3, 4 }
 0x364   : > { %v5608_v22 = vrot.slane %v5607_v9, 2  ;;  %v5743_v45 = vadd.f32 %v5742_v50, %v5741_v3 }
 0x366   : > { %v5609_v57 = vadd.f32 %v5608_v22, %v5607_v9  ;;  %v5744_v36 = vrot.slane %v5743_v45, 2 }
 0x368   : > { %v5610_v15 = vrot.slane %v5609_v57, 1  ;;  %v5745_v0 = vadd.f32 %v5744_v36, %v5743_v45 }
 0x36a   : > { %v5611_v28 = vadd.f32 %v5610_v15, %v5609_v57  ;;  %v5746_v35 = vrot.slane %v5745_v0, 1 }
 0x36c   : > { %v5612_v27 = vadd.f32 %v5611_v28, %v5542_v14  ;;  %v5747_v21 = vadd.f32 %v5746_v35, %v5745_v0 }
 0x36e   : > { %5613 = vst [vmem:[%s9759_s3] sm:$0x1] %v5612_v27  ;;  %v5748_v46 = vadd.f32 %v5747_v21, %v5614_v44 }
 0x370   : > { %5749 = vst [vmem:[%s9760_s4] sm:$0x1] %v5748_v46 }
 0x371 PF: > { %s15_s15 = sadd.s32 1, %s7950_s15  }
 0x372   : > { %p12_p6 = scmp.ge.s32.totalorder %s15_s15, 6  }
 0x374   :  { %14 = sbr.rel (!%p12_p6) target bundleno = 1 (0x1), region = 86 }

</bundles_post_ra>
